<compile_context>
chip_gen: v6e
topology: v6e:2x2x1
jax: 0.10.0
libtpu: 0.0.40
codegen_flags: <defaults>
</compile_context>

<pallas_src>
import functools

import jax
import jax.numpy as jnp
import numpy as np
from jax.experimental import pallas as pl
from jax.experimental.pallas import tpu as pltpu

GROUPS = 32
EPS = 1e-5                       # torch nn.GroupNorm default
_VMEM_LIMIT = 48 * 1024 * 1024   # safe on v5e/v6e (128 MiB) and v7x (64 MiB physical)
_TARGET_FLAT_ROWS = 2048         # ~rows of the flattened working block per grid step


# --------------------------- kernels ---------------------------------------

def _gn_stats_kernel(x_ref, o_ref):
    """Per-channel sum / sum-of-squares, accumulated over the row-tile grid axis."""
    t = pl.program_id(1)
    x = x_ref[0].astype(jnp.float32)                       # (TH, W, C)
    xf = x.reshape(x.shape[0] * x.shape[1], x.shape[2])    # (TH*W, C)
    s = jnp.sum(xf, axis=0, keepdims=True)                 # (1, C)
    ss = jnp.sum(xf * xf, axis=0, keepdims=True)           # (1, C)
    part = jnp.concatenate([s, ss], axis=0)                # (2, C)

    @pl.when(t == 0)
    def _init():
        o_ref[0] = part

    @pl.when(t != 0)
    def _acc():
        o_ref[0] = o_ref[0] + part


def _fused_gn_silu_conv_kernel(*refs, th, w, c, cout, n_t, mode):
    """Fused GroupNorm(normalize) + SiLU + 3x3 conv (+ optional residual).

    mode 0: no residual (first conv of the block)
    mode 1: identity residual added (Cin == Cout)
    mode 2: 1x1-projected residual added (Cin != Cout)
    """
    if mode == 0:
        aff_ref, xa_ref, xm_ref, xb_ref, w_ref, b_ref, o_ref = refs
    elif mode == 1:
        aff_ref, xa_ref, xm_ref, xb_ref, w_ref, b_ref, rx_ref, o_ref = refs
    else:
        aff_ref, xa_ref, xm_ref, xb_ref, w_ref, b_ref, rx_ref, rw_ref, rb_ref, o_ref = refs

    t = pl.program_id(1)
    aff = aff_ref[0].astype(jnp.float32)                   # (2, C): [scale, shift]
    scale = aff[0:1, :]
    shift = aff[1:2, :]

    def norm_act(v):                                       # (R, W, C) -> (R*W, C) f32
        r = v.shape[0]
        vf = v.reshape(r * w, c).astype(jnp.float32)
        y = vf * scale + shift                             # folded GroupNorm affine
        return y * jax.nn.sigmoid(y)                       # SiLU

    ym = norm_act(xm_ref[0])                               # (TH*W, C)
    ya = norm_act(xa_ref[0])                               # (W, C) halo row above
    yb = norm_act(xb_ref[0])                               # (W, C) halo row below
    # Conv zero-padding at the image top/bottom: zero out the (clamped) halo rows there.
    ya = ya * jnp.where(t == 0, 0.0, 1.0)
    yb = yb * jnp.where(t == n_t - 1, 0.0, 1.0)

    yf = jnp.concatenate([ya, ym, yb], axis=0)             # ((TH+2)*W, C), flat row-major
    rows = (th + 2) * w
    col = jax.lax.broadcasted_iota(jnp.int32, (rows, c), 0) % w
    zero = jnp.zeros_like(yf)
    zrow = jnp.zeros((1, c), yf.dtype)
    # Column-shifted views with zero fill at the image's left/right border
    # (w-1 / w+1 taps), built from contiguous row shifts + masks -- no jnp.pad.
    left = jnp.concatenate([zrow, jnp.where(col == w - 1, zero, yf)[:-1, :]], axis=0)
    right = jnp.concatenate([jnp.where(col == 0, zero, yf)[1:, :], zrow], axis=0)
    taps = (left, yf, right)                               # dx = 0, 1, 2

    # Bias-initialized fp32 accumulator; 9 bf16 MXU matmuls over contiguous row bands.
    acc = jnp.broadcast_to(b_ref[...].astype(jnp.float32), (th * w, cout))
    for dy in range(3):
        lo = dy * w
        for dx in range(3):
            patch = taps[dx][lo:lo + th * w, :].astype(jnp.bfloat16)
            acc = acc + jnp.dot(patch, w_ref[dy, dx],
                                preferred_element_type=jnp.float32)

    if mode == 1:                                          # identity residual
        acc = acc + rx_ref[0].reshape(th * w, cout).astype(jnp.float32)
    elif mode == 2:                                        # fused 1x1 projection residual
        rx = rx_ref[0].reshape(th * w, rx_ref.shape[-1]).astype(jnp.bfloat16)
        acc = acc + jnp.dot(rx, rw_ref[...], preferred_element_type=jnp.float32)
        acc = acc + rb_ref[...].astype(jnp.float32)

    o_ref[0] = acc.reshape(th, w, cout).astype(o_ref.dtype)


# --------------------------- pallas_call wrappers ---------------------------

def _gn_stats(x, th):
    n, h, w, c = x.shape
    n_t = h // th
    return pl.pallas_call(
        _gn_stats_kernel,
        out_shape=jax.ShapeDtypeStruct((n, 2, c), jnp.float32),
        grid=(n, n_t),
        in_specs=[pl.BlockSpec((1, th, w, c), lambda i, j: (i, j, 0, 0))],
        out_specs=pl.BlockSpec((1, 2, c), lambda i, j: (i, 0, 0)),
        compiler_params=pltpu.CompilerParams(
            dimension_semantics=("parallel", "arbitrary"),
            vmem_limit_bytes=_VMEM_LIMIT),
    )(x)


def _group_affine(stats, gamma, beta, hw):
    """Tiny host-side reduction: per-(batch, group) stats -> per-channel scale/shift."""
    n, _, c = stats.shape
    cg = c // GROUPS
    cnt = float(hw * cg)
    s = stats[:, 0, :].reshape(n, GROUPS, cg).sum(-1)      # (N, G)
    ss = stats[:, 1, :].reshape(n, GROUPS, cg).sum(-1)
    mean = s / cnt
    var = ss / cnt - mean * mean                           # biased var (torch GN)
    inv = jax.lax.rsqrt(var + EPS)
    mean_c = jnp.repeat(mean, cg, axis=-1)                 # (N, C)
    inv_c = jnp.repeat(inv, cg, axis=-1)
    scale = gamma.reshape(1, c) * inv_c
    shift = beta.reshape(1, c) - mean_c * scale
    return jnp.stack([scale, shift], axis=1).astype(jnp.float32)   # (N, 2, C)


def _fused_gn_silu_conv(x, aff, w_hwio, b, th, mode, res_x=None, res_w=None, res_b=None):
    n, h, wd, c = x.shape
    cout = w_hwio.shape[-1]
    n_t = h // th

    def top_map(i, j):
        return (i, jnp.maximum(j * th - 1, 0), 0, 0)       # clamped; zeroed in-kernel at t==0

    def bot_map(i, j):
        return (i, jnp.minimum((j + 1) * th, h - 1), 0, 0)  # clamped; zeroed at t==n_t-1

    in_specs = [
        pl.BlockSpec((1, 2, c), lambda i, j: (i, 0, 0)),                  # GN affine
        pl.BlockSpec((1, 1, wd, c), top_map),                             # halo row above
        pl.BlockSpec((1, th, wd, c), lambda i, j: (i, j, 0, 0)),          # main row tile
        pl.BlockSpec((1, 1, wd, c), bot_map),                             # halo row below
        pl.BlockSpec((3, 3, c, cout), lambda i, j: (0, 0, 0, 0)),         # conv weight (bf16)
        pl.BlockSpec((1, cout), lambda i, j: (0, 0)),                     # conv bias
    ]
    args = [aff, x, x, x, w_hwio.astype(jnp.bfloat16), b]
    if mode >= 1:
        cres = res_x.shape[-1]
        in_specs.append(pl.BlockSpec((1, th, wd, cres), lambda i, j: (i, j, 0, 0)))
        args.append(res_x)
    if mode == 2:
        in_specs.append(pl.BlockSpec(res_w.shape, lambda i, j: (0, 0)))
        in_specs.append(pl.BlockSpec((1, cout), lambda i, j: (0, 0)))
        args.extend([res_w.astype(jnp.bfloat16), res_b])

    kern = functools.partial(_fused_gn_silu_conv_kernel,
                             th=th, w=wd, c=c, cout=cout, n_t=n_t, mode=mode)
    return pl.pallas_call(
        kern,
        out_shape=jax.ShapeDtypeStruct((n, h, wd, cout), x.dtype),
        grid=(n, n_t),
        in_specs=in_specs,
        out_specs=pl.BlockSpec((1, th, wd, cout), lambda i, j: (i, j, 0, 0)),
        compiler_params=pltpu.CompilerParams(
            dimension_semantics=("parallel", "parallel"),
            vmem_limit_bytes=_VMEM_LIMIT),
    )(*args)


# --------------------------- module forward --------------------------------

def _pick_row_tile(h, w):
    """Largest divisor of H whose flattened tile (TH*W rows) stays near the target."""
    target = max(1, _TARGET_FLAT_ROWS // max(w, 1))
    best = 1
    for cand in range(1, h + 1):
        if h % cand == 0 and cand <= target:
            best = cand
    return best


def vae_residual_block(x_nchw, params, row_tile=None):
    n, cin, h, w = x_nchw.shape
    cout = params["conv1_w"].shape[-1]
    assert cin % GROUPS == 0 and cout % GROUPS == 0, "GroupNorm(32) needs C % 32 == 0"
    th = row_tile if row_tile is not None else _pick_row_tile(h, w)
    assert h % th == 0, "row_tile must divide H"

    x = jnp.transpose(x_nchw, (0, 2, 3, 1))                 # NCHW -> NHWC

    # GN1 stats -> fused GN1+SiLU+conv1
    st1 = _gn_stats(x, th)
    aff1 = _group_affine(st1, params["gn1_g"], params["gn1_b"], h * w)
    h1 = _fused_gn_silu_conv(x, aff1, params["conv1_w"], params["conv1_b"], th, mode=0)

    # GN2 stats -> fused GN2+SiLU+conv2 (+residual, fused)
    st2 = _gn_stats(h1, th)
    aff2 = _group_affine(st2, params["gn2_g"], params["gn2_b"], h * w)

    if cin == cout:
        out = _fused_gn_silu_conv(h1, aff2, params["conv2_w"], params["conv2_b"], th,
                                  mode=1, res_x=x)
    else:
        out = _fused_gn_silu_conv(h1, aff2, params["conv2_w"], params["conv2_b"], th,
                                  mode=2, res_x=x,
                                  res_w=params["res_w"], res_b=params["res_b"])
    return jnp.transpose(out, (0, 3, 1, 2))                 # NHWC -> NCHW


# --------------------------- pure-JAX reference -----------------------------

def reference(x_nchw, params):
    def gn(x, g, b):
        n, c, hh, ww = x.shape
        xg = x.reshape(n, GROUPS, -1)
        mean = xg.mean(-1, keepdims=True)
        var = xg.var(-1, keepdims=True)
        xn = ((xg - mean) * jax.lax.rsqrt(var + EPS)).reshape(n, c, hh, ww)
        return xn * g.reshape(1, c, 1, 1) + b.reshape(1, c, 1, 1)

    def silu(v):
        return v * jax.nn.sigmoid(v)

    def conv(x, w_hwio, bias, pad):
        y = jax.lax.conv_general_dilated(
            x, w_hwio, window_strides=(1, 1), padding=[(pad, pad), (pad, pad)],
            dimension_numbers=("NCHW", "HWIO", "NCHW"))
        return y + bias.reshape(1, -1, 1, 1)

    h = silu(gn(x_nchw, params["gn1_g"][0], params["gn1_b"][0]))
    h = conv(h, params["conv1_w"], params["conv1_b"][0], 1)
    h = silu(gn(h, params["gn2_g"][0], params["gn2_b"][0]))
    h = conv(h, params["conv2_w"], params["conv2_b"][0], 1)
    if "res_w" in params:
        res = conv(x_nchw, params["res_w"][None, None], params["res_b"][0], 0)
    else:
        res = x_nchw
    return h + res


# --------------------------- main -------------------------------------------

if __name__ == "__main__":
    def make_params(key, cin, cout, project):
        ks = jax.random.split(key, 10)
        p = {
            "gn1_g": 1.0 + 0.1 * jax.random.normal(ks[0], (1, cin), jnp.float32),
            "gn1_b": 0.1 * jax.random.normal(ks[1], (1, cin), jnp.float32),
            "conv1_w": 0.05 * jax.random.normal(ks[2], (3, 3, cin, cout), jnp.float32),
            "conv1_b": 0.05 * jax.random.normal(ks[3], (1, cout), jnp.float32),
            "gn2_g": 1.0 + 0.1 * jax.random.normal(ks[4], (1, cout), jnp.float32),
            "gn2_b": 0.1 * jax.random.normal(ks[5], (1, cout), jnp.float32),
            "conv2_w": 0.05 * jax.random.normal(ks[6], (3, 3, cout, cout), jnp.float32),
            "conv2_b": 0.05 * jax.random.normal(ks[7], (1, cout), jnp.float32),
        }
        if project:
            p["res_w"] = 0.05 * jax.random.normal(ks[8], (cin, cout), jnp.float32)
            p["res_b"] = 0.05 * jax.random.normal(ks[9], (1, cout), jnp.float32)
        return p

    key = jax.random.PRNGKey(0)
    k1, k2, k3, k4 = jax.random.split(key, 4)

    # Case 1: channel change (fused 1x1-projection residual), 4 row tiles per image.
    n, cin, cout, hh, ww = 2, 32, 64, 16, 16
    params1 = make_params(k1, cin, cout, project=True)
    x1 = jax.random.normal(k2, (n, cin, hh, ww), jnp.float32)
    fwd_tiled = jax.jit(functools.partial(vae_residual_block, row_tile=4))
    out1 = jax.block_until_ready(fwd_tiled(x1, params1))
    ref1 = jax.block_until_ready(reference(x1, params1))
    assert out1.shape == (n, cout, hh, ww), out1.shape
    if not np.allclose(np.asarray(out1), np.asarray(ref1), rtol=2e-2, atol=2e-2):
        raise RuntimeError("Pallas kernel output does not match reference (projected residual)")

    # Case 2: identity residual, auto row tiling.
    params2 = make_params(k3, 64, 64, project=False)
    x2 = jax.random.normal(k4, (2, 64, 16, 16), jnp.float32)
    fwd_auto = jax.jit(vae_residual_block)
    out2 = jax.block_until_ready(fwd_auto(x2, params2))
    ref2 = jax.block_until_ready(reference(x2, params2))
    if not np.allclose(np.asarray(out2), np.asarray(ref2), rtol=2e-2, atol=2e-2):
        raise RuntimeError("Pallas kernel output does not match reference (identity residual)")

    print("KERNEL_OK")
</pallas_src>

<mosaic_0001>
module attributes {stable_mosaic.version = 11 : i64} {
  func.func @_gn_stats_kernel(%arg0: i32, %arg1: i32, %arg2: memref<1x4x16x32xf32, #tpu.memory_space<vmem>>, %arg3: memref<1x2x32xf32, #tpu.memory_space<vmem>>) attributes {dimension_semantics = [#tpu.dimension_semantics<parallel>, #tpu.dimension_semantics<arbitrary>], iteration_bounds = array<i64: 2, 4>, scalar_prefetch = 0 : i64, scratch_operands = 0 : i64, tpu.core_type = #tpu.core_type<tc>, window_params = [{transform_indices = @transform_0, window_bounds = array<i64: 1, 4, 16, 32>}, {transform_indices = @transform_1, window_bounds = array<i64: 1, 2, 32>}]} {
    %c0 = arith.constant 0 : index
    %c0_0 = arith.constant 0 : index
    %c0_1 = arith.constant 0 : index
    %c0_2 = arith.constant 0 : index
    %0 = vector.load %arg2[%c0, %c0_0, %c0_1, %c0_2] : memref<1x4x16x32xf32, #tpu.memory_space<vmem>>, vector<1x4x16x32xf32>
    %1 = vector.shape_cast %0 : vector<1x4x16x32xf32> to vector<4x16x32xf32>
    %2 = vector.shape_cast %1 : vector<4x16x32xf32> to vector<64x32xf32>
    %cst = arith.constant dense<0.000000e+00> : vector<32xf32>
    %3 = vector.multi_reduction <add>, %2, %cst [0] : vector<64x32xf32> to vector<32xf32>
    %4 = vector.shape_cast %3 : vector<32xf32> to vector<1x32xf32>
    %5 = arith.mulf %2, %2 : vector<64x32xf32>
    %cst_3 = arith.constant dense<0.000000e+00> : vector<32xf32>
    %6 = vector.multi_reduction <add>, %5, %cst_3 [0] : vector<64x32xf32> to vector<32xf32>
    %7 = vector.shape_cast %6 : vector<32xf32> to vector<1x32xf32>
    %8 = tpu.concatenate %4, %7 in 0 : vector<1x32xf32>, vector<1x32xf32> -> vector<2x32xf32>
    %c0_i32 = arith.constant 0 : i32
    %9 = arith.cmpi eq, %arg1, %c0_i32 : i32
    %10 = arith.extui %9 : i1 to i32
    %c0_i32_4 = arith.constant 0 : i32
    %11 = arith.cmpi ne, %10, %c0_i32_4 : i32
    scf.if %11 {
      %c0_7 = arith.constant 0 : index
      %c0_8 = arith.constant 0 : index
      %c0_9 = arith.constant 0 : index
      %15 = vector.load %arg3[%c0_7, %c0_8, %c0_9] : memref<1x2x32xf32, #tpu.memory_space<vmem>>, vector<1x2x32xf32>
      %16 = vector.shape_cast %15 : vector<1x2x32xf32> to vector<2x32xf32>
      %17 = vector.shape_cast %8 : vector<2x32xf32> to vector<1x2x32xf32>
      tpu.vector_store %arg3[%c0_7, %c0_8, %c0_9], %17 {strides = array<i32>} : memref<1x2x32xf32, #tpu.memory_space<vmem>>, vector<1x2x32xf32>,
    } else {
    }
    %c0_i32_5 = arith.constant 0 : i32
    %12 = arith.cmpi ne, %arg1, %c0_i32_5 : i32
    %13 = arith.extui %12 : i1 to i32
    %c0_i32_6 = arith.constant 0 : i32
    %14 = arith.cmpi ne, %13, %c0_i32_6 : i32
    scf.if %14 {
      %c0_7 = arith.constant 0 : index
      %c0_8 = arith.constant 0 : index
      %c0_9 = arith.constant 0 : index
      %15 = vector.load %arg3[%c0_7, %c0_8, %c0_9] : memref<1x2x32xf32, #tpu.memory_space<vmem>>, vector<1x2x32xf32>
      %16 = vector.shape_cast %15 : vector<1x2x32xf32> to vector<2x32xf32>
      %17 = arith.addf %16, %8 : vector<2x32xf32>
      %c0_10 = arith.constant 0 : index
      %c0_11 = arith.constant 0 : index
      %c0_12 = arith.constant 0 : index
      %18 = vector.load %arg3[%c0_10, %c0_11, %c0_12] : memref<1x2x32xf32, #tpu.memory_space<vmem>>, vector<1x2x32xf32>
      %19 = vector.shape_cast %18 : vector<1x2x32xf32> to vector<2x32xf32>
      %20 = vector.shape_cast %17 : vector<2x32xf32> to vector<1x2x32xf32>
      tpu.vector_store %arg3[%c0_10, %c0_11, %c0_12], %20 {strides = array<i32>} : memref<1x2x32xf32, #tpu.memory_space<vmem>>, vector<1x2x32xf32>,
    } else {
    }
    return
  }
  func.func @transform_0(%arg0: i32, %arg1: i32) -> (i32, i32, i32, i32) {
    %c0_i32 = arith.constant 0 : i32
    %c0_i32_0 = arith.constant 0 : i32
    %c0_i32_1 = arith.constant 0 : i32
    return %arg0, %arg1, %c0_i32, %c0_i32_0 : i32, i32, i32, i32
  }
  func.func @transform_1(%arg0: i32, %arg1: i32) -> (i32, i32, i32) {
    %c0_i32 = arith.constant 0 : i32
    %c0_i32_0 = arith.constant 0 : i32
    %c0_i32_1 = arith.constant 0 : i32
    return %arg0, %c0_i32, %c0_i32_0 : i32, i32, i32
  }
}

module attributes {stable_mosaic.version = 11 : i64} {
  func.func @_gn_stats_kernel(%arg0: i32, %arg1: i32, %arg2: memref<1x4x16x64xf32, #tpu.memory_space<vmem>>, %arg3: memref<1x2x64xf32, #tpu.memory_space<vmem>>) attributes {dimension_semantics = [#tpu.dimension_semantics<parallel>, #tpu.dimension_semantics<arbitrary>], iteration_bounds = array<i64: 2, 4>, scalar_prefetch = 0 : i64, scratch_operands = 0 : i64, tpu.core_type = #tpu.core_type<tc>, window_params = [{transform_indices = @transform_0, window_bounds = array<i64: 1, 4, 16, 64>}, {transform_indices = @transform_1, window_bounds = array<i64: 1, 2, 64>}]} {
    %c0 = arith.constant 0 : index
    %c0_0 = arith.constant 0 : index
    %c0_1 = arith.constant 0 : index
    %c0_2 = arith.constant 0 : index
    %0 = vector.load %arg2[%c0, %c0_0, %c0_1, %c0_2] : memref<1x4x16x64xf32, #tpu.memory_space<vmem>>, vector<1x4x16x64xf32>
    %1 = vector.shape_cast %0 : vector<1x4x16x64xf32> to vector<4x16x64xf32>
    %2 = vector.shape_cast %1 : vector<4x16x64xf32> to vector<64x64xf32>
    %cst = arith.constant dense<0.000000e+00> : vector<64xf32>
    %3 = vector.multi_reduction <add>, %2, %cst [0] : vector<64x64xf32> to vector<64xf32>
    %4 = vector.shape_cast %3 : vector<64xf32> to vector<1x64xf32>
    %5 = arith.mulf %2, %2 : vector<64x64xf32>
    %cst_3 = arith.constant dense<0.000000e+00> : vector<64xf32>
    %6 = vector.multi_reduction <add>, %5, %cst_3 [0] : vector<64x64xf32> to vector<64xf32>
    %7 = vector.shape_cast %6 : vector<64xf32> to vector<1x64xf32>
    %8 = tpu.concatenate %4, %7 in 0 : vector<1x64xf32>, vector<1x64xf32> -> vector<2x64xf32>
    %c0_i32 = arith.constant 0 : i32
    %9 = arith.cmpi eq, %arg1, %c0_i32 : i32
    %10 = arith.extui %9 : i1 to i32
    %c0_i32_4 = arith.constant 0 : i32
    %11 = arith.cmpi ne, %10, %c0_i32_4 : i32
    scf.if %11 {
      %c0_7 = arith.constant 0 : index
      %c0_8 = arith.constant 0 : index
      %c0_9 = arith.constant 0 : index
      %15 = vector.load %arg3[%c0_7, %c0_8, %c0_9] : memref<1x2x64xf32, #tpu.memory_space<vmem>>, vector<1x2x64xf32>
      %16 = vector.shape_cast %15 : vector<1x2x64xf32> to vector<2x64xf32>
      %17 = vector.shape_cast %8 : vector<2x64xf32> to vector<1x2x64xf32>
      tpu.vector_store %arg3[%c0_7, %c0_8, %c0_9], %17 {strides = array<i32>} : memref<1x2x64xf32, #tpu.memory_space<vmem>>, vector<1x2x64xf32>,
    } else {
    }
    %c0_i32_5 = arith.constant 0 : i32
    %12 = arith.cmpi ne, %arg1, %c0_i32_5 : i32
    %13 = arith.extui %12 : i1 to i32
    %c0_i32_6 = arith.constant 0 : i32
    %14 = arith.cmpi ne, %13, %c0_i32_6 : i32
    scf.if %14 {
      %c0_7 = arith.constant 0 : index
      %c0_8 = arith.constant 0 : index
      %c0_9 = arith.constant 0 : index
      %15 = vector.load %arg3[%c0_7, %c0_8, %c0_9] : memref<1x2x64xf32, #tpu.memory_space<vmem>>, vector<1x2x64xf32>
      %16 = vector.shape_cast %15 : vector<1x2x64xf32> to vector<2x64xf32>
      %17 = arith.addf %16, %8 : vector<2x64xf32>
      %c0_10 = arith.constant 0 : index
      %c0_11 = arith.constant 0 : index
      %c0_12 = arith.constant 0 : index
      %18 = vector.load %arg3[%c0_10, %c0_11, %c0_12] : memref<1x2x64xf32, #tpu.memory_space<vmem>>, vector<1x2x64xf32>
      %19 = vector.shape_cast %18 : vector<1x2x64xf32> to vector<2x64xf32>
      %20 = vector.shape_cast %17 : vector<2x64xf32> to vector<1x2x64xf32>
      tpu.vector_store %arg3[%c0_10, %c0_11, %c0_12], %20 {strides = array<i32>} : memref<1x2x64xf32, #tpu.memory_space<vmem>>, vector<1x2x64xf32>,
    } else {
    }
    return
  }
  func.func @transform_0(%arg0: i32, %arg1: i32) -> (i32, i32, i32, i32) {
    %c0_i32 = arith.constant 0 : i32
    %c0_i32_0 = arith.constant 0 : i32
    %c0_i32_1 = arith.constant 0 : i32
    return %arg0, %arg1, %c0_i32, %c0_i32_0 : i32, i32, i32, i32
  }
  func.func @transform_1(%arg0: i32, %arg1: i32) -> (i32, i32, i32) {
    %c0_i32 = arith.constant 0 : i32
    %c0_i32_0 = arith.constant 0 : i32
    %c0_i32_1 = arith.constant 0 : i32
    return %arg0, %c0_i32, %c0_i32_0 : i32, i32, i32
  }
}

module attributes {stable_mosaic.version = 11 : i64} {
  func.func @_fused_gn_silu_conv_kernel(%arg0: i32, %arg1: i32, %arg2: memref<1x2x32xf32, #tpu.memory_space<vmem>>, %arg3: memref<1x1x16x32xf32, #tpu.memory_space<vmem>>, %arg4: memref<1x4x16x32xf32, #tpu.memory_space<vmem>>, %arg5: memref<1x1x16x32xf32, #tpu.memory_space<vmem>>, %arg6: memref<3x3x32x64xbf16, #tpu.memory_space<vmem>>, %arg7: memref<1x64xf32, #tpu.memory_space<vmem>>, %arg8: memref<1x4x16x64xf32, #tpu.memory_space<vmem>>) attributes {dimension_semantics = [#tpu.dimension_semantics<parallel>, #tpu.dimension_semantics<parallel>], iteration_bounds = array<i64: 2, 4>, scalar_prefetch = 0 : i64, scratch_operands = 0 : i64, tpu.core_type = #tpu.core_type<tc>, window_params = [{transform_indices = @transform_0, window_bounds = array<i64: 1, 2, 32>}, {transform_indices = @transform_1, window_bounds = array<i64: 1, 1, 16, 32>}, {transform_indices = @transform_2, window_bounds = array<i64: 1, 4, 16, 32>}, {transform_indices = @transform_3, window_bounds = array<i64: 1, 1, 16, 32>}, {pipeline_mode = #tpu.pipeline_mode<synchronous>, transform_indices = @transform_4, window_bounds = array<i64: 3, 3, 32, 64>}, {pipeline_mode = #tpu.pipeline_mode<synchronous>, transform_indices = @transform_5, window_bounds = array<i64: 1, 64>}, {transform_indices = @transform_6, window_bounds = array<i64: 1, 4, 16, 64>}]} {
    %c0 = arith.constant 0 : index
    %c0_0 = arith.constant 0 : index
    %c0_1 = arith.constant 0 : index
    %0 = vector.load %arg2[%c0, %c0_0, %c0_1] : memref<1x2x32xf32, #tpu.memory_space<vmem>>, vector<1x2x32xf32>
    %1 = vector.shape_cast %0 : vector<1x2x32xf32> to vector<2x32xf32>
    %2 = vector.extract_strided_slice %1 {offsets = [0, 0], sizes = [1, 32], strides = [1, 1]} : vector<2x32xf32> to vector<1x32xf32>
    %3 = vector.extract_strided_slice %1 {offsets = [1, 0], sizes = [1, 32], strides = [1, 1]} : vector<2x32xf32> to vector<1x32xf32>
    %c0_2 = arith.constant 0 : index
    %c0_3 = arith.constant 0 : index
    %c0_4 = arith.constant 0 : index
    %c0_5 = arith.constant 0 : index
    %4 = vector.load %arg4[%c0_2, %c0_3, %c0_4, %c0_5] : memref<1x4x16x32xf32, #tpu.memory_space<vmem>>, vector<1x4x16x32xf32>
    %5 = vector.shape_cast %4 : vector<1x4x16x32xf32> to vector<4x16x32xf32>
    %6 = vector.shape_cast %5 : vector<4x16x32xf32> to vector<64x32xf32>
    %7 = vector.broadcast %2 : vector<1x32xf32> to vector<64x32xf32>
    %8 = arith.mulf %6, %7 : vector<64x32xf32>
    %9 = vector.broadcast %3 : vector<1x32xf32> to vector<64x32xf32>
    %10 = arith.addf %8, %9 : vector<64x32xf32>
    %11 = arith.negf %10 : vector<64x32xf32>
    %12 = math.exp %11 : vector<64x32xf32>
    %cst = arith.constant 1.000000e+00 : f32
    %13 = vector.broadcast %cst : f32 to vector<64x32xf32>
    %14 = arith.addf %13, %12 : vector<64x32xf32>
    %15 = arith.divf %13, %14 : vector<64x32xf32>
    %16 = arith.mulf %10, %15 : vector<64x32xf32>
    %c0_6 = arith.constant 0 : index
    %c0_7 = arith.constant 0 : index
    %c0_8 = arith.constant 0 : index
    %c0_9 = arith.constant 0 : index
    %17 = vector.load %arg3[%c0_6, %c0_7, %c0_8, %c0_9] : memref<1x1x16x32xf32, #tpu.memory_space<vmem>>, vector<1x1x16x32xf32>
    %18 = vector.shape_cast %17 : vector<1x1x16x32xf32> to vector<1x16x32xf32>
    %19 = vector.shape_cast %18 : vector<1x16x32xf32> to vector<16x32xf32>
    %20 = vector.broadcast %2 : vector<1x32xf32> to vector<16x32xf32>
    %21 = arith.mulf %19, %20 : vector<16x32xf32>
    %22 = vector.broadcast %3 : vector<1x32xf32> to vector<16x32xf32>
    %23 = arith.addf %21, %22 : vector<16x32xf32>
    %24 = arith.negf %23 : vector<16x32xf32>
    %25 = math.exp %24 : vector<16x32xf32>
    %cst_10 = arith.constant 1.000000e+00 : f32
    %26 = vector.broadcast %cst_10 : f32 to vector<16x32xf32>
    %27 = arith.addf %26, %25 : vector<16x32xf32>
    %28 = arith.divf %26, %27 : vector<16x32xf32>
    %29 = arith.mulf %23, %28 : vector<16x32xf32>
    %c0_11 = arith.constant 0 : index
    %c0_12 = arith.constant 0 : index
    %c0_13 = arith.constant 0 : index
    %c0_14 = arith.constant 0 : index
    %30 = vector.load %arg5[%c0_11, %c0_12, %c0_13, %c0_14] : memref<1x1x16x32xf32, #tpu.memory_space<vmem>>, vector<1x1x16x32xf32>
    %31 = vector.shape_cast %30 : vector<1x1x16x32xf32> to vector<1x16x32xf32>
    %32 = vector.shape_cast %31 : vector<1x16x32xf32> to vector<16x32xf32>
    %33 = vector.broadcast %2 : vector<1x32xf32> to vector<16x32xf32>
    %34 = arith.mulf %32, %33 : vector<16x32xf32>
    %35 = vector.broadcast %3 : vector<1x32xf32> to vector<16x32xf32>
    %36 = arith.addf %34, %35 : vector<16x32xf32>
    %37 = arith.negf %36 : vector<16x32xf32>
    %38 = math.exp %37 : vector<16x32xf32>
    %cst_15 = arith.constant 1.000000e+00 : f32
    %39 = vector.broadcast %cst_15 : f32 to vector<16x32xf32>
    %40 = arith.addf %39, %38 : vector<16x32xf32>
    %41 = arith.divf %39, %40 : vector<16x32xf32>
    %42 = arith.mulf %36, %41 : vector<16x32xf32>
    %c0_i32 = arith.constant 0 : i32
    %43 = arith.cmpi eq, %arg1, %c0_i32 : i32
    %cst_16 = arith.constant 0.000000e+00 : f32
    %cst_17 = arith.constant 1.000000e+00 : f32
    %44 = arith.select %43, %cst_16, %cst_17 : f32
    %45 = vector.broadcast %44 : f32 to vector<16x32xf32>
    %46 = arith.mulf %29, %45 : vector<16x32xf32>
    %c3_i32 = arith.constant 3 : i32
    %47 = arith.cmpi eq, %arg1, %c3_i32 : i32
    %cst_18 = arith.constant 0.000000e+00 : f32
    %cst_19 = arith.constant 1.000000e+00 : f32
    %48 = arith.select %47, %cst_18, %cst_19 : f32
    %49 = vector.broadcast %48 : f32 to vector<16x32xf32>
    %50 = arith.mulf %42, %49 : vector<16x32xf32>
    %51 = tpu.concatenate %46, %16, %50 in 0 : vector<16x32xf32>, vector<64x32xf32>, vector<16x32xf32> -> vector<96x32xf32>
    %52 = tpu.iota {dimensions = array<i32: 0>} : vector<96x32xi32>
    %c16_i32 = arith.constant 16 : i32
    %c0_i32_20 = arith.constant 0 : i32
    %53 = arith.cmpi eq, %c16_i32, %c0_i32_20 : i32
    %c1_i32 = arith.constant 1 : i32
    %54 = arith.select %53, %c1_i32, %c16_i32 : i32
    %55 = vector.broadcast %54 : i32 to vector<96x32xi32>
    %56 = arith.remsi %52, %55 : vector<96x32xi32>
    %c0_i32_21 = arith.constant 0 : i32
    %57 = vector.broadcast %c0_i32_21 : i32 to vector<96x32xi32>
    %58 = arith.cmpi ne, %56, %57 : vector<96x32xi32>
    %c0_i32_22 = arith.constant 0 : i32
    %59 = vector.broadcast %c0_i32_22 : i32 to vector<96x32xi32>
    %60 = arith.cmpi slt, %56, %59 : vector<96x32xi32>
    %c0_i32_23 = arith.constant 0 : i32
    %61 = arith.cmpi slt, %54, %c0_i32_23 : i32
    %62 = vector.broadcast %61 : i1 to vector<96x32xi1>
    %63 = vector.broadcast %62 : vector<96x32xi1> to vector<96x32xi1>
    %64 = arith.xori %60, %63 : vector<96x32xi1>
    %65 = arith.andi %64, %58 : vector<96x32xi1>
    %66 = vector.broadcast %54 : i32 to vector<96x32xi32>
    %67 = arith.addi %56, %66 : vector<96x32xi32>
    %68 = arith.select %65, %67, %56 : vector<96x32xi1>, vector<96x32xi32>
    %cst_24 = arith.constant 0.000000e+00 : f32
    %69 = vector.broadcast %cst_24 : f32 to vector<96x32xf32>
    %cst_25 = arith.constant 0.000000e+00 : f32
    %70 = vector.broadcast %cst_25 : f32 to vector<1x32xf32>
    %c15_i32 = arith.constant 15 : i32
    %71 = vector.broadcast %c15_i32 : i32 to vector<96x32xi32>
    %72 = arith.cmpi eq, %68, %71 : vector<96x32xi32>
    %73 = arith.select %72, %69, %51 : vector<96x32xi1>, vector<96x32xf32>
    %74 = vector.extract_strided_slice %73 {offsets = [0, 0], sizes = [95, 32], strides = [1, 1]} : vector<96x32xf32> to vector<95x32xf32>
    %75 = tpu.concatenate %70, %74 in 0 : vector<1x32xf32>, vector<95x32xf32> -> vector<96x32xf32>
    %c0_i32_26 = arith.constant 0 : i32
    %76 = vector.broadcast %c0_i32_26 : i32 to vector<96x32xi32>
    %77 = arith.cmpi eq, %68, %76 : vector<96x32xi32>
    %78 = arith.select %77, %69, %51 : vector<96x32xi1>, vector<96x32xf32>
    %79 = vector.extract_strided_slice %78 {offsets = [1, 0], sizes = [95, 32], strides = [1, 1]} : vector<96x32xf32> to vector<95x32xf32>
    %80 = tpu.concatenate %79, %70 in 0 : vector<95x32xf32>, vector<1x32xf32> -> vector<96x32xf32>
    %c0_27 = arith.constant 0 : index
    %c0_28 = arith.constant 0 : index
    %81 = vector.load %arg7[%c0_27, %c0_28] : memref<1x64xf32, #tpu.memory_space<vmem>>, vector<1x64xf32>
    %82 = vector.shape_cast %81 : vector<1x64xf32> to vector<1x64xf32>
    %83 = vector.broadcast %82 : vector<1x64xf32> to vector<64x64xf32>
    %84 = vector.extract_strided_slice %75 {offsets = [0, 0], sizes = [64, 32], strides = [1, 1]} : vector<96x32xf32> to vector<64x32xf32>
    %85 = arith.truncf %84 : vector<64x32xf32> to vector<64x32xbf16>
    %c0_29 = arith.constant 0 : index
    %c0_30 = arith.constant 0 : index
    %c0_31 = arith.constant 0 : index
    %c0_32 = arith.constant 0 : index
    %86 = vector.load %arg6[%c0_29, %c0_30, %c0_31, %c0_32] : memref<3x3x32x64xbf16, #tpu.memory_space<vmem>>, vector<1x1x32x64xbf16>
    %87 = vector.shape_cast %86 : vector<1x1x32x64xbf16> to vector<32x64xbf16>
    %cst_33 = arith.constant dense<0.000000e+00> : vector<64x64xf32>
    %88 = tpu.matmul %85, %87, %cst_33 {dimension_numbers = #tpu.dot_dimension_numbers<[1], [0], [0], [1], [0, 0, 1, 1], [], []>} : vector<64x32xbf16>, vector<32x64xbf16>, vector<64x64xf32> -> vector<64x64xf32>
    %89 = arith.addf %83, %88 : vector<64x64xf32>
    %90 = vector.extract_strided_slice %51 {offsets = [0, 0], sizes = [64, 32], strides = [1, 1]} : vector<96x32xf32> to vector<64x32xf32>
    %91 = arith.truncf %90 : vector<64x32xf32> to vector<64x32xbf16>
    %c0_34 = arith.constant 0 : index
    %c1 = arith.constant 1 : index
    %c0_35 = arith.constant 0 : index
    %c0_36 = arith.constant 0 : index
    %92 = vector.load %arg6[%c0_34, %c1, %c0_35, %c0_36] : memref<3x3x32x64xbf16, #tpu.memory_space<vmem>>, vector<1x1x32x64xbf16>
    %93 = vector.shape_cast %92 : vector<1x1x32x64xbf16> to vector<32x64xbf16>
    %cst_37 = arith.constant dense<0.000000e+00> : vector<64x64xf32>
    %94 = tpu.matmul %91, %93, %cst_37 {dimension_numbers = #tpu.dot_dimension_numbers<[1], [0], [0], [1], [0, 0, 1, 1], [], []>} : vector<64x32xbf16>, vector<32x64xbf16>, vector<64x64xf32> -> vector<64x64xf32>
    %95 = arith.addf %89, %94 : vector<64x64xf32>
    %96 = vector.extract_strided_slice %80 {offsets = [0, 0], sizes = [64, 32], strides = [1, 1]} : vector<96x32xf32> to vector<64x32xf32>
    %97 = arith.truncf %96 : vector<64x32xf32> to vector<64x32xbf16>
    %c0_38 = arith.constant 0 : index
    %c2 = arith.constant 2 : index
    %c0_39 = arith.constant 0 : index
    %c0_40 = arith.constant 0 : index
    %98 = vector.load %arg6[%c0_38, %c2, %c0_39, %c0_40] : memref<3x3x32x64xbf16, #tpu.memory_space<vmem>>, vector<1x1x32x64xbf16>
    %99 = vector.shape_cast %98 : vector<1x1x32x64xbf16> to vector<32x64xbf16>
    %cst_41 = arith.constant dense<0.000000e+00> : vector<64x64xf32>
    %100 = tpu.matmul %97, %99, %cst_41 {dimension_numbers = #tpu.dot_dimension_numbers<[1], [0], [0], [1], [0, 0, 1, 1], [], []>} : vector<64x32xbf16>, vector<32x64xbf16>, vector<64x64xf32> -> vector<64x64xf32>
    %101 = arith.addf %95, %100 : vector<64x64xf32>
    %102 = vector.extract_strided_slice %75 {offsets = [16, 0], sizes = [64, 32], strides = [1, 1]} : vector<96x32xf32> to vector<64x32xf32>
    %103 = arith.truncf %102 : vector<64x32xf32> to vector<64x32xbf16>
    %c1_42 = arith.constant 1 : index
    %c0_43 = arith.constant 0 : index
    %c0_44 = arith.constant 0 : index
    %c0_45 = arith.constant 0 : index
    %104 = vector.load %arg6[%c1_42, %c0_43, %c0_44, %c0_45] : memref<3x3x32x64xbf16, #tpu.memory_space<vmem>>, vector<1x1x32x64xbf16>
    %105 = vector.shape_cast %104 : vector<1x1x32x64xbf16> to vector<32x64xbf16>
    %cst_46 = arith.constant dense<0.000000e+00> : vector<64x64xf32>
    %106 = tpu.matmul %103, %105, %cst_46 {dimension_numbers = #tpu.dot_dimension_numbers<[1], [0], [0], [1], [0, 0, 1, 1], [], []>} : vector<64x32xbf16>, vector<32x64xbf16>, vector<64x64xf32> -> vector<64x64xf32>
    %107 = arith.addf %101, %106 : vector<64x64xf32>
    %108 = vector.extract_strided_slice %51 {offsets = [16, 0], sizes = [64, 32], strides = [1, 1]} : vector<96x32xf32> to vector<64x32xf32>
    %109 = arith.truncf %108 : vector<64x32xf32> to vector<64x32xbf16>
    %c1_47 = arith.constant 1 : index
    %c1_48 = arith.constant 1 : index
    %c0_49 = arith.constant 0 : index
    %c0_50 = arith.constant 0 : index
    %110 = vector.load %arg6[%c1_47, %c1_48, %c0_49, %c0_50] : memref<3x3x32x64xbf16, #tpu.memory_space<vmem>>, vector<1x1x32x64xbf16>
    %111 = vector.shape_cast %110 : vector<1x1x32x64xbf16> to vector<32x64xbf16>
    %cst_51 = arith.constant dense<0.000000e+00> : vector<64x64xf32>
    %112 = tpu.matmul %109, %111, %cst_51 {dimension_numbers = #tpu.dot_dimension_numbers<[1], [0], [0], [1], [0, 0, 1, 1], [], []>} : vector<64x32xbf16>, vector<32x64xbf16>, vector<64x64xf32> -> vector<64x64xf32>
    %113 = arith.addf %107, %112 : vector<64x64xf32>
    %114 = vector.extract_strided_slice %80 {offsets = [16, 0], sizes = [64, 32], strides = [1, 1]} : vector<96x32xf32> to vector<64x32xf32>
    %115 = arith.truncf %114 : vector<64x32xf32> to vector<64x32xbf16>
    %c1_52 = arith.constant 1 : index
    %c2_53 = arith.constant 2 : index
    %c0_54 = arith.constant 0 : index
    %c0_55 = arith.constant 0 : index
    %116 = vector.load %arg6[%c1_52, %c2_53, %c0_54, %c0_55] : memref<3x3x32x64xbf16, #tpu.memory_space<vmem>>, vector<1x1x32x64xbf16>
    %117 = vector.shape_cast %116 : vector<1x1x32x64xbf16> to vector<32x64xbf16>
    %cst_56 = arith.constant dense<0.000000e+00> : vector<64x64xf32>
    %118 = tpu.matmul %115, %117, %cst_56 {dimension_numbers = #tpu.dot_dimension_numbers<[1], [0], [0], [1], [0, 0, 1, 1], [], []>} : vector<64x32xbf16>, vector<32x64xbf16>, vector<64x64xf32> -> vector<64x64xf32>
    %119 = arith.addf %113, %118 : vector<64x64xf32>
    %120 = vector.extract_strided_slice %75 {offsets = [32, 0], sizes = [64, 32], strides = [1, 1]} : vector<96x32xf32> to vector<64x32xf32>
    %121 = arith.truncf %120 : vector<64x32xf32> to vector<64x32xbf16>
    %c2_57 = arith.constant 2 : index
    %c0_58 = arith.constant 0 : index
    %c0_59 = arith.constant 0 : index
    %c0_60 = arith.constant 0 : index
    %122 = vector.load %arg6[%c2_57, %c0_58, %c0_59, %c0_60] : memref<3x3x32x64xbf16, #tpu.memory_space<vmem>>, vector<1x1x32x64xbf16>
    %123 = vector.shape_cast %122 : vector<1x1x32x64xbf16> to vector<32x64xbf16>
    %cst_61 = arith.constant dense<0.000000e+00> : vector<64x64xf32>
    %124 = tpu.matmul %121, %123, %cst_61 {dimension_numbers = #tpu.dot_dimension_numbers<[1], [0], [0], [1], [0, 0, 1, 1], [], []>} : vector<64x32xbf16>, vector<32x64xbf16>, vector<64x64xf32> -> vector<64x64xf32>
    %125 = arith.addf %119, %124 : vector<64x64xf32>
    %126 = vector.extract_strided_slice %51 {offsets = [32, 0], sizes = [64, 32], strides = [1, 1]} : vector<96x32xf32> to vector<64x32xf32>
    %127 = arith.truncf %126 : vector<64x32xf32> to vector<64x32xbf16>
    %c2_62 = arith.constant 2 : index
    %c1_63 = arith.constant 1 : index
    %c0_64 = arith.constant 0 : index
    %c0_65 = arith.constant 0 : index
    %128 = vector.load %arg6[%c2_62, %c1_63, %c0_64, %c0_65] : memref<3x3x32x64xbf16, #tpu.memory_space<vmem>>, vector<1x1x32x64xbf16>
    %129 = vector.shape_cast %128 : vector<1x1x32x64xbf16> to vector<32x64xbf16>
    %cst_66 = arith.constant dense<0.000000e+00> : vector<64x64xf32>
    %130 = tpu.matmul %127, %129, %cst_66 {dimension_numbers = #tpu.dot_dimension_numbers<[1], [0], [0], [1], [0, 0, 1, 1], [], []>} : vector<64x32xbf16>, vector<32x64xbf16>, vector<64x64xf32> -> vector<64x64xf32>
    %131 = arith.addf %125, %130 : vector<64x64xf32>
    %132 = vector.extract_strided_slice %80 {offsets = [32, 0], sizes = [64, 32], strides = [1, 1]} : vector<96x32xf32> to vector<64x32xf32>
    %133 = arith.truncf %132 : vector<64x32xf32> to vector<64x32xbf16>
    %c2_67 = arith.constant 2 : index
    %c2_68 = arith.constant 2 : index
    %c0_69 = arith.constant 0 : index
    %c0_70 = arith.constant 0 : index
    %134 = vector.load %arg6[%c2_67, %c2_68, %c0_69, %c0_70] : memref<3x3x32x64xbf16, #tpu.memory_space<vmem>>, vector<1x1x32x64xbf16>
    %135 = vector.shape_cast %134 : vector<1x1x32x64xbf16> to vector<32x64xbf16>
    %cst_71 = arith.constant dense<0.000000e+00> : vector<64x64xf32>
    %136 = tpu.matmul %133, %135, %cst_71 {dimension_numbers = #tpu.dot_dimension_numbers<[1], [0], [0], [1], [0, 0, 1, 1], [], []>} : vector<64x32xbf16>, vector<32x64xbf16>, vector<64x64xf32> -> vector<64x64xf32>
    %137 = arith.addf %131, %136 : vector<64x64xf32>
    %138 = vector.shape_cast %137 : vector<64x64xf32> to vector<4x16x64xf32>
    %c0_72 = arith.constant 0 : index
    %c0_73 = arith.constant 0 : index
    %c0_74 = arith.constant 0 : index
    %c0_75 = arith.constant 0 : index
    %139 = vector.load %arg8[%c0_72, %c0_73, %c0_74, %c0_75] : memref<1x4x16x64xf32, #tpu.memory_space<vmem>>, vector<1x4x16x64xf32>
    %140 = vector.shape_cast %139 : vector<1x4x16x64xf32> to vector<4x16x64xf32>
    %141 = vector.shape_cast %138 : vector<4x16x64xf32> to vector<1x4x16x64xf32>
    tpu.vector_store %arg8[%c0_72, %c0_73, %c0_74, %c0_75], %141 {strides = array<i32>} : memref<1x4x16x64xf32, #tpu.memory_space<vmem>>, vector<1x4x16x64xf32>,
    return
  }
  func.func @transform_0(%arg0: i32, %arg1: i32) -> (i32, i32, i32) {
    %c0_i32 = arith.constant 0 : i32
    %c0_i32_0 = arith.constant 0 : i32
    %c0_i32_1 = arith.constant 0 : i32
    return %arg0, %c0_i32, %c0_i32_0 : i32, i32, i32
  }
  func.func @transform_1(%arg0: i32, %arg1: i32) -> (i32, i32, i32, i32) {
    %c4_i32 = arith.constant 4 : i32
    %0 = arith.muli %arg1, %c4_i32 : i32
    %c1_i32 = arith.constant 1 : i32
    %1 = arith.subi %0, %c1_i32 : i32
    %c0_i32 = arith.constant 0 : i32
    %2 = arith.maxsi %1, %c0_i32 : i32
    %c0_i32_0 = arith.constant 0 : i32
    %c0_i32_1 = arith.constant 0 : i32
    %c0_i32_2 = arith.constant 0 : i32
    return %arg0, %2, %c0_i32_0, %c0_i32_1 : i32, i32, i32, i32
  }
  func.func @transform_2(%arg0: i32, %arg1: i32) -> (i32, i32, i32, i32) {
    %c0_i32 = arith.constant 0 : i32
    %c0_i32_0 = arith.constant 0 : i32
    %c0_i32_1 = arith.constant 0 : i32
    return %arg0, %arg1, %c0_i32, %c0_i32_0 : i32, i32, i32, i32
  }
  func.func @transform_3(%arg0: i32, %arg1: i32) -> (i32, i32, i32, i32) {
    %c1_i32 = arith.constant 1 : i32
    %0 = arith.addi %arg1, %c1_i32 : i32
    %c4_i32 = arith.constant 4 : i32
    %1 = arith.muli %0, %c4_i32 : i32
    %c15_i32 = arith.constant 15 : i32
    %2 = arith.minsi %1, %c15_i32 : i32
    %c0_i32 = arith.constant 0 : i32
    %c0_i32_0 = arith.constant 0 : i32
    %c0_i32_1 = arith.constant 0 : i32
    return %arg0, %2, %c0_i32, %c0_i32_0 : i32, i32, i32, i32
  }
  func.func @transform_4(%arg0: i32, %arg1: i32) -> (i32, i32, i32, i32) {
    %c0_i32 = arith.constant 0 : i32
    %c0_i32_0 = arith.constant 0 : i32
    %c0_i32_1 = arith.constant 0 : i32
    %c0_i32_2 = arith.constant 0 : i32
    %c0_i32_3 = arith.constant 0 : i32
    return %c0_i32, %c0_i32_0, %c0_i32_1, %c0_i32_2 : i32, i32, i32, i32
  }
  func.func @transform_5(%arg0: i32, %arg1: i32) -> (i32, i32) {
    %c0_i32 = arith.constant 0 : i32
    %c0_i32_0 = arith.constant 0 : i32
    %c0_i32_1 = arith.constant 0 : i32
    return %c0_i32, %c0_i32_0 : i32, i32
  }
  func.func @transform_6(%arg0: i32, %arg1: i32) -> (i32, i32, i32, i32) {
    %c0_i32 = arith.constant 0 : i32
    %c0_i32_0 = arith.constant 0 : i32
    %c0_i32_1 = arith.constant 0 : i32
    return %arg0, %arg1, %c0_i32, %c0_i32_0 : i32, i32, i32, i32
  }
}

module attributes {stable_mosaic.version = 11 : i64} {
  func.func @_fused_gn_silu_conv_kernel(%arg0: i32, %arg1: i32, %arg2: memref<1x2x64xf32, #tpu.memory_space<vmem>>, %arg3: memref<1x1x16x64xf32, #tpu.memory_space<vmem>>, %arg4: memref<1x4x16x64xf32, #tpu.memory_space<vmem>>, %arg5: memref<1x1x16x64xf32, #tpu.memory_space<vmem>>, %arg6: memref<3x3x64x64xbf16, #tpu.memory_space<vmem>>, %arg7: memref<1x64xf32, #tpu.memory_space<vmem>>, %arg8: memref<1x4x16x32xf32, #tpu.memory_space<vmem>>, %arg9: memref<32x64xbf16, #tpu.memory_space<vmem>>, %arg10: memref<1x64xf32, #tpu.memory_space<vmem>>, %arg11: memref<1x4x16x64xf32, #tpu.memory_space<vmem>>) attributes {dimension_semantics = [#tpu.dimension_semantics<parallel>, #tpu.dimension_semantics<parallel>], iteration_bounds = array<i64: 2, 4>, scalar_prefetch = 0 : i64, scratch_operands = 0 : i64, tpu.core_type = #tpu.core_type<tc>, window_params = [{transform_indices = @transform_0, window_bounds = array<i64: 1, 2, 64>}, {transform_indices = @transform_1, window_bounds = array<i64: 1, 1, 16, 64>}, {transform_indices = @transform_2, window_bounds = array<i64: 1, 4, 16, 64>}, {transform_indices = @transform_3, window_bounds = array<i64: 1, 1, 16, 64>}, {pipeline_mode = #tpu.pipeline_mode<synchronous>, transform_indices = @transform_4, window_bounds = array<i64: 3, 3, 64, 64>}, {pipeline_mode = #tpu.pipeline_mode<synchronous>, transform_indices = @transform_5, window_bounds = array<i64: 1, 64>}, {transform_indices = @transform_6, window_bounds = array<i64: 1, 4, 16, 32>}, {pipeline_mode = #tpu.pipeline_mode<synchronous>, transform_indices = @transform_7, window_bounds = array<i64: 32, 64>}, {pipeline_mode = #tpu.pipeline_mode<synchronous>, transform_indices = @transform_8, window_bounds = array<i64: 1, 64>}, {transform_indices = @transform_9, window_bounds = array<i64: 1, 4, 16, 64>}]} {
    %c0 = arith.constant 0 : index
    %c0_0 = arith.constant 0 : index
    %c0_1 = arith.constant 0 : index
    %0 = vector.load %arg2[%c0, %c0_0, %c0_1] : memref<1x2x64xf32, #tpu.memory_space<vmem>>, vector<1x2x64xf32>
    %1 = vector.shape_cast %0 : vector<1x2x64xf32> to vector<2x64xf32>
    %2 = vector.extract_strided_slice %1 {offsets = [0, 0], sizes = [1, 64], strides = [1, 1]} : vector<2x64xf32> to vector<1x64xf32>
    %3 = vector.extract_strided_slice %1 {offsets = [1, 0], sizes = [1, 64], strides = [1, 1]} : vector<2x64xf32> to vector<1x64xf32>
    %c0_2 = arith.constant 0 : index
    %c0_3 = arith.constant 0 : index
    %c0_4 = arith.constant 0 : index
    %c0_5 = arith.constant 0 : index
    %4 = vector.load %arg4[%c0_2, %c0_3, %c0_4, %c0_5] : memref<1x4x16x64xf32, #tpu.memory_space<vmem>>, vector<1x4x16x64xf32>
    %5 = vector.shape_cast %4 : vector<1x4x16x64xf32> to vector<4x16x64xf32>
    %6 = vector.shape_cast %5 : vector<4x16x64xf32> to vector<64x64xf32>
    %7 = vector.broadcast %2 : vector<1x64xf32> to vector<64x64xf32>
    %8 = arith.mulf %6, %7 : vector<64x64xf32>
    %9 = vector.broadcast %3 : vector<1x64xf32> to vector<64x64xf32>
    %10 = arith.addf %8, %9 : vector<64x64xf32>
    %11 = arith.negf %10 : vector<64x64xf32>
    %12 = math.exp %11 : vector<64x64xf32>
    %cst = arith.constant 1.000000e+00 : f32
    %13 = vector.broadcast %cst : f32 to vector<64x64xf32>
    %14 = arith.addf %13, %12 : vector<64x64xf32>
    %15 = arith.divf %13, %14 : vector<64x64xf32>
    %16 = arith.mulf %10, %15 : vector<64x64xf32>
    %c0_6 = arith.constant 0 : index
    %c0_7 = arith.constant 0 : index
    %c0_8 = arith.constant 0 : index
    %c0_9 = arith.constant 0 : index
    %17 = vector.load %arg3[%c0_6, %c0_7, %c0_8, %c0_9] : memref<1x1x16x64xf32, #tpu.memory_space<vmem>>, vector<1x1x16x64xf32>
    %18 = vector.shape_cast %17 : vector<1x1x16x64xf32> to vector<1x16x64xf32>
    %19 = vector.shape_cast %18 : vector<1x16x64xf32> to vector<16x64xf32>
    %20 = vector.broadcast %2 : vector<1x64xf32> to vector<16x64xf32>
    %21 = arith.mulf %19, %20 : vector<16x64xf32>
    %22 = vector.broadcast %3 : vector<1x64xf32> to vector<16x64xf32>
    %23 = arith.addf %21, %22 : vector<16x64xf32>
    %24 = arith.negf %23 : vector<16x64xf32>
    %25 = math.exp %24 : vector<16x64xf32>
    %cst_10 = arith.constant 1.000000e+00 : f32
    %26 = vector.broadcast %cst_10 : f32 to vector<16x64xf32>
    %27 = arith.addf %26, %25 : vector<16x64xf32>
    %28 = arith.divf %26, %27 : vector<16x64xf32>
    %29 = arith.mulf %23, %28 : vector<16x64xf32>
    %c0_11 = arith.constant 0 : index
    %c0_12 = arith.constant 0 : index
    %c0_13 = arith.constant 0 : index
    %c0_14 = arith.constant 0 : index
    %30 = vector.load %arg5[%c0_11, %c0_12, %c0_13, %c0_14] : memref<1x1x16x64xf32, #tpu.memory_space<vmem>>, vector<1x1x16x64xf32>
    %31 = vector.shape_cast %30 : vector<1x1x16x64xf32> to vector<1x16x64xf32>
    %32 = vector.shape_cast %31 : vector<1x16x64xf32> to vector<16x64xf32>
    %33 = vector.broadcast %2 : vector<1x64xf32> to vector<16x64xf32>
    %34 = arith.mulf %32, %33 : vector<16x64xf32>
    %35 = vector.broadcast %3 : vector<1x64xf32> to vector<16x64xf32>
    %36 = arith.addf %34, %35 : vector<16x64xf32>
    %37 = arith.negf %36 : vector<16x64xf32>
    %38 = math.exp %37 : vector<16x64xf32>
    %cst_15 = arith.constant 1.000000e+00 : f32
    %39 = vector.broadcast %cst_15 : f32 to vector<16x64xf32>
    %40 = arith.addf %39, %38 : vector<16x64xf32>
    %41 = arith.divf %39, %40 : vector<16x64xf32>
    %42 = arith.mulf %36, %41 : vector<16x64xf32>
    %c0_i32 = arith.constant 0 : i32
    %43 = arith.cmpi eq, %arg1, %c0_i32 : i32
    %cst_16 = arith.constant 0.000000e+00 : f32
    %cst_17 = arith.constant 1.000000e+00 : f32
    %44 = arith.select %43, %cst_16, %cst_17 : f32
    %45 = vector.broadcast %44 : f32 to vector<16x64xf32>
    %46 = arith.mulf %29, %45 : vector<16x64xf32>
    %c3_i32 = arith.constant 3 : i32
    %47 = arith.cmpi eq, %arg1, %c3_i32 : i32
    %cst_18 = arith.constant 0.000000e+00 : f32
    %cst_19 = arith.constant 1.000000e+00 : f32
    %48 = arith.select %47, %cst_18, %cst_19 : f32
    %49 = vector.broadcast %48 : f32 to vector<16x64xf32>
    %50 = arith.mulf %42, %49 : vector<16x64xf32>
    %51 = tpu.concatenate %46, %16, %50 in 0 : vector<16x64xf32>, vector<64x64xf32>, vector<16x64xf32> -> vector<96x64xf32>
    %52 = tpu.iota {dimensions = array<i32: 0>} : vector<96x64xi32>
    %c16_i32 = arith.constant 16 : i32
    %c0_i32_20 = arith.constant 0 : i32
    %53 = arith.cmpi eq, %c16_i32, %c0_i32_20 : i32
    %c1_i32 = arith.constant 1 : i32
    %54 = arith.select %53, %c1_i32, %c16_i32 : i32
    %55 = vector.broadcast %54 : i32 to vector<96x64xi32>
    %56 = arith.remsi %52, %55 : vector<96x64xi32>
    %c0_i32_21 = arith.constant 0 : i32
    %57 = vector.broadcast %c0_i32_21 : i32 to vector<96x64xi32>
    %58 = arith.cmpi ne, %56, %57 : vector<96x64xi32>
    %c0_i32_22 = arith.constant 0 : i32
    %59 = vector.broadcast %c0_i32_22 : i32 to vector<96x64xi32>
    %60 = arith.cmpi slt, %56, %59 : vector<96x64xi32>
    %c0_i32_23 = arith.constant 0 : i32
    %61 = arith.cmpi slt, %54, %c0_i32_23 : i32
    %62 = vector.broadcast %61 : i1 to vector<96x64xi1>
    %63 = vector.broadcast %62 : vector<96x64xi1> to vector<96x64xi1>
    %64 = arith.xori %60, %63 : vector<96x64xi1>
    %65 = arith.andi %64, %58 : vector<96x64xi1>
    %66 = vector.broadcast %54 : i32 to vector<96x64xi32>
    %67 = arith.addi %56, %66 : vector<96x64xi32>
    %68 = arith.select %65, %67, %56 : vector<96x64xi1>, vector<96x64xi32>
    %cst_24 = arith.constant 0.000000e+00 : f32
    %69 = vector.broadcast %cst_24 : f32 to vector<96x64xf32>
    %cst_25 = arith.constant 0.000000e+00 : f32
    %70 = vector.broadcast %cst_25 : f32 to vector<1x64xf32>
    %c15_i32 = arith.constant 15 : i32
    %71 = vector.broadcast %c15_i32 : i32 to vector<96x64xi32>
    %72 = arith.cmpi eq, %68, %71 : vector<96x64xi32>
    %73 = arith.select %72, %69, %51 : vector<96x64xi1>, vector<96x64xf32>
    %74 = vector.extract_strided_slice %73 {offsets = [0, 0], sizes = [95, 64], strides = [1, 1]} : vector<96x64xf32> to vector<95x64xf32>
    %75 = tpu.concatenate %70, %74 in 0 : vector<1x64xf32>, vector<95x64xf32> -> vector<96x64xf32>
    %c0_i32_26 = arith.constant 0 : i32
    %76 = vector.broadcast %c0_i32_26 : i32 to vector<96x64xi32>
    %77 = arith.cmpi eq, %68, %76 : vector<96x64xi32>
    %78 = arith.select %77, %69, %51 : vector<96x64xi1>, vector<96x64xf32>
    %79 = vector.extract_strided_slice %78 {offsets = [1, 0], sizes = [95, 64], strides = [1, 1]} : vector<96x64xf32> to vector<95x64xf32>
    %80 = tpu.concatenate %79, %70 in 0 : vector<95x64xf32>, vector<1x64xf32> -> vector<96x64xf32>
    %c0_27 = arith.constant 0 : index
    %c0_28 = arith.constant 0 : index
    %81 = vector.load %arg7[%c0_27, %c0_28] : memref<1x64xf32, #tpu.memory_space<vmem>>, vector<1x64xf32>
    %82 = vector.shape_cast %81 : vector<1x64xf32> to vector<1x64xf32>
    %83 = vector.broadcast %82 : vector<1x64xf32> to vector<64x64xf32>
    %84 = vector.extract_strided_slice %75 {offsets = [0, 0], sizes = [64, 64], strides = [1, 1]} : vector<96x64xf32> to vector<64x64xf32>
    %85 = arith.truncf %84 : vector<64x64xf32> to vector<64x64xbf16>
    %c0_29 = arith.constant 0 : index
    %c0_30 = arith.constant 0 : index
    %c0_31 = arith.constant 0 : index
    %c0_32 = arith.constant 0 : index
    %86 = vector.load %arg6[%c0_29, %c0_30, %c0_31, %c0_32] : memref<3x3x64x64xbf16, #tpu.memory_space<vmem>>, vector<1x1x64x64xbf16>
    %87 = vector.shape_cast %86 : vector<1x1x64x64xbf16> to vector<64x64xbf16>
    %cst_33 = arith.constant dense<0.000000e+00> : vector<64x64xf32>
    %88 = tpu.matmul %85, %87, %cst_33 {dimension_numbers = #tpu.dot_dimension_numbers<[1], [0], [0], [1], [0, 0, 1, 1], [], []>} : vector<64x64xbf16>, vector<64x64xbf16>, vector<64x64xf32> -> vector<64x64xf32>
    %89 = arith.addf %83, %88 : vector<64x64xf32>
    %90 = vector.extract_strided_slice %51 {offsets = [0, 0], sizes = [64, 64], strides = [1, 1]} : vector<96x64xf32> to vector<64x64xf32>
    %91 = arith.truncf %90 : vector<64x64xf32> to vector<64x64xbf16>
    %c0_34 = arith.constant 0 : index
    %c1 = arith.constant 1 : index
    %c0_35 = arith.constant 0 : index
    %c0_36 = arith.constant 0 : index
    %92 = vector.load %arg6[%c0_34, %c1, %c0_35, %c0_36] : memref<3x3x64x64xbf16, #tpu.memory_space<vmem>>, vector<1x1x64x64xbf16>
    %93 = vector.shape_cast %92 : vector<1x1x64x64xbf16> to vector<64x64xbf16>
    %cst_37 = arith.constant dense<0.000000e+00> : vector<64x64xf32>
    %94 = tpu.matmul %91, %93, %cst_37 {dimension_numbers = #tpu.dot_dimension_numbers<[1], [0], [0], [1], [0, 0, 1, 1], [], []>} : vector<64x64xbf16>, vector<64x64xbf16>, vector<64x64xf32> -> vector<64x64xf32>
    %95 = arith.addf %89, %94 : vector<64x64xf32>
    %96 = vector.extract_strided_slice %80 {offsets = [0, 0], sizes = [64, 64], strides = [1, 1]} : vector<96x64xf32> to vector<64x64xf32>
    %97 = arith.truncf %96 : vector<64x64xf32> to vector<64x64xbf16>
    %c0_38 = arith.constant 0 : index
    %c2 = arith.constant 2 : index
    %c0_39 = arith.constant 0 : index
    %c0_40 = arith.constant 0 : index
    %98 = vector.load %arg6[%c0_38, %c2, %c0_39, %c0_40] : memref<3x3x64x64xbf16, #tpu.memory_space<vmem>>, vector<1x1x64x64xbf16>
    %99 = vector.shape_cast %98 : vector<1x1x64x64xbf16> to vector<64x64xbf16>
    %cst_41 = arith.constant dense<0.000000e+00> : vector<64x64xf32>
    %100 = tpu.matmul %97, %99, %cst_41 {dimension_numbers = #tpu.dot_dimension_numbers<[1], [0], [0], [1], [0, 0, 1, 1], [], []>} : vector<64x64xbf16>, vector<64x64xbf16>, vector<64x64xf32> -> vector<64x64xf32>
    %101 = arith.addf %95, %100 : vector<64x64xf32>
    %102 = vector.extract_strided_slice %75 {offsets = [16, 0], sizes = [64, 64], strides = [1, 1]} : vector<96x64xf32> to vector<64x64xf32>
    %103 = arith.truncf %102 : vector<64x64xf32> to vector<64x64xbf16>
    %c1_42 = arith.constant 1 : index
    %c0_43 = arith.constant 0 : index
    %c0_44 = arith.constant 0 : index
    %c0_45 = arith.constant 0 : index
    %104 = vector.load %arg6[%c1_42, %c0_43, %c0_44, %c0_45] : memref<3x3x64x64xbf16, #tpu.memory_space<vmem>>, vector<1x1x64x64xbf16>
    %105 = vector.shape_cast %104 : vector<1x1x64x64xbf16> to vector<64x64xbf16>
    %cst_46 = arith.constant dense<0.000000e+00> : vector<64x64xf32>
    %106 = tpu.matmul %103, %105, %cst_46 {dimension_numbers = #tpu.dot_dimension_numbers<[1], [0], [0], [1], [0, 0, 1, 1], [], []>} : vector<64x64xbf16>, vector<64x64xbf16>, vector<64x64xf32> -> vector<64x64xf32>
    %107 = arith.addf %101, %106 : vector<64x64xf32>
    %108 = vector.extract_strided_slice %51 {offsets = [16, 0], sizes = [64, 64], strides = [1, 1]} : vector<96x64xf32> to vector<64x64xf32>
    %109 = arith.truncf %108 : vector<64x64xf32> to vector<64x64xbf16>
    %c1_47 = arith.constant 1 : index
    %c1_48 = arith.constant 1 : index
    %c0_49 = arith.constant 0 : index
    %c0_50 = arith.constant 0 : index
    %110 = vector.load %arg6[%c1_47, %c1_48, %c0_49, %c0_50] : memref<3x3x64x64xbf16, #tpu.memory_space<vmem>>, vector<1x1x64x64xbf16>
    %111 = vector.shape_cast %110 : vector<1x1x64x64xbf16> to vector<64x64xbf16>
    %cst_51 = arith.constant dense<0.000000e+00> : vector<64x64xf32>
    %112 = tpu.matmul %109, %111, %cst_51 {dimension_numbers = #tpu.dot_dimension_numbers<[1], [0], [0], [1], [0, 0, 1, 1], [], []>} : vector<64x64xbf16>, vector<64x64xbf16>, vector<64x64xf32> -> vector<64x64xf32>
    %113 = arith.addf %107, %112 : vector<64x64xf32>
    %114 = vector.extract_strided_slice %80 {offsets = [16, 0], sizes = [64, 64], strides = [1, 1]} : vector<96x64xf32> to vector<64x64xf32>
    %115 = arith.truncf %114 : vector<64x64xf32> to vector<64x64xbf16>
    %c1_52 = arith.constant 1 : index
    %c2_53 = arith.constant 2 : index
    %c0_54 = arith.constant 0 : index
    %c0_55 = arith.constant 0 : index
    %116 = vector.load %arg6[%c1_52, %c2_53, %c0_54, %c0_55] : memref<3x3x64x64xbf16, #tpu.memory_space<vmem>>, vector<1x1x64x64xbf16>
    %117 = vector.shape_cast %116 : vector<1x1x64x64xbf16> to vector<64x64xbf16>
    %cst_56 = arith.constant dense<0.000000e+00> : vector<64x64xf32>
    %118 = tpu.matmul %115, %117, %cst_56 {dimension_numbers = #tpu.dot_dimension_numbers<[1], [0], [0], [1], [0, 0, 1, 1], [], []>} : vector<64x64xbf16>, vector<64x64xbf16>, vector<64x64xf32> -> vector<64x64xf32>
    %119 = arith.addf %113, %118 : vector<64x64xf32>
    %120 = vector.extract_strided_slice %75 {offsets = [32, 0], sizes = [64, 64], strides = [1, 1]} : vector<96x64xf32> to vector<64x64xf32>
    %121 = arith.truncf %120 : vector<64x64xf32> to vector<64x64xbf16>
    %c2_57 = arith.constant 2 : index
    %c0_58 = arith.constant 0 : index
    %c0_59 = arith.constant 0 : index
    %c0_60 = arith.constant 0 : index
    %122 = vector.load %arg6[%c2_57, %c0_58, %c0_59, %c0_60] : memref<3x3x64x64xbf16, #tpu.memory_space<vmem>>, vector<1x1x64x64xbf16>
    %123 = vector.shape_cast %122 : vector<1x1x64x64xbf16> to vector<64x64xbf16>
    %cst_61 = arith.constant dense<0.000000e+00> : vector<64x64xf32>
    %124 = tpu.matmul %121, %123, %cst_61 {dimension_numbers = #tpu.dot_dimension_numbers<[1], [0], [0], [1], [0, 0, 1, 1], [], []>} : vector<64x64xbf16>, vector<64x64xbf16>, vector<64x64xf32> -> vector<64x64xf32>
    %125 = arith.addf %119, %124 : vector<64x64xf32>
    %126 = vector.extract_strided_slice %51 {offsets = [32, 0], sizes = [64, 64], strides = [1, 1]} : vector<96x64xf32> to vector<64x64xf32>
    %127 = arith.truncf %126 : vector<64x64xf32> to vector<64x64xbf16>
    %c2_62 = arith.constant 2 : index
    %c1_63 = arith.constant 1 : index
    %c0_64 = arith.constant 0 : index
    %c0_65 = arith.constant 0 : index
    %128 = vector.load %arg6[%c2_62, %c1_63, %c0_64, %c0_65] : memref<3x3x64x64xbf16, #tpu.memory_space<vmem>>, vector<1x1x64x64xbf16>
    %129 = vector.shape_cast %128 : vector<1x1x64x64xbf16> to vector<64x64xbf16>
    %cst_66 = arith.constant dense<0.000000e+00> : vector<64x64xf32>
    %130 = tpu.matmul %127, %129, %cst_66 {dimension_numbers = #tpu.dot_dimension_numbers<[1], [0], [0], [1], [0, 0, 1, 1], [], []>} : vector<64x64xbf16>, vector<64x64xbf16>, vector<64x64xf32> -> vector<64x64xf32>
    %131 = arith.addf %125, %130 : vector<64x64xf32>
    %132 = vector.extract_strided_slice %80 {offsets = [32, 0], sizes = [64, 64], strides = [1, 1]} : vector<96x64xf32> to vector<64x64xf32>
    %133 = arith.truncf %132 : vector<64x64xf32> to vector<64x64xbf16>
    %c2_67 = arith.constant 2 : index
    %c2_68 = arith.constant 2 : index
    %c0_69 = arith.constant 0 : index
    %c0_70 = arith.constant 0 : index
    %134 = vector.load %arg6[%c2_67, %c2_68, %c0_69, %c0_70] : memref<3x3x64x64xbf16, #tpu.memory_space<vmem>>, vector<1x1x64x64xbf16>
    %135 = vector.shape_cast %134 : vector<1x1x64x64xbf16> to vector<64x64xbf16>
    %cst_71 = arith.constant dense<0.000000e+00> : vector<64x64xf32>
    %136 = tpu.matmul %133, %135, %cst_71 {dimension_numbers = #tpu.dot_dimension_numbers<[1], [0], [0], [1], [0, 0, 1, 1], [], []>} : vector<64x64xbf16>, vector<64x64xbf16>, vector<64x64xf32> -> vector<64x64xf32>
    %137 = arith.addf %131, %136 : vector<64x64xf32>
    %c0_72 = arith.constant 0 : index
    %c0_73 = arith.constant 0 : index
    %c0_74 = arith.constant 0 : index
    %c0_75 = arith.constant 0 : index
    %138 = vector.load %arg8[%c0_72, %c0_73, %c0_74, %c0_75] : memref<1x4x16x32xf32, #tpu.memory_space<vmem>>, vector<1x4x16x32xf32>
    %139 = vector.shape_cast %138 : vector<1x4x16x32xf32> to vector<4x16x32xf32>
    %140 = vector.shape_cast %139 : vector<4x16x32xf32> to vector<64x32xf32>
    %141 = arith.truncf %140 : vector<64x32xf32> to vector<64x32xbf16>
    %c0_76 = arith.constant 0 : index
    %c0_77 = arith.constant 0 : index
    %142 = vector.load %arg9[%c0_76, %c0_77] : memref<32x64xbf16, #tpu.memory_space<vmem>>, vector<32x64xbf16>
    %cst_78 = arith.constant dense<0.000000e+00> : vector<64x64xf32>
    %143 = tpu.matmul %141, %142, %cst_78 {dimension_numbers = #tpu.dot_dimension_numbers<[1], [0], [0], [1], [0, 0, 1, 1], [], []>} : vector<64x32xbf16>, vector<32x64xbf16>, vector<64x64xf32> -> vector<64x64xf32>
    %144 = arith.addf %137, %143 : vector<64x64xf32>
    %c0_79 = arith.constant 0 : index
    %c0_80 = arith.constant 0 : index
    %145 = vector.load %arg10[%c0_79, %c0_80] : memref<1x64xf32, #tpu.memory_space<vmem>>, vector<1x64xf32>
    %146 = vector.broadcast %145 : vector<1x64xf32> to vector<64x64xf32>
    %147 = arith.addf %144, %146 : vector<64x64xf32>
    %148 = vector.shape_cast %147 : vector<64x64xf32> to vector<4x16x64xf32>
    %c0_81 = arith.constant 0 : index
    %c0_82 = arith.constant 0 : index
    %c0_83 = arith.constant 0 : index
    %c0_84 = arith.constant 0 : index
    %149 = vector.load %arg11[%c0_81, %c0_82, %c0_83, %c0_84] : memref<1x4x16x64xf32, #tpu.memory_space<vmem>>, vector<1x4x16x64xf32>
    %150 = vector.shape_cast %149 : vector<1x4x16x64xf32> to vector<4x16x64xf32>
    %151 = vector.shape_cast %148 : vector<4x16x64xf32> to vector<1x4x16x64xf32>
    tpu.vector_store %arg11[%c0_81, %c0_82, %c0_83, %c0_84], %151 {strides = array<i32>} : memref<1x4x16x64xf32, #tpu.memory_space<vmem>>, vector<1x4x16x64xf32>,
    return
  }
  func.func @transform_0(%arg0: i32, %arg1: i32) -> (i32, i32, i32) {
    %c0_i32 = arith.constant 0 : i32
    %c0_i32_0 = arith.constant 0 : i32
    %c0_i32_1 = arith.constant 0 : i32
    return %arg0, %c0_i32, %c0_i32_0 : i32, i32, i32
  }
  func.func @transform_1(%arg0: i32, %arg1: i32) -> (i32, i32, i32, i32) {
    %c4_i32 = arith.constant 4 : i32
    %0 = arith.muli %arg1, %c4_i32 : i32
    %c1_i32 = arith.constant 1 : i32
    %1 = arith.subi %0, %c1_i32 : i32
    %c0_i32 = arith.constant 0 : i32
    %2 = arith.maxsi %1, %c0_i32 : i32
    %c0_i32_0 = arith.constant 0 : i32
    %c0_i32_1 = arith.constant 0 : i32
    %c0_i32_2 = arith.constant 0 : i32
    return %arg0, %2, %c0_i32_0, %c0_i32_1 : i32, i32, i32, i32
  }
  func.func @transform_2(%arg0: i32, %arg1: i32) -> (i32, i32, i32, i32) {
    %c0_i32 = arith.constant 0 : i32
    %c0_i32_0 = arith.constant 0 : i32
    %c0_i32_1 = arith.constant 0 : i32
    return %arg0, %arg1, %c0_i32, %c0_i32_0 : i32, i32, i32, i32
  }
  func.func @transform_3(%arg0: i32, %arg1: i32) -> (i32, i32, i32, i32) {
    %c1_i32 = arith.constant 1 : i32
    %0 = arith.addi %arg1, %c1_i32 : i32
    %c4_i32 = arith.constant 4 : i32
    %1 = arith.muli %0, %c4_i32 : i32
    %c15_i32 = arith.constant 15 : i32
    %2 = arith.minsi %1, %c15_i32 : i32
    %c0_i32 = arith.constant 0 : i32
    %c0_i32_0 = arith.constant 0 : i32
    %c0_i32_1 = arith.constant 0 : i32
    return %arg0, %2, %c0_i32, %c0_i32_0 : i32, i32, i32, i32
  }
  func.func @transform_4(%arg0: i32, %arg1: i32) -> (i32, i32, i32, i32) {
    %c0_i32 = arith.constant 0 : i32
    %c0_i32_0 = arith.constant 0 : i32
    %c0_i32_1 = arith.constant 0 : i32
    %c0_i32_2 = arith.constant 0 : i32
    %c0_i32_3 = arith.constant 0 : i32
    return %c0_i32, %c0_i32_0, %c0_i32_1, %c0_i32_2 : i32, i32, i32, i32
  }
  func.func @transform_5(%arg0: i32, %arg1: i32) -> (i32, i32) {
    %c0_i32 = arith.constant 0 : i32
    %c0_i32_0 = arith.constant 0 : i32
    %c0_i32_1 = arith.constant 0 : i32
    return %c0_i32, %c0_i32_0 : i32, i32
  }
  func.func @transform_6(%arg0: i32, %arg1: i32) -> (i32, i32, i32, i32) {
    %c0_i32 = arith.constant 0 : i32
    %c0_i32_0 = arith.constant 0 : i32
    %c0_i32_1 = arith.constant 0 : i32
    return %arg0, %arg1, %c0_i32, %c0_i32_0 : i32, i32, i32, i32
  }
  func.func @transform_7(%arg0: i32, %arg1: i32) -> (i32, i32) {
    %c0_i32 = arith.constant 0 : i32
    %c0_i32_0 = arith.constant 0 : i32
    %c0_i32_1 = arith.constant 0 : i32
    return %c0_i32, %c0_i32_0 : i32, i32
  }
  func.func @transform_8(%arg0: i32, %arg1: i32) -> (i32, i32) {
    %c0_i32 = arith.constant 0 : i32
    %c0_i32_0 = arith.constant 0 : i32
    %c0_i32_1 = arith.constant 0 : i32
    return %c0_i32, %c0_i32_0 : i32, i32
  }
  func.func @transform_9(%arg0: i32, %arg1: i32) -> (i32, i32, i32, i32) {
    %c0_i32 = arith.constant 0 : i32
    %c0_i32_0 = arith.constant 0 : i32
    %c0_i32_1 = arith.constant 0 : i32
    return %arg0, %arg1, %c0_i32, %c0_i32_0 : i32, i32, i32, i32
  }
}

</mosaic_0001>

<bundles_post_ra>
// kernel: squeeze.7
= control target key start
LH: loop header
LB: loop body
LE: loop exit
PB: predicated region body
PF: predicated region fallthrough
CT: control target
= control target key end

     0   :  { %s355_s8 = smov 122   ;;  %s356_s9 = smov 124   ;;  %vm8_vm0 = vcmask 15360   ;;  %s654_s0 = inlined_call_operand.vmem [shape: f32[2,64], index: 0, kind: input, shape index: {}]   ;;  %s655_s1 = inlined_call_operand.vmem [shape: f32[2,32,2], index: 1, kind: output, shape index: {}]  }
   0x1   :  { %v5_v0 = vld [vmem:[%s654_s0] sm:$0x3]  ;;  %s354_s0 = smov 126   ;;  %s357_s10 = smov 120  }
   0x2   :  { %6 = vst [vmem:[#allocation0] sm:$0x3] %v5_v0  ;;  %s358_s11 = smov 118   ;;  %s359_s12 = smov 116  }
   0x3   :  { %s360_s13 = smov 114   ;;  %s361_s14 = smov 112  }
   0x4   :  { %s362_s15 = smov 110   ;;  %s363_s16 = smov 108  }
   0x5   :  { %s364_s17 = smov 106   ;;  %s365_s18 = smov 104  }
   0x6   :  { %s366_s19 = smov 102   ;;  %s367_s20 = smov 100  }
   0x7   :  { %s368_s21 = smov 98   ;;  %s369_s22 = smov 96  }
   0x8   :  { %s370_s23 = smov 94   ;;  %s371_s24 = smov 92  }
   0x9   :  { %v12_v1 = vld [vmem:[#allocation0] sm:$0x3]   ;;  %s372_s25 = smov 90   ;;  %s373_s26 = smov 88  }
   0xa   :  { %v28_v2 = vld [vmem:[#allocation0] sm:$0x3]   ;;  %13 = vrot.lane.b32.xlu0 %v12_v1, %s354_s0  ;;  %s374_s27 = smov 86   ;;  %s375_s28 = smov 84  }
   0xb   :  { %29 = vrot.lane.b32.xlu1 %v28_v2, %s355_s8  ;;  %v20_v3 = vld [vmem:[#allocation0] sm:$0x3]   ;;  %s376_s29 = smov 82   ;;  %s377_s30 = smov 80  }
   0xc   :  { %v36_v4 = vld [vmem:[#allocation0] sm:$0x3]   ;;  %s378_s6 = smov 78   ;;  %s379_s7 = smov 76  }
   0xd   :  { %v44_v5 = vld [vmem:[#allocation0] sm:$0x3]   ;;  %s380_s0 = smov 74   ;;  %s381_s8 = smov 72  }
   0xe   :  { %21 = vrot.lane.b32.xlu0 %v20_v3, %s356_s9  ;;  %v52_v6 = vld [vmem:[#allocation0] sm:$0x3]   ;;  %s382_s9 = smov 70  }
   0xf   :  { %37 = vrot.lane.b32.xlu1 %v36_v4, %s357_s10  ;;  %v60_v7 = vld [vmem:[#allocation0] sm:$0x3]   ;;  %s383_s10 = smov 68  }
  0x10   :  { %v68_v8 = vld [vmem:[#allocation0] sm:$0x3]  }
  0x11   :  { %v76_v9 = vld [vmem:[#allocation0] sm:$0x3]  }
  0x12   :  { %45 = vrot.lane.b32.xlu0 %v44_v5, %s358_s11  ;;  %v84_v10 = vld [vmem:[#allocation0] sm:$0x3]   ;;  %s384_s11 = smov 66  }
  0x13   :  { %53 = vrot.lane.b32.xlu1 %v52_v6, %s359_s12  ;;  %v92_v11 = vld [vmem:[#allocation0] sm:$0x3]  }
  0x14   :  { %v100_v12 = vld [vmem:[#allocation0] sm:$0x3]  }
  0x15   :  { %v108_v13 = vld [vmem:[#allocation0] sm:$0x3]  }
  0x16   :  { %61 = vrot.lane.b32.xlu0 %v60_v7, %s360_s13  ;;  %v116_v14 = vld [vmem:[#allocation0] sm:$0x3]  }
  0x17   :  { %69 = vrot.lane.b32.xlu1 %v68_v8, %s361_s14  ;;  %v124_v15 = vld [vmem:[#allocation0] sm:$0x3]  }
  0x18   :  { %v132_v16 = vld [vmem:[#allocation0] sm:$0x3]  }
  0x19   :  { %v140_v17 = vld [vmem:[#allocation0] sm:$0x3]  }
  0x1a   :  { %77 = vrot.lane.b32.xlu0 %v76_v9, %s362_s15  ;;  %v148_v18 = vld [vmem:[#allocation0] sm:$0x3]  }
  0x1b   :  { %85 = vrot.lane.b32.xlu1 %v84_v10, %s363_s16  ;;  %v156_v19 = vld [vmem:[#allocation0] sm:$0x3]  }
  0x1c   :  { %v164_v20 = vld [vmem:[#allocation0] sm:$0x3]  }
  0x1d   :  { %v172_v21 = vld [vmem:[#allocation0] sm:$0x3]  }
  0x1e   :  { %93 = vrot.lane.b32.xlu0 %v92_v11, %s364_s17  ;;  %v180_v22 = vld [vmem:[#allocation0] sm:$0x3]  }
  0x1f   :  { %101 = vrot.lane.b32.xlu1 %v100_v12, %s365_s18  ;;  %v188_v23 = vld [vmem:[#allocation0] sm:$0x3]  }
  0x20   :  { %v196_v24 = vld [vmem:[#allocation0] sm:$0x3]  }
  0x21   :  { %v204_v25 = vld [vmem:[#allocation0] sm:$0x3]  }
  0x22   :  { %109 = vrot.lane.b32.xlu0 %v108_v13, %s366_s19  ;;  %v212_v26 = vld [vmem:[#allocation0] sm:$0x3]  }
  0x23   :  { %117 = vrot.lane.b32.xlu1 %v116_v14, %s367_s20  ;;  %v7_v27 = vld [vmem:[#allocation0] sm:$0x3]  }
  0x24   :  { %9 = vst.msk [vmem:[%s655_s1] sm:$0x1] %vm8_vm0, %v7_v27   ;;  %260 = vst.msk [vmem:[%s655_s1 + $0x1f] sm:$0x2] %vm8_vm0, %v7_v27   ;;  %v220_v28 = vld [vmem:[#allocation0] sm:$0x3]  }
  0x25   :  { %v228_v29 = vld [vmem:[#allocation0] sm:$0x3]  }
  0x26   :  { %125 = vrot.lane.b32.xlu0 %v124_v15, %s368_s21  ;;  %v236_v30 = vld [vmem:[#allocation0] sm:$0x3]  }
  0x27   :  { %133 = vrot.lane.b32.xlu1 %v132_v16, %s369_s22  ;;  %v244_v31 = vld [vmem:[#allocation0] sm:$0x3]  }
  0x28   :  { %v252_v32 = vld [vmem:[#allocation0] sm:$0x3]  }
  0x2a   :  { %141 = vrot.lane.b32.xlu0 %v140_v17, %s370_s23 }
  0x2b   :  { %149 = vrot.lane.b32.xlu1 %v148_v18, %s371_s24 }
  0x2e   :  { %157 = vrot.lane.b32.xlu0 %v156_v19, %s372_s25 }
  0x2f   :  { %165 = vrot.lane.b32.xlu1 %v164_v20, %s373_s26 }
  0x32   :  { %173 = vrot.lane.b32.xlu0 %v172_v21, %s374_s27 }
  0x33   :  { %181 = vrot.lane.b32.xlu1 %v180_v22, %s375_s28 }
  0x36   :  { %189 = vrot.lane.b32.xlu0 %v188_v23, %s376_s29 }
  0x37   :  { %197 = vrot.lane.b32.xlu1 %v196_v24, %s377_s30 }
  0x3a   :  { %205 = vrot.lane.b32.xlu0 %v204_v25, %s378_s6 }
  0x3b   :  { %213 = vrot.lane.b32.xlu1 %v212_v26, %s379_s7 }
  0x3e   :  { %221 = vrot.lane.b32.xlu0 %v220_v28, %s380_s0 }
  0x3f   :  { %229 = vrot.lane.b32.xlu1 %v228_v29, %s381_s8 }
  0x42   :  { %237 = vrot.lane.b32.xlu0 %v236_v30, %s382_s9 }
  0x43   :  { %245 = vrot.lane.b32.xlu1 %v244_v31, %s383_s10 }
  0x46   :  { %253 = vrot.lane.b32.xlu0 %v252_v32, %s384_s11 }
  0x7c   :  { %v14_v33 = vpop.permute.xlu0 %13  }
  0x7d   :  { %v30_v34 = vpop.permute.xlu1 %29   ;;  %261 = vst.msk [vmem:[%s655_s1 + $0x1] sm:$0x1] %vm8_vm0, %v14_v33   ;;  %262 = vst.msk [vmem:[%s655_s1 + $0x20] sm:$0x2] %vm8_vm0, %v14_v33  }
  0x7e   :  { %265 = vst.msk [vmem:[%s655_s1 + $0x3] sm:$0x1] %vm8_vm0, %v30_v34   ;;  %266 = vst.msk [vmem:[%s655_s1 + $0x22] sm:$0x2] %vm8_vm0, %v30_v34  }
  0x80   :  { %v22_v35 = vpop.permute.xlu0 %21  }
  0x81   :  { %v38_v36 = vpop.permute.xlu1 %37   ;;  %263 = vst.msk [vmem:[%s655_s1 + $0x2] sm:$0x1] %vm8_vm0, %v22_v35   ;;  %264 = vst.msk [vmem:[%s655_s1 + $0x21] sm:$0x2] %vm8_vm0, %v22_v35  }
  0x82   :  { %267 = vst.msk [vmem:[%s655_s1 + $0x4] sm:$0x1] %vm8_vm0, %v38_v36   ;;  %268 = vst.msk [vmem:[%s655_s1 + $0x23] sm:$0x2] %vm8_vm0, %v38_v36  }
  0x84   :  { %v46_v37 = vpop.permute.xlu0 %45  }
  0x85   :  { %v54_v38 = vpop.permute.xlu1 %53   ;;  %269 = vst.msk [vmem:[%s655_s1 + $0x5] sm:$0x1] %vm8_vm0, %v46_v37   ;;  %270 = vst.msk [vmem:[%s655_s1 + $0x24] sm:$0x2] %vm8_vm0, %v46_v37  }
  0x86   :  { %271 = vst.msk [vmem:[%s655_s1 + $0x6] sm:$0x1] %vm8_vm0, %v54_v38   ;;  %272 = vst.msk [vmem:[%s655_s1 + $0x25] sm:$0x2] %vm8_vm0, %v54_v38  }
  0x88   :  { %v62_v39 = vpop.permute.xlu0 %61  }
  0x89   :  { %v70_v40 = vpop.permute.xlu1 %69   ;;  %273 = vst.msk [vmem:[%s655_s1 + $0x7] sm:$0x1] %vm8_vm0, %v62_v39   ;;  %274 = vst.msk [vmem:[%s655_s1 + $0x26] sm:$0x2] %vm8_vm0, %v62_v39  }
  0x8a   :  { %275 = vst.msk [vmem:[%s655_s1 + $0x8] sm:$0x1] %vm8_vm0, %v70_v40   ;;  %276 = vst.msk [vmem:[%s655_s1 + $0x27] sm:$0x2] %vm8_vm0, %v70_v40  }
  0x8c   :  { %v78_v41 = vpop.permute.xlu0 %77  }
  0x8d   :  { %v86_v42 = vpop.permute.xlu1 %85   ;;  %277 = vst.msk [vmem:[%s655_s1 + $0x9] sm:$0x1] %vm8_vm0, %v78_v41   ;;  %278 = vst.msk [vmem:[%s655_s1 + $0x28] sm:$0x2] %vm8_vm0, %v78_v41  }
  0x8e   :  { %279 = vst.msk [vmem:[%s655_s1 + $0xa] sm:$0x1] %vm8_vm0, %v86_v42   ;;  %280 = vst.msk [vmem:[%s655_s1 + $0x29] sm:$0x2] %vm8_vm0, %v86_v42  }
  0x90   :  { %v94_v43 = vpop.permute.xlu0 %93  }
  0x91   :  { %v102_v44 = vpop.permute.xlu1 %101   ;;  %281 = vst.msk [vmem:[%s655_s1 + $0xb] sm:$0x1] %vm8_vm0, %v94_v43   ;;  %282 = vst.msk [vmem:[%s655_s1 + $0x2a] sm:$0x2] %vm8_vm0, %v94_v43  }
  0x92   :  { %283 = vst.msk [vmem:[%s655_s1 + $0xc] sm:$0x1] %vm8_vm0, %v102_v44   ;;  %284 = vst.msk [vmem:[%s655_s1 + $0x2b] sm:$0x2] %vm8_vm0, %v102_v44  }
  0x94   :  { %v110_v45 = vpop.permute.xlu0 %109  }
  0x95   :  { %v118_v46 = vpop.permute.xlu1 %117   ;;  %285 = vst.msk [vmem:[%s655_s1 + $0xd] sm:$0x1] %vm8_vm0, %v110_v45   ;;  %286 = vst.msk [vmem:[%s655_s1 + $0x2c] sm:$0x2] %vm8_vm0, %v110_v45  }
  0x96   :  { %287 = vst.msk [vmem:[%s655_s1 + $0xe] sm:$0x1] %vm8_vm0, %v118_v46   ;;  %288 = vst.msk [vmem:[%s655_s1 + $0x2d] sm:$0x2] %vm8_vm0, %v118_v46  }
  0x98   :  { %v126_v47 = vpop.permute.xlu0 %125  }
  0x99   :  { %v134_v48 = vpop.permute.xlu1 %133   ;;  %289 = vst.msk [vmem:[%s655_s1 + $0xf] sm:$0x1] %vm8_vm0, %v126_v47   ;;  %290 = vst.msk [vmem:[%s655_s1 + $0x2e] sm:$0x2] %vm8_vm0, %v126_v47  }
  0x9a   :  { %291 = vst.msk [vmem:[%s655_s1 + $0x10] sm:$0x1] %vm8_vm0, %v134_v48   ;;  %292 = vst.msk [vmem:[%s655_s1 + $0x2f] sm:$0x2] %vm8_vm0, %v134_v48  }
  0x9c   :  { %v142_v49 = vpop.permute.xlu0 %141  }
  0x9d   :  { %v150_v50 = vpop.permute.xlu1 %149   ;;  %293 = vst.msk [vmem:[%s655_s1 + $0x11] sm:$0x1] %vm8_vm0, %v142_v49   ;;  %294 = vst.msk [vmem:[%s655_s1 + $0x30] sm:$0x2] %vm8_vm0, %v142_v49  }
  0x9e   :  { %295 = vst.msk [vmem:[%s655_s1 + $0x12] sm:$0x1] %vm8_vm0, %v150_v50   ;;  %296 = vst.msk [vmem:[%s655_s1 + $0x31] sm:$0x2] %vm8_vm0, %v150_v50  }
  0xa0   :  { %v158_v51 = vpop.permute.xlu0 %157  }
  0xa1   :  { %v166_v52 = vpop.permute.xlu1 %165   ;;  %297 = vst.msk [vmem:[%s655_s1 + $0x13] sm:$0x1] %vm8_vm0, %v158_v51   ;;  %298 = vst.msk [vmem:[%s655_s1 + $0x32] sm:$0x2] %vm8_vm0, %v158_v51  }
  0xa2   :  { %299 = vst.msk [vmem:[%s655_s1 + $0x14] sm:$0x1] %vm8_vm0, %v166_v52   ;;  %300 = vst.msk [vmem:[%s655_s1 + $0x33] sm:$0x2] %vm8_vm0, %v166_v52  }
  0xa4   :  { %v174_v53 = vpop.permute.xlu0 %173  }
  0xa5   :  { %v182_v54 = vpop.permute.xlu1 %181   ;;  %301 = vst.msk [vmem:[%s655_s1 + $0x15] sm:$0x1] %vm8_vm0, %v174_v53   ;;  %302 = vst.msk [vmem:[%s655_s1 + $0x34] sm:$0x2] %vm8_vm0, %v174_v53  }
  0xa6   :  { %303 = vst.msk [vmem:[%s655_s1 + $0x16] sm:$0x1] %vm8_vm0, %v182_v54   ;;  %304 = vst.msk [vmem:[%s655_s1 + $0x35] sm:$0x2] %vm8_vm0, %v182_v54  }
  0xa8   :  { %v190_v55 = vpop.permute.xlu0 %189  }
  0xa9   :  { %v198_v56 = vpop.permute.xlu1 %197   ;;  %305 = vst.msk [vmem:[%s655_s1 + $0x17] sm:$0x1] %vm8_vm0, %v190_v55   ;;  %306 = vst.msk [vmem:[%s655_s1 + $0x36] sm:$0x2] %vm8_vm0, %v190_v55  }
  0xaa   :  { %307 = vst.msk [vmem:[%s655_s1 + $0x18] sm:$0x1] %vm8_vm0, %v198_v56   ;;  %308 = vst.msk [vmem:[%s655_s1 + $0x37] sm:$0x2] %vm8_vm0, %v198_v56  }
  0xac   :  { %v206_v57 = vpop.permute.xlu0 %205  }
  0xad   :  { %v214_v58 = vpop.permute.xlu1 %213   ;;  %309 = vst.msk [vmem:[%s655_s1 + $0x19] sm:$0x1] %vm8_vm0, %v206_v57   ;;  %310 = vst.msk [vmem:[%s655_s1 + $0x38] sm:$0x2] %vm8_vm0, %v206_v57  }
  0xae   :  { %311 = vst.msk [vmem:[%s655_s1 + $0x1a] sm:$0x1] %vm8_vm0, %v214_v58   ;;  %312 = vst.msk [vmem:[%s655_s1 + $0x39] sm:$0x2] %vm8_vm0, %v214_v58  }
  0xb0   :  { %v222_v59 = vpop.permute.xlu0 %221  }
  0xb1   :  { %v230_v60 = vpop.permute.xlu1 %229   ;;  %313 = vst.msk [vmem:[%s655_s1 + $0x1b] sm:$0x1] %vm8_vm0, %v222_v59   ;;  %314 = vst.msk [vmem:[%s655_s1 + $0x3a] sm:$0x2] %vm8_vm0, %v222_v59  }
  0xb2   :  { %315 = vst.msk [vmem:[%s655_s1 + $0x1c] sm:$0x1] %vm8_vm0, %v230_v60   ;;  %316 = vst.msk [vmem:[%s655_s1 + $0x3b] sm:$0x2] %vm8_vm0, %v230_v60  }
  0xb4   :  { %v238_v61 = vpop.permute.xlu0 %237  }
  0xb5   :  { %v246_v62 = vpop.permute.xlu1 %245   ;;  %317 = vst.msk [vmem:[%s655_s1 + $0x1d] sm:$0x1] %vm8_vm0, %v238_v61   ;;  %318 = vst.msk [vmem:[%s655_s1 + $0x3c] sm:$0x2] %vm8_vm0, %v238_v61  }
  0xb6   :  { %319 = vst.msk [vmem:[%s655_s1 + $0x1e] sm:$0x1] %vm8_vm0, %v246_v62   ;;  %320 = vst.msk [vmem:[%s655_s1 + $0x3d] sm:$0x2] %vm8_vm0, %v246_v62  }
  0xb8   :  { %v254_v63 = vpop.permute.xlu0 %253  }
  0xb9   :  { %321 = vst.msk [vmem:[%s655_s1 + $0x1f] sm:$0x1] %vm8_vm0, %v254_v63   ;;  %322 = vst.msk [vmem:[%s655_s1 + $0x3e] sm:$0x2] %vm8_vm0, %v254_v63  }

// kernel: vae_residual_block.6
= control target key start
LH: loop header
LB: loop body
LE: loop exit
PB: predicated region body
PF: predicated region fallthrough
CT: control target
= control target key end

     0   :  { %s398_s6 = smov 0   ;;  %s400_s7 = smov 0   ;;  %s475_s0 = inlined_call_operand.vmem [shape: f32[2,16,16,64], index: 0, kind: input, shape index: {}]   ;;  %s476_s1 = inlined_call_operand.vmem [shape: f32[2,2,64], index: 1, kind: output, shape index: {}]  }
   0x1   :  { %s402_s8 = smov 0   ;;  %s404_s9 = smov 0  }
   0x2   :  { %s406_s10 = smov 0  }
   0x3 LB: > { %s20_s11 = sadd.s32 1, %s378_s8  ;;  %s23_s12 = sadd.s32 1, %s382_s9  ;;  %s386_s10 = sphi %s406_s10, %s11_s10   ;;  %s382_s9 = sphi %s404_s9, %s480_s9   ;;  %s378_s8 = sphi %s402_s8, %s479_s8   ;;  %s374_s7 = sphi %s400_s7, %s478_s7   ;;  %s370_s6 = sphi %s398_s6, %s477_s6  }
   0x4   : > { %p21_p0 = scmp.ge.s32.totalorder %s20_s11, 4  ;;  %p298_p1 = scmp.ge.s32.totalorder %s386_s10, 1 }
   0x5   : > { %p107_p2 = scmp.lt.s32.totalorder %s386_s10, 9 }
   0x6   : > { %s482_s11 = smov (%p21_p0, %s20_s11), 0  ;;  %s484_s12 = smov (!%p21_p0, %s23_s12), %s382_s9 }
   0x7   : > { %p108_p3 = pnand %p298_p1, %p107_p2  ;;  %p25_p4 = scmp.ge.s32.totalorder %s484_s12, 2 }
   0x8   : > { %s299_s13 = sshll.u32 (!%p108_p3), %s370_s6, 2  ;;  %p132_p5 = scmp.lt.s32.totalorder (!%p108_p3), %s374_s7, 1 }
   0x9   : > { %s486_s12 = smov (%p25_p4, %s484_s12), 0  ;;  %111 = sbr.rel (%p108_p3) target bundleno = 65 (0x41), region = 24 }
   0xa   : > { %p134_p6 = scmp.lt.s32.totalorder (!%p108_p3), %s299_s13, 15  ;;  %p304_p7 = scmp.ne.s32.totalorder (!%p108_p3), %s370_s6, 0 }
   0xe   : > { %s488_s7 = smov (!%p132_p5, %s374_s7), 1  ;;  %s490_s13 = smov (!%p134_p6, %s299_s13), 15  ;;  %vm154_vm0 = vcmask 523264   ;;  %vm205_vm1 = vcmask 1040384  }
   0xf   : > { %s301_s14 = sshll.u32 %s488_s7, 5  ;;  %s303_s15 = sshll.u32 %s488_s7, 1 }
  0x10   : > { %s300_s16 = sshll.u32 %s490_s13, 1  ;;  %s434_s19 = scalar_lea.vmem %s476_s1, %s303_s15 }
  0x11   : > { %s138_s20 = sadd.s32 %s301_s14, %s300_s16 }
  0x12   : > { %s302_s21 = sshll.u32 %s138_s20, 3 }
  0x13   : > { %s140_s24 = scalar_lea.vmem %s475_s0, %s302_s21 }
  0x14   : > { %v146_v0 = vld [vmem:[%s140_s24] sm:$0xff]  ;;  %v147_v1 = vld [vmem:[%s140_s24 + $0x8] sm:$0xff]  ;;  %v148_v2 = vld [vmem:[%s140_s24 + $0x10] sm:$0xff] }
  0x15   : > { %v149_v3 = vld [vmem:[%s140_s24 + $0x18] sm:$0xff]  ;;  %v155_v4 = vsel %vm154_vm0, %v146_v0, 0.0  ;;  %v156_v5 = vsel %vm154_vm0, %v147_v1, 0.0  ;;  %v158_v6 = vsel %vm154_vm0, %v148_v2, 0.0  ;;  %v176_v7 = vmul.f32 %v146_v0, %v146_v0  ;;  %v150_v8 = vld [vmem:[%s140_s24 + $0x20] sm:$0xff]  ;;  %v151_v13 = vld [vmem:[%s140_s24 + $0x28] sm:$0xff] }
  0x16   : > { %v157_v9 = vadd.f32 %v156_v5, %v155_v4  ;;  %v160_v10 = vsel %vm154_vm0, %v149_v3, 0.0  ;;  %v177_v11 = vmul.f32 %v147_v1, %v147_v1  ;;  %v178_v12 = vmul.f32 %v148_v2, %v148_v2  ;;  %v152_v20 = vld [vmem:[%s140_s24 + $0x30] sm:$0xff]  ;;  %v153_v27 = vld [vmem:[%s140_s24 + $0x38] sm:$0xff] }
  0x17   : > { %v179_v15 = vmul.f32 %v149_v3, %v149_v3  ;;  %v162_v16 = vsel %vm154_vm0, %v150_v8, 0.0  ;;  %v180_v17 = vmul.f32 %v150_v8, %v150_v8  ;;  %v184_v18 = vsel %vm154_vm0, %v176_v7, 0.0 }
  0x18   : > { %v159_v14 = vadd.f32 %v158_v6, %v157_v9  ;;  %v185_v19 = vsel %vm154_vm0, %v177_v11, 0.0  ;;  %v187_v23 = vsel %vm154_vm0, %v178_v12, 0.0  ;;  %v164_v24 = vsel %vm154_vm0, %v151_v13, 0.0 }
  0x19   : > { %v186_v22 = vadd.f32 %v185_v19, %v184_v18  ;;  %v181_v25 = vmul.f32 %v151_v13, %v151_v13  ;;  %v189_v26 = vsel %vm154_vm0, %v179_v15, 0.0  ;;  %v166_v30 = vsel %vm154_vm0, %v152_v20, 0.0 }
  0x1a   : > { %v161_v21 = vadd.f32 %v160_v10, %v159_v14  ;;  %v182_v31 = vmul.f32 %v152_v20, %v152_v20  ;;  %v191_v32 = vsel %vm154_vm0, %v180_v17, 0.0  ;;  %v168_v35 = vsel %vm154_vm0, %v153_v27, 0.0 }
  0x1b   : > { %v188_v29 = vadd.f32 %v187_v23, %v186_v22  ;;  %v183_v36 = vmul.f32 %v153_v27, %v153_v27  ;;  %v193_v37 = vsel %vm154_vm0, %v181_v25, 0.0 }
  0x1c   : > { %v163_v28 = vadd.f32 %v162_v16, %v161_v21  ;;  %v195_v40 = vsel %vm154_vm0, %v182_v31, 0.0 }
  0x1d   : > { %v190_v34 = vadd.f32 %v189_v26, %v188_v29  ;;  %v197_v43 = vsel %vm154_vm0, %v183_v36, 0.0 }
  0x1e   : > { %v165_v33 = vadd.f32 %v164_v24, %v163_v28 }
  0x1f   : > { %v192_v39 = vadd.f32 %v191_v32, %v190_v34 }
  0x20   : > { %v167_v38 = vadd.f32 %v166_v30, %v165_v33 }
  0x21   : > { %v194_v42 = vadd.f32 %v193_v37, %v192_v39 }
  0x22   : > { %v169_v41 = vadd.f32 %v168_v35, %v167_v38 }
  0x23   : > { %v196_v45 = vadd.f32 %v195_v40, %v194_v42 }
  0x24   : > { %v170_v44 = vrot.slane %v169_v41, 4 }
  0x25   : > { %v198_v47 = vadd.f32 %v197_v43, %v196_v45 }
  0x26   : > { %v171_v46 = vadd.f32 %v170_v44, %v169_v41 }
  0x27   : > { %v199_v49 = vrot.slane %v198_v47, 4 }
  0x28   : > { %v172_v48 = vrot.slane %v171_v46, 2 }
  0x29   : > { %v200_v51 = vadd.f32 %v199_v49, %v198_v47 }
  0x2a   : > { %v173_v50 = vadd.f32 %v172_v48, %v171_v46 }
  0x2b   : > { %v201_v53 = vrot.slane %v200_v51, 2 }
  0x2c   : > { %v174_v52 = vrot.slane %v173_v50, 1 }
  0x2d   : > { %v202_v54 = vadd.f32 %v201_v53, %v200_v51 }
  0x2e   : > { %v175_v55 = vadd.f32 %v174_v52, %v173_v50 }
  0x2f   : > { %v203_v56 = vrot.slane %v202_v54, 1  ;;  %210 = sbr.rel (%p304_p7) target bundleno = 54 (0x36), region = 28 }
  0x31   : > { %v204_v57 = vadd.f32 %v203_v56, %v202_v54 }
  0x33   : > { %v206_v58 = vsel %vm205_vm1, %v175_v55, %v204_v57 }
  0x34   : > { %vm211_vm2 = vcmask 517120  }
  0x35   : > { %212 = vst.msk [vmem:[%s434_s19] sm:$0x3] %vm211_vm2, %v206_v58 }
  0x36 PF: > { %p305_p8 = scmp.eq.s32.totalorder %s370_s6, 0 }
  0x38   : > { %216 = sbr.rel (%p305_p8) target bundleno = 65 (0x41), region = 32 }
  0x3d   : > { %v217_v59 = vld [vmem:[%s434_s19] sm:$0x3]  ;;  %vm219_vm3 = vcmask 517120  }
  0x3e   : > { %v218_v60 = vadd.f32 %v217_v59, %v206_v58 }
  0x40   : > { %220 = vst.msk [vmem:[%s434_s19] sm:$0x3] %vm219_vm3, %v218_v60 }
  0x41 PF: > { %s11_s10 = sadd.s32 1, %s386_s10   ;;  %s477_s6 = smov %s378_s8 }
  0x42   : > { %p8_p9 = scmp.ge.s32.totalorder %s11_s10, 10   ;;  %s478_s7 = smov %s382_s9 }
  0x43   : > { %s479_s8 = smov %s482_s11  ;;  %s480_s9 = smov %s486_s12 }
  0x44   :  { %10 = sbr.rel (!%p8_p9) target bundleno = 3 (0x3), region = 62 }

// kernel: vae_residual_block.4
= control target key start
LH: loop header
LB: loop body
LE: loop exit
PB: predicated region body
PF: predicated region fallthrough
CT: control target
= control target key end

     0   :  { %6 = vsyncpa [#allocation3], 0  ;;  %s662_s0 = inlined_call_operand.hbm [shape: f32[2,16,16,32], index: 0, kind: input, shape index: {}]   ;;  %s663_s1 = inlined_call_operand.vmem [shape: f32[2,2,32], index: 1, kind: output, shape index: {}]  }
   0x1   :  { %8 = vsyncpa [#allocation3 + $0x1], 0  ;;  %s506_s6 = smov 0   ;;  %s508_s7 = smov 0  }
   0x2   :  { %s510_s8 = smov 0   ;;  %s512_s9 = smov 0  }
   0x3   :  { %s514_s10 = smov 0   ;;  %s516_s11 = smov 0  }
   0x4   :  { %s518_s12 = smov 0   ;;  %s520_s13 = smov 0  }
   0x5 LB: > { %s307_s14 = sadd.s32 4294967295, %s491_s13   ;;  %s23_s15 = sadd.s32 1, %s483_s11  ;;  %s491_s13 = sphi %s520_s13, %s14_s13   ;;  %s487_s12 = sphi %s518_s12, %s673_s12   ;;  %s483_s11 = sphi %s516_s11, %s672_s11   ;;  %s479_s10 = sphi %s514_s10, %s671_s10   ;;  %s475_s9 = sphi %s512_s9, %s670_s9   ;;  %s471_s8 = sphi %s510_s8, %s669_s8   ;;  %s467_s7 = sphi %s508_s7, %s668_s7   ;;  %s463_s6 = sphi %s506_s6, %s667_s6  }
   0x6   : > { %p24_p0 = scmp.ge.s32.totalorder %s23_s15, 4  ;;  %s26_s16 = sadd.s32 1, %s487_s12 }
   0x7   : > { %s35_s17 = sadd.s32 1, %s471_s8  ;;  %p42_p1 = scmp.ne.s32.totalorder %s471_s8, %s467_s7 }
   0x8   : > { %s675_s15 = smov (%p24_p0, %s23_s15), 0  ;;  %s677_s16 = smov (!%p24_p0, %s26_s16), %s487_s12 }
   0x9   : > { %s31_s18 = ssub.s32 %s483_s11, %s675_s15  ;;  %p43_p2 = scmp.eq.s32.totalorder %s491_s13, 0 }
   0xa   : > { %p28_p3 = scmp.ge.s32.totalorder %s677_s16, 2  ;;  %p48_p4 = scmp.ne.s32.totalorder %s467_s7, %s463_s6 }
   0xb   : > { %p557_p5 = por %p43_p2, %p42_p1  ;;  %p49_p6 = scmp.eq.s32.totalorder %s307_s14, 0 }
   0xc   : > { %s679_s16 = smov (%p28_p3, %s677_s16), 0  ;;  %p330_p8 = scmp.lt.s32.totalorder %s491_s13, 8 }
   0xd   : > { %p563_p7 = por %p49_p6, %p48_p4  ;;  %s30_s21 = ssub.s32 %s487_s12, %s679_s16 }
   0xe   : > { %s32_s22 = sor.u32 %s31_s18, %s30_s21  ;;  %s98_s23 = sand.u32 1, %s471_s8  }
   0xf   : > { %p33_p9 = scmp.eq.s32.totalorder %s32_s22, 0  ;;  %s311_s24 = sshll.u32 %s98_s23, 6 }
  0x10   : > { %s323_s25 = sshll.u32 %s483_s11, 3  ;;  %s314_s27 = sshll.u32 %s487_s12, 5 }
  0x11   : > { %s573_s26 = scalar_select %p33_p9, %s471_s8, %s35_s17  }
  0x12   : > { %s109_s28 = sadd.s32 %s323_s25, %s314_s27  ;;  %s102_s29 = scalar_lea.vmem [#allocation2], %s311_s24 }
  0x13   : > { %s112_s30 = sshll.u32 %s102_s29, 4  ;;  %s315_s2 = sshll.u32 %s109_s28, 7  ;;  %s113_s30 = int_to_ptr.vmem [resolvable:$true] %s112_s30 }
  0x14   : > { %s111_s5 = scalar_lea.hbm %s662_s0, %s315_s2  ;;  %p583_p10 = pnand %p330_p8, %p557_p5 }
  0x15   : > { %p316_p11 = scmp.ge.s32.totalorder %s491_s13, 1  ;;  %s99_s14 = scalar_lea.sflag [#allocation3], %s98_s23 }
  0x16   : > { %p399_p12 = pneg %p583_p10  ;;  %s410_s17 = scalar_lea.vmem %s113_s30, 1024 }
  0x17   : > { %p411_p13 = scmp.ne.s32.totalorder %s113_s30, %s410_s17  ;;  %s493_s18 = smov [#allocation2]  }
  0x18   : > { %s415_s21 = sshll.u32 %s493_s18, 4  ;;  %s416_s21 = int_to_ptr.vmem [resolvable:$false] %s415_s21 }
  0x19   : > { %p413_p0 = pnand %p411_p13, %p399_p12  ;;  %s417_s22 = scalar_lea.vmem %s416_s21, 2048 }
  0x1a   : > { %p418_p2 = scmp.lt.s32.totalorder %s113_s30, %s416_s21  ;;  %p419_p3 = scmp.lt.s32.totalorder %s417_s22, %s410_s17 }
  0x1b   : > { %p414_p1 = pneg %p413_p0 }
  0x1c   : > { %p420_p4 = por %p419_p3, %p418_p2 }
  0x1e   : > { %p421_p5 = pnand %p420_p4, %p414_p1 }
  0x20   : > { %424 = shalt.err (!%p421_p5)
}
  0x21   : > { %s494_s19 = smov 128   ;;  %s495_s23 = smov 8  }
  0x22   : > { %329 = dma.hbm_to_vmem [thread:$0]  (!%p583_p10), %s111_s5, 1024, %s113_s30, %s99_s14, %s494_s19, %s494_s19, %s495_s23  }
  0x23   : > { %p120_p6 = scmp.lt.s32.totalorder %s491_s13, 9 }
  0x25   : > { %p121_p8 = pnand %p316_p11, %p120_p6 }
  0x26   : > { %s126_s24 = sand.u32 (!%p121_p8), 1, %s467_s7  }
  0x27   : > { %124 = sbr.rel (%p121_p8) target bundleno = 90 (0x5a), region = 24  ;;  %s317_s25 = sshll.u32 (!%p121_p8), %s126_s24, 6 }
  0x28   : > { %s127_s27 = scalar_lea.sflag (!%p121_p8), [#allocation3], %s126_s24  ;;  %s596_s28 = scalar_lea.vmem (!%p121_p8), [#allocation2], %s317_s25 }
  0x2c   : > { %458 = dma.done.wait (%p563_p7), %s127_s27, 1024  }
  0x2d   : > { %460 = vsyncadd (%p563_p7), %s127_s27, 4294966272  ;;  %p149_p9 = scmp.lt.s32.totalorder %s479_s10, 1  ;;  %vm161_vm0 = vcmask 261120   ;;  %v153_v0 = vld [vmem:[%s596_s28] sm:$0xff]  ;;  %v154_v1 = vld [vmem:[%s596_s28 + $0x8] sm:$0xff]  ;;  %vm212_vm1 = vcmask 1040384  }
  0x2e   : > { %v155_v2 = vld [vmem:[%s596_s28 + $0x10] sm:$0xff]  ;;  %v156_v3 = vld [vmem:[%s596_s28 + $0x18] sm:$0xff]  ;;  %v162_v4 = vsel %vm161_vm0, %v153_v0, 0.0  ;;  %v163_v5 = vsel %vm161_vm0, %v154_v1, 0.0  ;;  %v183_v7 = vmul.f32 %v153_v0, %v153_v0  ;;  %v157_v8 = vld [vmem:[%s596_s28 + $0x20] sm:$0xff]  ;;  %v184_v11 = vmul.f32 %v154_v1, %v154_v1  ;;  %p319_p7 = scmp.ne.s32.totalorder %s475_s9, 0 }
  0x2f   : > { %s681_s10 = smov (!%p149_p9, %s479_s10), 1  ;;  %v165_v6 = vsel %vm161_vm0, %v155_v2, 0.0  ;;  %v164_v9 = vadd.f32 %v163_v5, %v162_v4  ;;  %v167_v10 = vsel %vm161_vm0, %v156_v3, 0.0  ;;  %v185_v12 = vmul.f32 %v155_v2, %v155_v2  ;;  %v158_v13 = vld [vmem:[%s596_s28 + $0x28] sm:$0xff]  ;;  %v159_v20 = vld [vmem:[%s596_s28 + $0x30] sm:$0xff]  ;;  %v160_v27 = vld [vmem:[%s596_s28 + $0x38] sm:$0xff] }
  0x30   : > { %s318_s29 = sshll.u32 %s681_s10, 1  ;;  %v186_v15 = vmul.f32 %v156_v3, %v156_v3  ;;  %v169_v16 = vsel %vm161_vm0, %v157_v8, 0.0  ;;  %v187_v17 = vmul.f32 %v157_v8, %v157_v8  ;;  %v191_v18 = vsel %vm161_vm0, %v183_v7, 0.0 }
  0x31   : > { %s607_s3 = scalar_lea.vmem %s663_s1, %s318_s29  ;;  %v166_v14 = vadd.f32 %v165_v6, %v164_v9  ;;  %v192_v19 = vsel %vm161_vm0, %v184_v11, 0.0  ;;  %v194_v23 = vsel %vm161_vm0, %v185_v12, 0.0  ;;  %v171_v24 = vsel %vm161_vm0, %v158_v13, 0.0 }
  0x32   : > { %v193_v22 = vadd.f32 %v192_v19, %v191_v18  ;;  %v188_v25 = vmul.f32 %v158_v13, %v158_v13  ;;  %v196_v26 = vsel %vm161_vm0, %v186_v15, 0.0  ;;  %v173_v30 = vsel %vm161_vm0, %v159_v20, 0.0 }
  0x33   : > { %v168_v21 = vadd.f32 %v167_v10, %v166_v14  ;;  %v189_v31 = vmul.f32 %v159_v20, %v159_v20  ;;  %v198_v32 = vsel %vm161_vm0, %v187_v17, 0.0  ;;  %v175_v35 = vsel %vm161_vm0, %v160_v27, 0.0 }
  0x34   : > { %v195_v29 = vadd.f32 %v194_v23, %v193_v22  ;;  %v190_v36 = vmul.f32 %v160_v27, %v160_v27  ;;  %v200_v37 = vsel %vm161_vm0, %v188_v25, 0.0 }
  0x35   : > { %v170_v28 = vadd.f32 %v169_v16, %v168_v21  ;;  %v202_v40 = vsel %vm161_vm0, %v189_v31, 0.0 }
  0x36   : > { %v197_v34 = vadd.f32 %v196_v26, %v195_v29  ;;  %v204_v43 = vsel %vm161_vm0, %v190_v36, 0.0 }
  0x37   : > { %v172_v33 = vadd.f32 %v171_v24, %v170_v28 }
  0x38   : > { %v199_v39 = vadd.f32 %v198_v32, %v197_v34 }
  0x39   : > { %v174_v38 = vadd.f32 %v173_v30, %v172_v33 }
  0x3a   : > { %v201_v42 = vadd.f32 %v200_v37, %v199_v39 }
  0x3b   : > { %v176_v41 = vadd.f32 %v175_v35, %v174_v38 }
  0x3c   : > { %v203_v45 = vadd.f32 %v202_v40, %v201_v42 }
  0x3d   : > { %v177_v44 = vrot.slane %v176_v41, 4 }
  0x3e   : > { %v205_v47 = vadd.f32 %v204_v43, %v203_v45 }
  0x3f   : > { %v178_v46 = vadd.f32 %v177_v44, %v176_v41 }
  0x40   : > { %v206_v49 = vrot.slane %v205_v47, 4 }
  0x41   : > { %v179_v48 = vrot.slane %v178_v46, 2 }
  0x42   : > { %v207_v51 = vadd.f32 %v206_v49, %v205_v47 }
  0x43   : > { %v180_v50 = vadd.f32 %v179_v48, %v178_v46 }
  0x44   : > { %v208_v53 = vrot.slane %v207_v51, 2 }
  0x45   : > { %v181_v52 = vrot.slane %v180_v50, 1 }
  0x46   : > { %v209_v54 = vadd.f32 %v208_v53, %v207_v51 }
  0x47   : > { %v182_v55 = vadd.f32 %v181_v52, %v180_v50 }
  0x48   : > { %v210_v56 = vrot.slane %v209_v54, 1  ;;  %217 = sbr.rel (%p319_p7) target bundleno = 79 (0x4f), region = 32 }
  0x4a   : > { %v211_v57 = vadd.f32 %v210_v56, %v209_v54 }
  0x4c   : > { %v213_v58 = vsel %vm212_vm1, %v182_v55, %v211_v57 }
  0x4d   : > { %vm218_vm2 = vcmask 254976  }
  0x4e   : > { %219 = vst.msk [vmem:[%s607_s3] sm:$0x3] %vm218_vm2, %v213_v58 }
  0x4f PF: > { %p320_p10 = scmp.eq.s32.totalorder %s475_s9, 0 }
  0x51   : > { %223 = sbr.rel (%p320_p10) target bundleno = 90 (0x5a), region = 36 }
  0x56   : > { %v224_v59 = vld [vmem:[%s607_s3] sm:$0x3]  ;;  %vm226_vm3 = vcmask 254976  }
  0x57   : > { %v225_v60 = vadd.f32 %v224_v59, %v213_v58 }
  0x59   : > { %227 = vst.msk [vmem:[%s607_s3] sm:$0x3] %vm226_vm3, %v225_v60 }
  0x5a PF: > { %s14_s13 = sadd.s32 1, %s491_s13   ;;  %s667_s6 = smov %s467_s7 }
  0x5b   : > { %p11_p11 = scmp.ge.s32.totalorder %s14_s13, 10   ;;  %s668_s7 = smov %s471_s8 }
  0x5c   : > { %s669_s8 = smov %s573_s26  ;;  %s670_s9 = smov %s483_s11 }
  0x5d   : > { %s671_s10 = smov %s487_s12  ;;  %s672_s11 = smov %s675_s15 }
  0x5e   : > { %s673_s12 = smov %s679_s16  ;;  %13 = sbr.rel (!%p11_p11) target bundleno = 5 (0x5), region = 72 }
  0x63   :  { %247 = vsyncpa [#allocation3], 1 }
  0x64   :  { %249 = vsyncpa [#allocation3 + $0x1], 1 }

// kernel: vae_residual_block.5
= control target key start
LH: loop header
LB: loop body
LE: loop exit
PB: predicated region body
PF: predicated region fallthrough
CT: control target
= control target key end

     0   :  { %s2424_s21 = smov 0   ;;  %s2426_s22 = smov 0   ;;  %s2950_s0 = inlined_call_operand.vmem [shape: f32[2,2,32], index: 0, kind: input, shape index: {}]   ;;  %s2951_s1 = inlined_call_operand.vmem [shape: f32[2,16,16,32], index: 1, kind: input, shape index: {}, may-alias: {1,2,3}]   ;;  %s2952_s2 = inlined_call_operand.vmem [shape: f32[2,16,16,32], index: 2, kind: input, shape index: {}, may-alias: {1,2,3}]   ;;  %s2953_s3 = inlined_call_operand.vmem [shape: f32[2,16,16,32], index: 3, kind: input, shape index: {}, may-alias: {1,2,3}]   ;;  %s2954_s4 = inlined_call_operand.vmem [shape: bf16[3,3,32,64], index: 4, kind: input, shape index: {}]   ;;  %s2955_s5 = inlined_call_operand.vmem [shape: f32[1,64], index: 5, kind: input, shape index: {}]   ;;  %s2956_s6 = inlined_call_operand.vmem [shape: f32[2,16,16,64], index: 6, kind: output, shape index: {}]  }
   0x1   :  { %s2428_s23 = smov 0   ;;  %s2430_s24 = smov 0  }
   0x2   :  { %s2432_s25 = smov 0  }
   0x3 LB: > { %s25_s26 = sadd.s32 1, %s2379_s23  ;;  %s28_s27 = sadd.s32 1, %s2383_s24  ;;  %s2387_s25 = sphi %s2432_s25, %s16_s25   ;;  %s2383_s24 = sphi %s2430_s24, %s2984_s24   ;;  %s2379_s23 = sphi %s2428_s23, %s2983_s23   ;;  %s2375_s22 = sphi %s2426_s22, %s2982_s22   ;;  %s2371_s21 = sphi %s2424_s21, %s2981_s21  }
   0x4   : > { %p26_p0 = scmp.ge.s32.totalorder %s25_s26, 4  ;;  %p1941_p1 = scmp.ge.s32.totalorder %s2387_s25, 1 }
   0x5   : > { %p307_p2 = scmp.lt.s32.totalorder %s2387_s25, 9 }
   0x6   : > { %s2986_s26 = smov (%p26_p0, %s25_s26), 0  ;;  %s2988_s27 = smov (!%p26_p0, %s28_s27), %s2383_s24 }
   0x7   : > { %p308_p3 = pnand %p1941_p1, %p307_p2  ;;  %p30_p4 = scmp.ge.s32.totalorder %s2988_s27, 2 }
   0x9   : > { %s2990_s27 = smov (%p30_p4, %s2988_s27), 0  ;;  %311 = sbr.rel (%p308_p3) target bundleno = 346 (0x15a), region = 44 }
   0xe   : > { %v2283_v0 = vld [vmem:[%s2954_s4 + $0x8] sm:$0xff]   ;;  %p377_p5 = scmp.lt.s32.totalorder %s2375_s22, 1  ;;  %v447_v1 = vlaneseq  ;;  %v2284_v2 = vld [vmem:[%s2954_s4] sm:$0xff]   ;;  %s2463_s8 = sshll.u32 %s2371_s21, 2  ;;  %v2474_v4 = vld [vmem:[%s2954_s4 + $0x18] sm:$0xff]   ;;  %vm770_vm0 = vcmask 1040384  }
   0xf   : > { %2239 = vmatprep.subr.bf16.mxu1 %v2283_v0  ;;  %2131 = vmatprep.subr.bf16.mxu0 %v2283_v0  ;;  %p401_p6 = scmp.lt.s32.totalorder %s2463_s8, 15  ;;  %s1944_s9 = sadd.s32 4294967295, %s2463_s8  ;;  %v2483_v6 = vld [vmem:[%s2954_s4 + $0x28] sm:$0xff]   ;;  %vm907_vm3 = vcmask 261120   ;;  %vm843_vm8 = vcmask 1046528   ;;  %vm1769_vm15 = vcmask 523264  }
  0x10   : > { %s2992_s22 = smov (!%p377_p5, %s2375_s22), 1  ;;  %v2465_v3 = vshrl.u32 %v447_v1, 7  ;;  %2241 = vmatpush3.bf16.msra.mxu1 %v2283_v0  ;;  %2132 = vmatpush3.bf16.msra.mxu0 %v2283_v0  ;;  %p383_p7 = scmp.gt.s32.totalorder %s1944_s9, 0 }
  0x11   : > { %2240 = vmatprep.subr.bf16.mxu1 %v2284_v2  ;;  %s1942_s10 = sshll.u32 %s2992_s22, 1  ;;  %s2469_s11 = sshll.u32 %s2992_s22, 5  ;;  %2133 = vmatprep.subr.bf16.mxu0 %v2284_v2 }
  0x12   : > { %s380_s16 = scalar_lea.vmem %s2950_s0, %s1942_s10  ;;  %v449_v5 = vsub.s32 0, %v2465_v3  ;;  %v461_v8 = vsub.s32 1, %v2465_v3  ;;  %p1945_p8 = scmp.lt.s32.totalorder %s1944_s9, 15 }
  0x13   : > { %s402_s19 = scalar_select %p401_p6, %s2463_s8, 15  ;;  %v438_v7 = vld [vmem:[%s380_s16] sm:$0x3] }
  0x14   : > { %2242 = vmatpush3.bf16.msra.mxu1 %v2284_v2  ;;  %2134 = vmatpush3.bf16.msra.mxu0 %v2284_v2  ;;  %s384_s20 = scalar_select %p383_p7, %s1944_s9, 0  ;;  %v2492_v9 = vrot.slane %v438_v7, %v449_v5  ;;  %v2502_v10 = vrot.slane %v438_v7, %v461_v8  ;;  %v581_v2 = vadd.s32 24, %v2465_v3  ;;  %v583_v8 = vadd.s32 40, %v2465_v3 }
  0x15   : > { %s1954_s22 = sshll.u32 %s402_s19, 1  ;;  %2143 = vmatprep.subr.bf16.mxu1 %v2474_v4  ;;  %2155 = vmatprep.subr.bf16.mxu0 %v2483_v6  ;;  %s2076_s17 = sadd.s32 4, %s2463_s8 }
  0x16   : > { %s2490_s28 = sadd.s32 %s1954_s22, %s2469_s11  ;;  %s2994_s20 = smov (!%p1945_p8, %s384_s20), 15 }
  0x17   : > { %s1956_s29 = sshll.u32 %s2490_s28, 3  ;;  %s1950_s9 = sshll.u32 %s2994_s20, 1 }
  0x18   : > { %s2500_s10 = scalar_lea.vmem %s2952_s2, %s1956_s29  ;;  %s391_s12 = sadd.s32 %s2469_s11, %s1950_s9 }
  0x19   : > { %v440_v11 = vld [vmem:[%s2500_s10 + $0x8] sm:$0xff]  ;;  %v441_v12 = vld [vmem:[%s2500_s10 + $0x10] sm:$0xff]  ;;  %v442_v13 = vld [vmem:[%s2500_s10 + $0x18] sm:$0xff]  ;;  %s1952_s13 = sshll.u32 %s391_s12, 3  ;;  %p411_p9 = scmp.lt.s32.totalorder %s2076_s17, 15 }
  0x1a   : > { %v452_v14 = vmul.f32 %v2492_v9, %v440_v11  ;;  %v453_v15 = vmul.f32 %v2492_v9, %v441_v12  ;;  %v454_v16 = vmul.f32 %v2492_v9, %v442_v13  ;;  %v443_v17 = vld [vmem:[%s2500_s10 + $0x20] sm:$0xff]  ;;  %v444_v18 = vld [vmem:[%s2500_s10 + $0x28] sm:$0xff]  ;;  %s393_s16 = scalar_lea.vmem %s2951_s1, %s1952_s13  ;;  %v445_v38 = vld [vmem:[%s2500_s10 + $0x30] sm:$0xff]  ;;  %v585_v11 = vadd.s32 56, %v2465_v3  ;;  %p567_p10 = scmp.eq.s32.totalorder %s2371_s21, 0 }
  0x1b   : > { %v439_v19 = vld [vmem:[%s2500_s10] sm:$0xff]  ;;  %v455_v20 = vmul.f32 %v2492_v9, %v443_v17  ;;  %v456_v21 = vmul.f32 %v2492_v9, %v444_v18  ;;  %v528_v34 = vld [vmem:[%s393_s16 + $0x8] sm:$0xff]  ;;  %v457_v40 = vmul.f32 %v2492_v9, %v445_v38  ;;  %v446_v43 = vld [vmem:[%s2500_s10 + $0x38] sm:$0xff]  ;;  %s2996_s17 = smov (!%p411_p9, %s2076_s17), 15  ;;  %v579_v13 = vadd.s32 8, %v2465_v3  ;;  %p572_p11 = scmp.eq.s32.totalorder %s2371_s21, 3 }
  0x1c   : > { %v451_v22 = vmul.f32 %v2492_v9, %v439_v19  ;;  %v2517_v23 = vadd.f32 %v2502_v10, %v452_v14  ;;  %v2520_v24 = vadd.f32 %v2502_v10, %v453_v15  ;;  %v2523_v25 = vadd.f32 %v2502_v10, %v454_v16  ;;  %v527_v33 = vld [vmem:[%s393_s16] sm:$0xff]  ;;  %s2998_s17 = smov (!%p411_p9, %s2996_s17), 15  ;;  %s2907_s7 = scalar_lea.vmem %s2956_s6, %s1956_s29 }
  0x1d   : > { %v2527_v26 = vadd.f32 %v2502_v10, %v455_v20  ;;  %v2530_v27 = vadd.f32 %v2502_v10, %v456_v21  ;;  %v529_v36 = vmul.f32 %v527_v33, %v2492_v9  ;;  %v530_v37 = vmul.f32 %v528_v34, %v2492_v9  ;;  %s1961_s18 = sshll.u32 %s2998_s17, 1 }
  0x1e   : > { %v2533_v28 = vadd.f32 %v2502_v10, %v451_v22  ;;  %v1969_v29 = vmul.f32 -1.442695, %v2517_v23  ;;  %v1970_v30 = vmul.f32 -1.442695, %v2520_v24  ;;  %v1971_v31 = vmul.f32 -1.442695, %v2523_v25  ;;  %s419_s8 = sadd.s32 %s1961_s18, %s2469_s11 }
  0x1f   : > { %v1972_v32 = vmul.f32 -1.442695, %v2527_v26  ;;  %v1973_v35 = vmul.f32 -1.442695, %v2530_v27  ;;  %v2549_v41 = vadd.f32 %v529_v36, %v2502_v10  ;;  %v2552_v42 = vadd.f32 %v530_v37, %v2502_v10  ;;  %s1963_s19 = sshll.u32 %s419_s8, 3 }
  0x20   : > { %2301 = vpow2.f32 %v1969_v29  ;;  %v1968_v39 = vmul.f32 -1.442695, %v2533_v28  ;;  %v2556_v44 = vadd.f32 %v2502_v10, %v457_v40  ;;  %v458_v45 = vmul.f32 %v2492_v9, %v446_v43  ;;  %s421_s30 = scalar_lea.vmem %s2953_s3, %s1963_s19 }
  0x21   : > { %2303 = vpow2.f32 %v1970_v30  ;;  %v1976_v46 = vmul.f32 -1.442695, %v2549_v41  ;;  %v1977_v47 = vmul.f32 -1.442695, %v2552_v42  ;;  %v547_v62 = vld [vmem:[%s421_s30] sm:$0xff]  ;;  %v580_v15 = vadd.s32 16, %v2465_v3 }
  0x22   : > { %2305 = vpow2.f32 %v1971_v31  ;;  %v1974_v48 = vmul.f32 -1.442695, %v2556_v44  ;;  %v2564_v49 = vadd.f32 %v2502_v10, %v458_v45  ;;  %v549_v7 = vmul.f32 %v547_v62, %v2492_v9  ;;  %v548_v16 = vld [vmem:[%s421_s30 + $0x8] sm:$0xff]  ;;  %s2583_s11 = scalar_select %p567_p10, 0.0, 1.0 }
  0x23   : > { %2307 = vpow2.f32 %v1972_v32  ;;  %v615_v18 = vand.u32 15, %v581_v2  ;;  %v629_v19 = vand.u32 15, %v583_v8  ;;  %v643_v20 = vand.u32 15, %v585_v11  ;;  %s2782_s9 = scalar_select %p572_p11, 0.0, 1.0 }
  0x24   : > { %2309 = vpow2.f32 %v1973_v35  ;;  %v1975_v50 = vmul.f32 -1.442695, %v2564_v49  ;;  %v2579_v17 = vadd.f32 %v549_v7, %v2502_v10  ;;  %v582_v21 = vadd.s32 32, %v2465_v3 }
  0x25   : > { %2311 = vpow2.f32 %v1968_v39  ;;  %v601_v22 = vand.u32 15, %v579_v13  ;;  %v550_v30 = vmul.f32 %v548_v16, %v2492_v9  ;;  %v594_v31 = vand.u32 15, %v2465_v3 }
  0x26   : > { %2313 = vpow2.f32 %v1976_v46  ;;  %v608_v32 = vand.u32 15, %v580_v15  ;;  %v584_v34 = vadd.s32 48, %v2465_v3  ;;  %v1978_v35 = vmul.f32 -1.442695, %v2579_v17 }
  0x27   : > { %2315 = vpow2.f32 %v1977_v47  ;;  %vm2588_vm1 = vcmp.eq.s32.totalorder %v615_v18, 15  ;;  %vm2592_vm2 = vcmp.eq.s32.totalorder %v629_v19, 15  ;;  %vm2596_vm4 = vcmp.eq.s32.totalorder %v643_v20, 15 }
  0x28   : > { %2317 = vpow2.f32 %v1974_v48  ;;  %v622_v39 = vand.u32 15, %v582_v21  ;;  %vm2603_vm5 = vcmp.eq.s32.totalorder %v601_v22, 15  ;;  %v2608_v46 = vadd.f32 %v550_v30, %v2502_v10 }
  0x29   : > { %2319 = vpow2.f32 %v1975_v50  ;;  %v569_v50 = vstv %s2583_s11  ;;  %vm2614_vm6 = vcmp.eq.s32.totalorder %v594_v31, 0  ;;  %vm2618_vm7 = vcmp.eq.s32.totalorder %v608_v32, 0 }
  0x2a   : > { %vm2632_vm9 = vcmp.eq.s32.totalorder %v622_v39, 0  ;;  %v1979_v62 = vmul.f32 -1.442695, %v2608_v46  ;;  %v586_v11 = vadd.s32 64, %v2465_v3 }
  0x2c   : > { %v650_v45 = vand.u32 15, %v586_v11 }
  0x2d   : > { %v2302_v51 = vpop.eup %2301 }
  0x2e   : > { %v2304_v52 = vpop.eup %2303  ;;  %v496_v53 = vadd.f32 1.0, %v2302_v51  ;;  %v2289_v51 = vld [vmem:[%s2954_s4 + $0x38] sm:$0xff]   ;;  %vm2712_vm11 = vcmp.eq.s32.totalorder %v650_v45, 0 }
  0x2f   : > { %v2306_v54 = vpop.eup %2305  ;;  %v497_v55 = vadd.f32 1.0, %v2304_v52 }
  0x30   : > { %v2308_v56 = vpop.eup %2307  ;;  %v498_v57 = vadd.f32 1.0, %v2306_v54  ;;  %2321 = vrcp.f32 %v496_v53 }
  0x31   : > { %v2310_v58 = vpop.eup %2309  ;;  %2323 = vrcp.f32 %v497_v55  ;;  %v499_v59 = vadd.f32 1.0, %v2308_v56 }
  0x32   : > { %v2312_v60 = vpop.eup %2311  ;;  %2325 = vrcp.f32 %v498_v57  ;;  %v500_v61 = vadd.f32 1.0, %v2310_v58  ;;  %v2288_v58 = vld [vmem:[%s2954_s4 + $0x20] sm:$0xff]  }
  0x33   : > { %v2314_v63 = vpop.eup %2313  ;;  %2327 = vrcp.f32 %v499_v59  ;;  %v495_v0 = vadd.f32 1.0, %v2312_v60 }
  0x34   : > { %v2316_v1 = vpop.eup %2315  ;;  %2329 = vrcp.f32 %v500_v61  ;;  %v539_v5 = vadd.f32 1.0, %v2314_v63 }
  0x35   : > { %v540_v12 = vadd.f32 1.0, %v2316_v1  ;;  %2331 = vrcp.f32 %v495_v0  ;;  %v2318_v14 = vpop.eup %2317 }
  0x36   : > { %2333 = vrcp.f32 %v539_v5  ;;  %v501_v29 = vadd.f32 1.0, %v2318_v14  ;;  %v2320_v33 = vpop.eup %2319 }
  0x37   : > { %2335 = vrcp.f32 %v540_v12  ;;  %v502_v61 = vadd.f32 1.0, %v2320_v33 }
  0x38   : > { %2337 = vrcp.f32 %v501_v29 }
  0x39   : > { %2339 = vpow2.f32 %v1978_v35 }
  0x3a   : > { %2341 = vpow2.f32 %v1979_v62 }
  0x3b   : > { %2343 = vrcp.f32 %v502_v61 }
  0x3d   : > { %v2322_v36 = vpop.eup %2321 }
  0x3e   : > { %v2324_v40 = vpop.eup %2323  ;;  %v2601_v43 = vmul.f32 %v2322_v36, %v2517_v23 }
  0x3f   : > { %v2326_v47 = vpop.eup %2325  ;;  %v2611_v48 = vmul.f32 %v2324_v40, %v2520_v24  ;;  %v636_v24 = vand.u32 15, %v584_v34 }
  0x40   : > { %v2328_v52 = vpop.eup %2327  ;;  %v2623_v53 = vmul.f32 %v2326_v47, %v2523_v25  ;;  %v749_v10 = vsel %vm2588_vm1, 0.0, %v2601_v43  ;;  %v849_v23 = vrot.slane %v2601_v43, 1 }
  0x41   : > { %v2330_v54 = vpop.eup %2329  ;;  %v776_v55 = vrot.slane %v749_v10, 7  ;;  %v778_v56 = vrot.slane %v2611_v48, 7  ;;  %v2630_v57 = vmul.f32 %v2328_v52, %v2527_v26  ;;  %vm2650_vm10 = vcmp.eq.s32.totalorder %v636_v24, 0 }
  0x42   : > { %v2332_v25 = vpop.eup %2331  ;;  %v751_v59 = vsel %vm2592_vm2, 0.0, %v2623_v53  ;;  %v2640_v60 = vmul.f32 %v2330_v54, %v2530_v27  ;;  %v823_v30 = vsel %vm2632_vm9, 0.0, %v2611_v48  ;;  %v2710_v62 = vpack.c.bf16 %v2623_v53, %v2611_v48  ;;  %v2293_v27 = vld [vmem:[%s2954_s4 + $0x58] sm:$0xff]  }
  0x43   : > { %v2334_v63 = vpop.eup %2333  ;;  %v779_v0 = vsel %vm770_vm0, %v776_v55, %v778_v56  ;;  %v780_v26 = vrot.slane %v751_v59, 7  ;;  %v782_v1 = vrot.slane %v2630_v57, 7  ;;  %v519_v2 = vmul.f32 %v2332_v25, %v2533_v28 }
  0x44   : > { %v2336_v5 = vpop.eup %2335  ;;  %v753_v7 = vsel %vm2596_vm4, 0.0, %v2640_v60  ;;  %v545_v8 = vmul.f32 %v2334_v63, %v2549_v41  ;;  %v825_v40 = vsel %vm2650_vm10, 0.0, %v2630_v57  ;;  %v853_v25 = vrot.slane %v2623_v53, 1  ;;  %v2291_v63 = vld [vmem:[%s2954_s4 + $0x30] sm:$0xff]  }
  0x45   : > { %v781_v12 = vsel %vm770_vm0, %v778_v56, %v780_v26  ;;  %v783_v13 = vsel %vm770_vm0, %v780_v26, %v782_v1  ;;  %v2657_v14 = vrot.slane %v753_v7, 7  ;;  %v546_v28 = vmul.f32 %v2336_v5, %v2552_v42  ;;  %v2286_v42 = vld [vmem:[%s2954_s4 + $0x10] sm:$0xff]   ;;  %v2338_v9 = vpop.eup %2337  ;;  %v2290_v26 = vld [vmem:[%s2954_s4 + $0x48] sm:$0xff]  }
  0x46   : > { %v2660_v15 = vpack.c.bf16 %v781_v12, %v779_v0  ;;  %v570_v16 = vmul.f32 %v569_v50, %v545_v8  ;;  %v774_v18 = vrot.slane %v519_v2, 7  ;;  %v821_v20 = vsel %vm2618_vm7, 0.0, %v519_v2  ;;  %v2340_v52 = vpop.eup %2339 }
  0x47   : > { %v785_v41 = vsel %vm770_vm0, %v782_v1, %v2657_v14  ;;  %v571_v19 = vmul.f32 %v569_v50, %v546_v28  ;;  %v847_v38 = vrot.slane %v821_v20, 1  ;;  %v2698_v56 = vpack.c.bf16 %v2601_v43, %v519_v2  ;;  %v2342_v5 = vpop.eup %2341  ;;  %v2294_v20 = vld [vmem:[%s2954_s4 + $0x68] sm:$0xff]  }
  0x48   : > { %2139 = vmatprep.mubr.msk.bf16.mxu1 %vm907_vm3, %v2660_v15  ;;  %v2668_v21 = vpack.c.bf16 %v785_v41, %v783_v13  ;;  %v771_v22 = vrot.slane %v570_v16, 7  ;;  %v819_v29 = vsel %vm2614_vm6, 0.0, %v570_v16  ;;  %v777_v37 = vsel %vm770_vm0, %v774_v18, %v776_v55  ;;  %v2344_v7 = vpop.eup %2343 }
  0x49   : > { %v747_v31 = vsel %vm2603_vm5, 0.0, %v571_v19  ;;  %v993_v32 = vpack.c.bf16 %v571_v19, %v570_v16  ;;  %v844_v33 = vrot.slane %v819_v29, 1  ;;  %v845_v34 = vrot.slane %v571_v19, 1 }
  0x4a   : > { %2140 = vmatmul.mubr.msk.bf16.vlgmr.msra.gmra.mxu1 %vm907_vm3, %v2668_v21  ;;  %v772_v35 = vrot.slane %v747_v31, 7  ;;  %v806_v36 = vsel %vm770_vm0, 0.0, %v771_v22  ;;  %v851_v55 = vrot.slane %v823_v30, 1  ;;  %v855_v59 = vrot.slane %v825_v40, 1  ;;  %v2295_v30 = vld [vmem:[%s2954_s4 + $0x50] sm:$0xff]  }
  0x4b   : > { %2144 = vmatpush3.bf16.msra.mxu1 %v2474_v4  ;;  %2147 = vmatprep.mubr.msk.bf16.mxu1 %vm907_vm3, %v993_v32  ;;  %v846_v39 = vsel %vm843_vm8, %v844_v33, %v845_v34  ;;  %v848_v4 = vsel %vm843_vm8, %v845_v34, %v847_v38  ;;  %v2705_v61 = vmul.f32 %v2338_v9, %v2556_v44  ;;  %v559_v44 = vadd.f32 1.0, %v2340_v52 }
  0x4c   : > { %v773_v47 = vsel %vm770_vm0, %v771_v22, %v772_v35  ;;  %2145 = vmatprep.subr.bf16.mxu1 %v2286_v42  ;;  %v775_v50 = vsel %vm770_vm0, %v772_v35, %v774_v18  ;;  %v1099_v54 = vpack.c.bf16 %v848_v4, %v846_v39  ;;  %v850_v0 = vsel %vm843_vm8, %v847_v38, %v849_v23  ;;  %v2292_v18 = vld [vmem:[%s2954_s4 + $0x40] sm:$0xff]   ;;  %v2297_v35 = vld [vmem:[%s2954_s4 + $0x78] sm:$0xff]  }
  0x4d   : > { %v887_v10 = vpack.c.bf16 %v773_v47, %v806_v36  ;;  %v888_v24 = vpack.c.bf16 %v777_v37, %v775_v50  ;;  %v852_v48 = vsel %vm843_vm8, %v849_v23, %v851_v55  ;;  %v587_v53 = vadd.s32 72, %v2465_v3  ;;  %v2296_v39 = vld [vmem:[%s2954_s4 + $0x60] sm:$0xff]  }
  0x4e   : > { %v854_v1 = vsel %vm843_vm8, %v851_v55, %v853_v25  ;;  %v827_v2 = vsel %vm2712_vm11, 0.0, %v2705_v61  ;;  %v2737_v8 = vpack.c.bf16 %v852_v48, %v850_v0  ;;  %2345 = vrcp.f32 %v559_v44 }
  0x4f   : > { %2135 = vmatprep.mubr.msk.bf16.mxu0 %vm907_vm3, %v887_v10  ;;  %2146 = vmatpush3.bf16.msra.mxu1 %v2286_v42  ;;  %v857_v12 = vrot.slane %v2640_v60, 1  ;;  %v2745_v13 = vrot.slane %v827_v2, 1  ;;  %v657_v28 = vand.u32 15, %v587_v53  ;;  %v2749_v16 = vpack.c.bf16 %v2640_v60, %v2630_v57 }
  0x50   : > { %2136 = vmatmul.mubr.msk.bf16.vlgmr.msra.gmra.mxu0 %vm907_vm3, %v888_v24  ;;  %2167 = vmatprep.subr.bf16.mxu1 %v2289_v51  ;;  %v560_v41 = vadd.f32 1.0, %v2342_v5  ;;  %v2757_v19 = vmul.f32 %v2344_v7, %v2564_v49  ;;  %v786_v42 = vrot.slane %v2705_v61, 7  ;;  %v588_v32 = vadd.s32 80, %v2465_v3 }
  0x51   : > { %2156 = vmatpush3.bf16.msra.mxu0 %v2483_v6  ;;  %2159 = vmatprep.mubr.msk.bf16.mxu0 %vm907_vm3, %v1099_v54  ;;  %v856_v6 = vsel %vm843_vm8, %v853_v25, %v855_v59  ;;  %v858_v57 = vsel %vm843_vm8, %v855_v59, %v857_v12  ;;  %v860_v60 = vsel %vm843_vm8, %v857_v12, %v2745_v13  ;;  %vm743_vm12 = vcmp.eq.s32.totalorder %v657_v28, 15 }
  0x52   : > { %2148 = vmatmul.mubr.msk.bf16.vlgmr.msra.gmra.mxu1 %vm907_vm3, %v2698_v56  ;;  %2157 = vmatprep.subr.bf16.mxu0 %v2288_v58  ;;  %v2742_v11 = vpack.c.bf16 %v856_v6, %v854_v1  ;;  %2347 = vrcp.f32 %v560_v41  ;;  %v2770_v49 = vpack.c.bf16 %v860_v60, %v858_v57  ;;  %v755_v22 = vsel %vm743_vm12, 0.0, %v2757_v19 }
  0x53   : > { %2168 = vmatpush3.bf16.msra.mxu1 %v2289_v51  ;;  %2151 = vmatprep.mubr.msk.bf16.mxu1 %vm907_vm3, %v2710_v62  ;;  %v788_v29 = vrot.slane %v755_v22, 7  ;;  %v787_v33 = vsel %vm770_vm0, %v2657_v14, %v786_v42  ;;  %v574_v37 = vstv %s2782_s9  ;;  %v664_v38 = vand.u32 15, %v588_v32 }
  0x54   : > { %2169 = vmatprep.subr.bf16.mxu1 %v2291_v63  ;;  %v589_v14 = vadd.s32 88, %v2465_v3  ;;  %v1299_v50 = vpack.c.bf16 %v2757_v19, %v2705_v61  ;;  %v861_v23 = vrot.slane %v2757_v19, 1 }
  0x55   : > { %2158 = vmatpush3.bf16.msra.mxu0 %v2288_v58  ;;  %v789_v34 = vsel %vm770_vm0, %v786_v42, %v788_v29  ;;  %vm817_vm13 = vcmp.eq.s32.totalorder %v664_v38, 0 }
  0x56   : > { %2179 = vmatprep.subr.bf16.mxu0 %v2290_v26  ;;  %v1205_v9 = vpack.c.bf16 %v789_v34, %v787_v33  ;;  %v671_v3 = vand.u32 15, %v589_v14 }
  0x57   : > { %2170 = vmatpush3.bf16.msra.mxu1 %v2291_v63 }
  0x58   : > { %2160 = vmatmul.mubr.msk.bf16.vlgmr.msra.gmra.mxu0 %vm907_vm3, %v2737_v8  ;;  %2191 = vmatprep.subr.bf16.mxu1 %v2293_v27  ;;  %vm745_vm14 = vcmp.eq.s32.totalorder %v671_v3, 15 }
  0x59   : > { %2180 = vmatpush3.bf16.msra.mxu0 %v2290_v26  ;;  %2163 = vmatprep.mubr.msk.bf16.mxu0 %vm907_vm3, %v2742_v11 }
  0x5a   : > { %2152 = vmatmul.mubr.msk.bf16.gmra.mxu1 %vm907_vm3, %v2749_v16  ;;  %2181 = vmatprep.subr.bf16.mxu0 %v2292_v18 }
  0x5b   : > { %2171 = vmatprep.mubr.msk.bf16.mxu1 %vm907_vm3, %v888_v24  ;;  %v2346_v31 = vpop.eup %2345  ;;  %v862_v24 = vsel %vm843_vm8, %v2745_v13, %v861_v23 }
  0x5c   : > { %v565_v36 = vmul.f32 %v2346_v31, %v2579_v17  ;;  %v2298_v17 = vld [vmem:[%s2954_s4 + $0x88] sm:$0xff]  }
  0x5d   : > { %2182 = vmatpush3.bf16.msra.mxu0 %v2292_v18 }
  0x5e   : > { %2203 = vmatprep.subr.bf16.mxu0 %v2294_v20  ;;  %v575_v45 = vmul.f32 %v574_v37, %v565_v36 }
  0x5f   : > { %v2348_v40 = vpop.eup %2347 }
  0x60   : > { %2164 = vmatmul.mubr.msk.bf16.gmra.mxu0 %vm907_vm3, %v2770_v49  ;;  %v566_v47 = vmul.f32 %v2348_v40, %v2608_v46  ;;  %v829_v51 = vsel %vm817_vm13, 0.0, %v575_v45  ;;  %v2299_v46 = vld [vmem:[%s2954_s4 + $0x70] sm:$0xff]   ;;  %v790_v55 = vrot.slane %v575_v45, 7 }
  0x61   : > { %2183 = vmatprep.mubr.msk.bf16.mxu0 %vm907_vm3, %v2698_v56  ;;  %v863_v52 = vrot.slane %v829_v51, 1 }
  0x62   : > { %2172 = vmatmul.mubr.msk.bf16.vlgmr.msra.gmra.mxu1 %vm907_vm3, %v2660_v15  ;;  %v576_v4 = vmul.f32 %v574_v37, %v566_v47  ;;  %v791_v25 = vsel %vm770_vm0, %v788_v29, %v790_v55  ;;  %v1980_v47 = vld [vmem:[%s2955_s5] ss:$0 sm:$0xff] }
  0x63   : > { %2192 = vmatpush3.bf16.msra.mxu1 %v2293_v27  ;;  %2175 = vmatprep.mubr.msk.bf16.mxu1 %vm907_vm3, %v2668_v21  ;;  %v864_v54 = vsel %vm843_vm8, %v861_v23, %v863_v52 }
  0x64   : > { %2193 = vmatprep.subr.bf16.mxu1 %v2295_v30  ;;  %v757_v10 = vsel %vm745_vm14, 0.0, %v576_v4  ;;  %v1393_v58 = vpack.c.bf16 %v864_v54, %v862_v24  ;;  %v1581_v43 = vpack.c.bf16 %v576_v4, %v575_v45 }
  0x65   : > { %v792_v56 = vrot.slane %v757_v10, 7 }
  0x67   : > { %2194 = vmatpush3.bf16.msra.mxu1 %v2295_v30  ;;  %v793_v59 = vsel %vm770_vm0, %v790_v55, %v792_v56 }
  0x68   : > { %2184 = vmatmul.mubr.msk.bf16.vlgmr.msra.gmra.mxu0 %vm907_vm3, %v2710_v62  ;;  %2215 = vmatprep.subr.bf16.mxu1 %v2297_v35  ;;  %v1487_v61 = vpack.c.bf16 %v793_v59, %v791_v25 }
  0x69   : > { %2204 = vmatpush3.bf16.msra.mxu0 %v2294_v20  ;;  %2187 = vmatprep.mubr.msk.bf16.mxu0 %vm907_vm3, %v2749_v16 }
  0x6a   : > { %2176 = vmatmul.mubr.msk.bf16.gmra.mxu1 %vm907_vm3, %v1205_v9  ;;  %2205 = vmatprep.subr.bf16.mxu0 %v2296_v39 }
  0x6b   : > { %2195 = vmatprep.mubr.msk.bf16.mxu1 %vm907_vm3, %v2737_v8 }
  0x6d   : > { %2206 = vmatpush3.bf16.msra.mxu0 %v2296_v39 }
  0x6e   : > { %2227 = vmatprep.subr.bf16.mxu0 %v2298_v17 }
  0x70   : > { %2188 = vmatmul.mubr.msk.bf16.gmra.mxu0 %vm907_vm3, %v1299_v50 }
  0x71   : > { %2207 = vmatprep.mubr.msk.bf16.mxu0 %vm907_vm3, %v2660_v15  ;;  %v2300_v15 = vld [vmem:[%s2954_s4 + $0x80] sm:$0xff]  }
  0x72   : > { %2196 = vmatmul.mubr.msk.bf16.vlgmr.msra.gmra.mxu1 %vm907_vm3, %v2742_v11 }
  0x73   : > { %2216 = vmatpush3.bf16.msra.mxu1 %v2297_v35  ;;  %2199 = vmatprep.mubr.msk.bf16.mxu1 %vm907_vm3, %v2770_v49 }
  0x74   : > { %2217 = vmatprep.subr.bf16.mxu1 %v2299_v46 }
  0x77   : > { %2218 = vmatpush3.bf16.msra.mxu1 %v2299_v46 }
  0x78   : > { %2208 = vmatmul.mubr.msk.bf16.vlgmr.msra.gmra.mxu0 %vm907_vm3, %v2668_v21  ;;  %v865_v21 = vrot.slane %v576_v4, 1 }
  0x79   : > { %2228 = vmatpush3.bf16.msra.mxu0 %v2298_v17  ;;  %2211 = vmatprep.mubr.msk.bf16.mxu0 %vm907_vm3, %v1205_v9 }
  0x7a   : > { %2200 = vmatmul.mubr.msk.bf16.gmra.mxu1 %vm907_vm3, %v1393_v58  ;;  %2229 = vmatprep.subr.bf16.mxu0 %v2300_v15  ;;  %v879_v63 = vsel %vm843_vm8, %v865_v21, 0.0 }
  0x7b   : > { %2219 = vmatprep.mubr.msk.bf16.mxu1 %vm907_vm3, %v2710_v62  ;;  %v866_v62 = vsel %vm843_vm8, %v863_v52, %v865_v21 }
  0x7c   : > { %v1675_v44 = vpack.c.bf16 %v879_v63, %v866_v62 }
  0x7d   : > { %2230 = vmatpush3.bf16.msra.mxu0 %v2300_v15 }
  0x80   : > { %2212 = vmatmul.mubr.msk.bf16.gmra.mxu0 %vm907_vm3, %v1487_v61 }
  0x81   : > { %2231 = vmatprep.mubr.msk.bf16.mxu0 %vm907_vm3, %v2742_v11 }
  0x82   : > { %2220 = vmatmul.mubr.msk.bf16.vlgmr.msra.gmra.mxu1 %vm907_vm3, %v2749_v16 }
  0x83   : > { %2223 = vmatprep.mubr.msk.bf16.mxu1 %vm907_vm3, %v1299_v50 }
  0x88   : > { %2232 = vmatmul.mubr.msk.bf16.vlgmr.msra.gmra.mxu0 %vm907_vm3, %v2770_v49 }
  0x89   : > { %2235 = vmatprep.mubr.msk.bf16.mxu0 %vm907_vm3, %v1393_v58 }
  0x8a   : > { %2224 = vmatmul.mubr.msk.bf16.gmra.mxu1 %vm907_vm3, %v1581_v43 }
  0x90   : > { %2236 = vmatmul.mubr.msk.bf16.gmra.mxu0 %vm907_vm3, %v1675_v44 }
 0x10a   : > { %v2141_v0 = vpop.f32.mrf.mxu1 }
 0x10b   : > { %v991_v63 = vadd.f32 %v2141_v0, %v1980_v47 }
 0x10c   : > { %v2852_v48 = vpop.f32.mrf.mxu1 }
 0x10e   : > { %v2854_v53 = vpop.f32.mrf.mxu1 }
 0x110   : > { %v2137_v26 = vpop.f32.mrf.mxu0  ;;  %v2856_v1 = vpop.f32.mrf.mxu1 }
 0x111   : > { %v987_v51 = vadd.f32 %v2137_v26, %v1980_v47 }
 0x112   : > { %v954_v6 = vpop.f32.mrf.mxu0  ;;  %v2149_v2 = vpop.f32.mrf.mxu1 }
 0x113   : > { %v985_v52 = vadd.f32 %v1980_v47, %v954_v6  ;;  %v1093_v24 = vadd.f32 %v2149_v2, %v987_v51  ;;  %v989_v51 = vadd.f32 %v1980_v47, %v2852_v48  ;;  %v990_v48 = vadd.f32 %v1980_v47, %v2856_v1 }
 0x114   : > { %v2138_v5 = vpop.f32.mrf.mxu0  ;;  %v1060_v7 = vpop.f32.mrf.mxu1 }
 0x115   : > { %v988_v54 = vadd.f32 %v2138_v5, %v1980_v47  ;;  %v1091_v58 = vadd.f32 %v1060_v7, %v985_v52 }
 0x116   : > { %v957_v8 = vpop.f32.mrf.mxu0  ;;  %v2150_v27 = vpop.f32.mrf.mxu1 }
 0x117   : > { %v986_v15 = vadd.f32 %v1980_v47, %v957_v8  ;;  %v1094_v21 = vadd.f32 %v2150_v27, %v988_v54  ;;  %v992_v27 = vadd.f32 %v2854_v53, %v1980_v47 }
 0x118   : > { %v2161_v11 = vpop.f32.mrf.mxu0  ;;  %v1063_v12 = vpop.f32.mrf.mxu1 }
 0x119   : > { %v1199_v25 = vadd.f32 %v2161_v11, %v1093_v24  ;;  %v1092_v6 = vadd.f32 %v1063_v12, %v986_v15 }
 0x11a   : > { %v1166_v13 = vpop.f32.mrf.mxu0  ;;  %v2153_v28 = vpop.f32.mrf.mxu1 }
 0x11b   : > { %v1197_v43 = vadd.f32 %v1166_v13, %v1091_v58 }
 0x11c   : > { %v2162_v16 = vpop.f32.mrf.mxu0  ;;  %v1076_v18 = vpop.f32.mrf.mxu1 }
 0x11d   : > { %v1095_v13 = vadd.f32 %v1076_v18, %v989_v51 }
 0x11e   : > { %v1169_v41 = vpop.f32.mrf.mxu0  ;;  %v2858_v19 = vpop.f32.mrf.mxu1 }
 0x11f   : > { %v1198_v11 = vadd.f32 %v1169_v41, %v1092_v6 }
 0x120   : > { %v2165_v57 = vpop.f32.mrf.mxu0  ;;  %v2860_v60 = vpop.f32.mrf.mxu1 }
 0x122   : > { %v2862_v20 = vpop.f32.mrf.mxu0  ;;  %v2173_v49 = vpop.f32.mrf.mxu1 }
 0x123   : > { %v1293_v62 = vadd.f32 %v2173_v49, %v1199_v25  ;;  %v1201_v41 = vadd.f32 %v2862_v20, %v1095_v13 }
 0x124   : > { %v2864_v22 = vpop.f32.mrf.mxu0  ;;  %v1260_v42 = vpop.f32.mrf.mxu1 }
 0x125   : > { %v1291_v2 = vadd.f32 %v1260_v42, %v1197_v43 }
 0x126   : > { %v2866_v29 = vpop.f32.mrf.mxu0  ;;  %v2174_v30 = vpop.f32.mrf.mxu1 }
 0x128   : > { %v2185_v31 = vpop.f32.mrf.mxu0  ;;  %v1263_v32 = vpop.f32.mrf.mxu1 }
 0x129   : > { %v1387_v5 = vadd.f32 %v2185_v31, %v1293_v62  ;;  %v1292_v12 = vadd.f32 %v1263_v32, %v1198_v11 }
 0x12a   : > { %v1354_v33 = vpop.f32.mrf.mxu0  ;;  %v2177_v34 = vpop.f32.mrf.mxu1 }
 0x12b   : > { %v1385_v24 = vadd.f32 %v1354_v33, %v1291_v2 }
 0x12c   : > { %v2186_v35 = vpop.f32.mrf.mxu0  ;;  %v2868_v36 = vpop.f32.mrf.mxu1 }
 0x12e   : > { %v1357_v37 = vpop.f32.mrf.mxu0  ;;  %v2870_v38 = vpop.f32.mrf.mxu1 }
 0x12f   : > { %v1386_v53 = vadd.f32 %v1357_v37, %v1292_v12 }
 0x130   : > { %v2872_v9 = vpop.f32.mrf.mxu0  ;;  %v2874_v39 = vpop.f32.mrf.mxu1 }
 0x132   : > { %v2876_v40 = vpop.f32.mrf.mxu0  ;;  %v2197_v14 = vpop.f32.mrf.mxu1 }
 0x134   : > { %v2878_v45 = vpop.f32.mrf.mxu0  ;;  %v1448_v17 = vpop.f32.mrf.mxu1 }
 0x135   : > { %v1479_v42 = vadd.f32 %v1448_v17, %v1385_v24 }
 0x136   : > { %v2883_v3 = vpop.f32.mrf.mxu0  ;;  %v2198_v50 = vpop.f32.mrf.mxu1 }
 0x137   : > { %2975 = vst [vmem:[#allocation2_spill] sm:$0xff] %v2883_v3  ;;  %v1200_v3 = vadd.f32 %v2162_v16, %v1094_v21 }
 0x138   : > { %v2209_v4 = vpop.f32.mrf.mxu0  ;;  %v1451_v23 = vpop.f32.mrf.mxu1 }
 0x139   : > { %v1294_v52 = vadd.f32 %v2174_v30, %v1200_v3  ;;  %v1480_v20 = vadd.f32 %v1451_v23, %v1386_v53 }
 0x13a   : > { %v1542_v46 = vpop.f32.mrf.mxu0  ;;  %v2885_v10 = vpop.f32.mrf.mxu1 }
 0x13b   : > { %v1388_v16 = vadd.f32 %v2186_v35, %v1294_v52  ;;  %v1295_v35 = vadd.f32 %v2868_v36, %v1201_v41 }
 0x13c   : > { %v2210_v55 = vpop.f32.mrf.mxu0  ;;  %v2887_v56 = vpop.f32.mrf.mxu1 }
 0x13d   : > { %2976 = vst [vmem:[#allocation3_spill] sm:$0xff] %v2887_v56  ;;  %v1097_v56 = vadd.f32 %v2153_v28, %v991_v63  ;;  %v1098_v28 = vadd.f32 %v2858_v19, %v992_v27  ;;  %v1482_v18 = vadd.f32 %v2198_v50, %v1388_v16  ;;  %v1389_v36 = vadd.f32 %v2876_v40, %v1295_v35 }
 0x13e   : > { %v1545_v59 = vpop.f32.mrf.mxu0  ;;  %v2889_v61 = vpop.f32.mrf.mxu1 }
 0x13f   : > { %2977 = vst [vmem:[#allocation4_spill] sm:$0xff] %v2889_v61  ;;  %v1481_v61 = vadd.f32 %v2197_v14, %v1387_v5  ;;  %v1203_v0 = vadd.f32 %v2165_v57, %v1097_v56  ;;  %v1573_v57 = vadd.f32 %v1542_v46, %v1479_v42  ;;  %v1096_v56 = vadd.f32 %v2860_v60, %v990_v48 }
 0x140   : > { %v2213_v44 = vpop.f32.mrf.mxu0  ;;  %v2891_v26 = vpop.f32.mrf.mxu1  ;;  %v1204_v32 = vadd.f32 %v2864_v22, %v1098_v28  ;;  %v1574_v46 = vadd.f32 %v1545_v59, %v1480_v20  ;;  %v2979_v59 = vld [vmem:[#allocation2_spill] sm:$0xff] }
 0x141   : > { %v1575_v31 = vadd.f32 %v2209_v4, %v1481_v61  ;;  %v1297_v30 = vadd.f32 %v2177_v34, %v1203_v0  ;;  %v1576_v34 = vadd.f32 %v2210_v55, %v1482_v18  ;;  %v1202_v60 = vadd.f32 %v2866_v29, %v1096_v56 }
 0x142   : > { %v1558_v7 = vpop.f32.mrf.mxu0  ;;  %v2221_v8 = vpop.f32.mrf.mxu1  ;;  %v1298_v22 = vadd.f32 %v2870_v38, %v1204_v32 }
 0x143   : > { %v1669_v3 = vadd.f32 %v2221_v8, %v1575_v31  ;;  %v1391_v17 = vadd.f32 %v2872_v9, %v1297_v30  ;;  %v1296_v23 = vadd.f32 %v2874_v39, %v1202_v60 }
 0x144   : > { %v2214_v49 = vpop.f32.mrf.mxu0  ;;  %v1636_v54 = vpop.f32.mrf.mxu1  ;;  %v1392_v55 = vadd.f32 %v2878_v45, %v1298_v22  ;;  %v2978_v38 = vld [vmem:[#allocation3_spill] sm:$0xff] }
 0x145   : > { %v1667_v37 = vadd.f32 %v1636_v54, %v1573_v57  ;;  %v1485_v4 = vadd.f32 %v2885_v10, %v1391_v17  ;;  %v1483_v61 = vadd.f32 %v2978_v38, %v1389_v36  ;;  %v1390_v43 = vadd.f32 %v2979_v59, %v1296_v23 }
 0x146   : > { %v1561_v33 = vpop.f32.mrf.mxu0  ;;  %v2222_v14 = vpop.f32.mrf.mxu1  ;;  %v2980_v6 = vld [vmem:[#allocation4_spill] sm:$0xff] }
 0x147   : > { %v1670_v58 = vadd.f32 %v2222_v14, %v1576_v34  ;;  %v1579_v21 = vadd.f32 %v2213_v44, %v1485_v4  ;;  %v1486_v2 = vadd.f32 %v2980_v6, %v1392_v55  ;;  %v1577_v39 = vadd.f32 %v1558_v7, %v1483_v61 }
 0x148   : > { %v2233_v1 = vpop.f32.mrf.mxu0  ;;  %v1639_v19 = vpop.f32.mrf.mxu1  ;;  %v1484_v44 = vadd.f32 %v2891_v26, %v1390_v43 }
 0x149   : > { %v1763_v47 = vadd.f32 %v2233_v1, %v1669_v3  ;;  %v1668_v40 = vadd.f32 %v1639_v19, %v1574_v46  ;;  %v1580_v8 = vadd.f32 %v2214_v49, %v1486_v2 }
 0x14a   : > { %v1730_v9 = vpop.f32.mrf.mxu0  ;;  %v2225_v50 = vpop.f32.mrf.mxu1  ;;  %v1578_v13 = vadd.f32 %v1561_v33, %v1484_v44 }
 0x14b   : > { %1772 = vst.msk [vmem:[%s2907_s7 + $0x10] sm:$0xff] %vm1769_vm15, %v1763_v47  ;;  %v1761_v15 = vadd.f32 %v1730_v9, %v1667_v37  ;;  %v1673_v5 = vadd.f32 %v2225_v50, %v1579_v21 }
 0x14c   : > { %v2234_v29 = vpop.f32.mrf.mxu0  ;;  %v1652_v25 = vpop.f32.mrf.mxu1 }
 0x14d   : > { %1770 = vst.msk [vmem:[%s2907_s7] sm:$0xff] %vm1769_vm15, %v1761_v15  ;;  %v1764_v10 = vadd.f32 %v2234_v29, %v1670_v58  ;;  %v1671_v11 = vadd.f32 %v1652_v25, %v1577_v39 }
 0x14e   : > { %v1733_v62 = vpop.f32.mrf.mxu0  ;;  %v2226_v63 = vpop.f32.mrf.mxu1 }
 0x14f   : > { %1773 = vst.msk [vmem:[%s2907_s7 + $0x18] sm:$0xff] %vm1769_vm15, %v1764_v10  ;;  %v1762_v45 = vadd.f32 %v1733_v62, %v1668_v40  ;;  %v1674_v0 = vadd.f32 %v2226_v63, %v1580_v8 }
 0x150   : > { %v2237_v51 = vpop.f32.mrf.mxu0  ;;  %v1655_v24 = vpop.f32.mrf.mxu1 }
 0x151   : > { %1771 = vst.msk [vmem:[%s2907_s7 + $0x8] sm:$0xff] %vm1769_vm15, %v1762_v45  ;;  %v1767_v52 = vadd.f32 %v2237_v51, %v1673_v5  ;;  %v1672_v12 = vadd.f32 %v1655_v24, %v1578_v13 }
 0x152   : > { %v1746_v27 = vpop.f32.mrf.mxu0 }
 0x153   : > { %1776 = vst.msk [vmem:[%s2907_s7 + $0x30] sm:$0xff] %vm1769_vm15, %v1767_v52  ;;  %v1765_v7 = vadd.f32 %v1746_v27, %v1671_v11 }
 0x154   : > { %v2238_v54 = vpop.f32.mrf.mxu0 }
 0x155   : > { %1774 = vst.msk [vmem:[%s2907_s7 + $0x20] sm:$0xff] %vm1769_vm15, %v1765_v7  ;;  %v1768_v16 = vadd.f32 %v2238_v54, %v1674_v0 }
 0x156   : > { %v1749_v26 = vpop.f32.mrf.mxu0 }
 0x157   : > { %1777 = vst.msk [vmem:[%s2907_s7 + $0x38] sm:$0xff] %vm1769_vm15, %v1768_v16  ;;  %v1766_v49 = vadd.f32 %v1749_v26, %v1672_v12 }
 0x159   : > { %1775 = vst.msk [vmem:[%s2907_s7 + $0x28] sm:$0xff] %vm1769_vm15, %v1766_v49 }
 0x15a PF: > { %s16_s25 = sadd.s32 1, %s2387_s25   ;;  %s2981_s21 = smov %s2379_s23 }
 0x15b   : > { %p13_p12 = scmp.ge.s32.totalorder %s16_s25, 10   ;;  %s2982_s22 = smov %s2383_s24 }
 0x15c   : > { %s2983_s23 = smov %s2986_s26  ;;  %s2984_s24 = smov %s2990_s27 }
 0x15d   :  { %15 = sbr.rel (!%p13_p12) target bundleno = 3 (0x3), region = 91 }

// kernel: vae_residual_block.7
= control target key start
LH: loop header
LB: loop body
LE: loop exit
PB: predicated region body
PF: predicated region fallthrough
CT: control target
= control target key end

     0   :  { %s3832_s0 = inlined_call_operand.vmem [shape: f32[2,2,64], index: 0, kind: input, shape index: {}]   ;;  %s3833_s1 = inlined_call_operand.vmem [shape: f32[2,16,16,64], index: 1, kind: input, shape index: {}, may-alias: {1,2,3}]   ;;  %s3834_s2 = inlined_call_operand.vmem [shape: f32[2,16,16,64], index: 2, kind: input, shape index: {}, may-alias: {1,2,3}]   ;;  %s3835_s3 = inlined_call_operand.vmem [shape: f32[2,16,16,64], index: 3, kind: input, shape index: {}, may-alias: {1,2,3}]   ;;  %s3836_s4 = inlined_call_operand.vmem [shape: bf16[3,3,64,64], index: 4, kind: input, shape index: {}]   ;;  %s3837_s5 = inlined_call_operand.vmem [shape: f32[1,64], index: 5, kind: input, shape index: {}]   ;;  %s3838_s6 = inlined_call_operand.vmem [shape: f32[2,16,16,32], index: 6, kind: input, shape index: {}]   ;;  %s3839_s7 = inlined_call_operand.vmem [shape: bf16[32,64], index: 7, kind: input, shape index: {}]   ;;  %s3840_s8 = inlined_call_operand.vmem [shape: f32[1,64], index: 8, kind: input, shape index: {}]   ;;  %s3841_s9 = inlined_call_operand.hbm [shape: f32[2,16,16,64], index: 9, kind: output, shape index: {}]  }
   0x1   :  { %3846 = sst [smem:[#allocation14_spill]] %s3832_s0 }
   0x2   :  { %14 = vsyncpa [#allocation3], 0 }
   0x3   :  { %16 = vsyncpa [#allocation3 + $0x1], 0  ;;  %s3085_s30 = smov 0   ;;  %s3087_s10 = smov 0  }
   0x4   :  { %s3089_s11 = smov 0   ;;  %s3091_s12 = smov 0  }
   0x5   :  { %s3093_s13 = smov 0   ;;  %s3095_s14 = smov 0  }
   0x6   :  { %s3097_s15 = smov 0   ;;  %s3099_s16 = smov 0  }
   0x7 LB: > { %3847 = sst [smem:[#allocation5_spill]] %s3022_s14  ;;  %s2335_s17 = sadd.s32 4294967295, %s3030_s16   ;;  %s3030_s16 = sphi %s3099_s16, %s22_s16   ;;  %s3026_s15 = sphi %s3097_s15, %s3890_s15   ;;  %s3022_s14 = sphi %s3095_s14, %s3889_s14   ;;  %s3018_s13 = sphi %s3093_s13, %s3888_s13   ;;  %s3014_s12 = sphi %s3091_s12, %s3887_s12   ;;  %s3010_s11 = sphi %s3089_s11, %s3893_s11   ;;  %s3006_s10 = sphi %s3087_s10, %s3892_s10   ;;  %s3002_s30 = sphi %s3085_s30, %s3891_s30  }
   0x8   : > { %3848 = sst [smem:[#allocation6_spill]] %s3026_s15  ;;  %s2336_s18 = sadd.s32 4294967294, %s3030_s16  }
   0x9   : > { %s31_s19 = sadd.s32 1, %s3022_s14  ;;  %s34_s20 = sadd.s32 1, %s3026_s15 }
   0xa   : > { %p32_p0 = scmp.ge.s32.totalorder %s31_s19, 4  ;;  %p291_p1 = scmp.ne.s32.totalorder %s3010_s11, %s3006_s10 }
   0xb   : > { %p292_p2 = scmp.eq.s32.totalorder %s2335_s17, 7  ;;  %p297_p5 = scmp.ne.s32.totalorder %s3006_s10, %s3002_s30 }
   0xc   : > { %s3895_s19 = smov (%p32_p0, %s31_s19), 0  ;;  %s3897_s20 = smov (!%p32_p0, %s34_s20), %s3026_s15 }
   0xd   : > { %3849 = sst [smem:[#allocation7_spill]] %s3895_s19  ;;  %s277_s21 = ssub.s32 %s3022_s14, %s3895_s19 }
   0xe   : > { %p3136_p3 = por %p292_p2, %p291_p1  ;;  %p36_p4 = scmp.ge.s32.totalorder %s3897_s20, 2 }
   0xf   : > { %p298_p6 = scmp.eq.s32.totalorder %s2336_s18, 7  ;;  %p2345_p7 = scmp.ge.s32.totalorder %s3030_s16, 1 }
  0x10   : > { %s3899_s20 = smov (%p36_p4, %s3897_s20), 0  ;;  %p403_p9 = scmp.lt.s32.totalorder %s3030_s16, 9 }
  0x11   : > { %3851 = sst [smem:[#allocation8_spill]] %s3899_s20  ;;  %p3145_p8 = por %p298_p6, %p297_p5 }
  0x12   : > { %s276_s24 = ssub.s32 %s3026_s15, %s3899_s20  ;;  %s281_s25 = sadd.s32 1, %s3010_s11 }
  0x13   : > { %s278_s26 = sor.u32 %s277_s21, %s276_s24  ;;  %p404_p10 = pnand %p2345_p7, %p403_p9 }
  0x14   : > { %p279_p11 = scmp.eq.s32.totalorder %s278_s26, 0 }
  0x15   : > { %407 = sbr.rel (%p404_p10) target bundleno = 380 (0x17c), region = 56 }
  0x16   : > { %s3154_s27 = scalar_select %p279_p11, %s3010_s11, %s281_s25  }
  0x18   : > { %3853 = sst [smem:[#allocation9_spill]] %s3154_s27 }
  0x1a   : > { %v2852_v0 = vld [vmem:[%s3836_s4 + $0x38] sm:$0xff]   ;;  %p484_p12 = scmp.lt.s32.totalorder %s3018_s13, 1  ;;  %s3164_s20 = sshll.u32 %s3014_s12, 2  ;;  %v2854_v2 = vld [vmem:[%s3836_s4 + $0x30] sm:$0xff]   ;;  %v2856_v4 = vld [vmem:[%s3836_s4 + $0x28] sm:$0xff]   ;;  %v555_v5 = vlaneseq  ;;  %vm1031_vm0 = vcmask 523264  }
  0x1b   : > { %v2853_v1 = vld [vmem:[%s3836_s4 + $0x18] sm:$0xff]   ;;  %2639 = vmatprep.subr.bf16.mxu1 %v2852_v0  ;;  %v2855_v3 = vld [vmem:[%s3836_s4 + $0x10] sm:$0xff]   ;;  %s2349_s29 = sadd.s32 4294967295, %s3164_s20  ;;  %v2857_v6 = vld [vmem:[%s3836_s4 + $0x8] sm:$0xff]   ;;  %s3854_s0 = sld [smem:[#allocation14_spill]]  ;;  %vm878_vm1 = vcmask 1040384  }
  0x1c   : > { %s485_s25 = scalar_select %p484_p12, %s3018_s13, 1  ;;  %2640 = vmatpush3.bf16.msra.mxu1 %v2852_v0  ;;  %2623 = vmatprep.subr.bf16.mxu0 %v2853_v1  ;;  %v2858_v7 = vld [vmem:[%s3836_s4 + $0x20] sm:$0xff]   ;;  %v3189_v9 = vshrl.u32 %v555_v5, 7  ;;  %v3204_v14 = vld [vmem:[%s3836_s4 + $0x78] sm:$0xff]   ;;  %vm951_vm9 = vcmask 1046528   ;;  %vm2049_vm15 = vcmask 261120  }
  0x1d   : > { %2624 = vmatpush3.bf16.msra.mxu0 %v2853_v1  ;;  %2641 = vmatprep.subr.bf16.mxu1 %v2854_v2  ;;  %p490_p13 = scmp.gt.s32.totalorder %s2349_s29, 0  ;;  %p2350_p0 = scmp.lt.s32.totalorder %s2349_s29, 15  ;;  %v2859_v10 = vld [vmem:[%s3836_s4] sm:$0xff]   ;;  %v3212_v15 = vld [vmem:[%s3836_s4 + $0x58] sm:$0xff]  }
  0x1e   : > { %s2347_s19 = sshll.u32 %s485_s25, 1  ;;  %2625 = vmatprep.subr.bf16.mxu0 %v2855_v3  ;;  %s3186_s18 = sshll.u32 %s485_s25, 5  ;;  %v557_v11 = vsub.s32 0, %v3189_v9  ;;  %v569_v12 = vsub.s32 1, %v3189_v9 }
  0x1f   : > { %s3901_s29 = smov (!%p490_p13, %s2349_s29), 0  ;;  %p508_p1 = scmp.lt.s32.totalorder %s3164_s20, 15 }
  0x20   : > { %2642 = vmatpush3.bf16.msra.mxu1 %v2854_v2  ;;  %s3903_s29 = smov (!%p2350_p0, %s3901_s29), 15  ;;  %s3855_s17 = sadd.s32 4, %s3164_s20  ;;  %v687_v2 = vadd.s32 8, %v3189_v9 }
  0x21   : > { %s487_s26 = scalar_lea.vmem %s3854_s0, %s2347_s19  ;;  %2626 = vmatpush3.bf16.msra.mxu0 %v2855_v3  ;;  %2643 = vmatprep.subr.bf16.mxu1 %v2856_v4  ;;  %s2355_s25 = sshll.u32 %s3903_s29, 1 }
  0x22   : > { %v546_v8 = vld [vmem:[%s487_s26] sm:$0x3]  ;;  %2627 = vmatprep.subr.bf16.mxu0 %v2857_v6  ;;  %s509_s19 = scalar_select %p508_p1, %s3164_s20, 15 }
  0x23   : > { %s498_s24 = sadd.s32 %s3186_s18, %s2355_s25  ;;  %v3199_v13 = vrot.slane %v546_v8, %v557_v11  ;;  %v3218_v16 = vrot.slane %v546_v8, %v569_v12  ;;  %p3229_p2 = scmp.lt.s32.totalorder %s3855_s17, 15  ;;  %v689_v12 = vadd.s32 24, %v3189_v9 }
  0x24   : > { %2644 = vmatpush3.bf16.msra.mxu1 %v2856_v4  ;;  %s2359_s26 = sshll.u32 %s509_s19, 1  ;;  %s2357_s14 = sshll.u32 %s498_s24, 3 }
  0x25   : > { %2628 = vmatpush3.bf16.msra.mxu0 %v2857_v6  ;;  %2645 = vmatprep.subr.bf16.mxu1 %v2858_v7  ;;  %s3207_s15 = sadd.s32 %s2359_s26, %s3186_s18  ;;  %s500_s25 = scalar_lea.vmem %s3833_s1, %s2357_s14 }
  0x26   : > { %2629 = vmatprep.subr.bf16.mxu0 %v2859_v10  ;;  %s2361_s21 = sshll.u32 %s3207_s15, 3  ;;  %v635_v17 = vld [vmem:[%s500_s25] sm:$0xff]  ;;  %v636_v18 = vld [vmem:[%s500_s25 + $0x8] sm:$0xff]  ;;  %s3857_s27 = smov %s3855_s17 }
  0x27   : > { %s3225_s26 = scalar_lea.vmem %s3834_s2, %s2361_s21  ;;  %v637_v19 = vmul.f32 %v635_v17, %v3199_v13  ;;  %v638_v20 = vmul.f32 %v636_v18, %v3199_v13  ;;  %s3905_s27 = smov (!%p3229_p2, %s3857_s27), 15  ;;  %v709_v18 = vand.u32 15, %v687_v2 }
  0x28   : > { %2646 = vmatpush3.bf16.msra.mxu1 %v2858_v7  ;;  %v547_v21 = vld [vmem:[%s3225_s26] sm:$0xff]  ;;  %v548_v22 = vld [vmem:[%s3225_s26 + $0x8] sm:$0xff]  ;;  %v549_v23 = vld [vmem:[%s3225_s26 + $0x10] sm:$0xff]  ;;  %s3907_s27 = smov (!%p3229_p2, %s3905_s27), 15  ;;  %p675_p4 = scmp.eq.s32.totalorder %s3014_s12, 0 }
  0x29   : > { %2630 = vmatpush3.bf16.msra.mxu0 %v2859_v10  ;;  %2671 = vmatprep.subr.bf16.mxu1 %v3204_v14  ;;  %v559_v24 = vmul.f32 %v3199_v13, %v547_v21  ;;  %v560_v25 = vmul.f32 %v3199_v13, %v548_v22  ;;  %v550_v26 = vld [vmem:[%s3225_s26 + $0x18] sm:$0xff]  ;;  %v561_v27 = vmul.f32 %v3199_v13, %v549_v23  ;;  %v551_v28 = vld [vmem:[%s3225_s26 + $0x20] sm:$0xff]  ;;  %v552_v32 = vld [vmem:[%s3225_s26 + $0x28] sm:$0xff]  ;;  %s2366_s20 = sshll.u32 %s3907_s27, 1  ;;  %v702_v10 = vand.u32 15, %v3189_v9  ;;  %p680_p5 = scmp.eq.s32.totalorder %s3014_s12, 3 }
  0x2a   : > { %2655 = vmatprep.subr.bf16.mxu0 %v3212_v15  ;;  %v3250_v29 = vadd.f32 %v637_v19, %v3218_v16  ;;  %v3253_v30 = vadd.f32 %v638_v20, %v3218_v16  ;;  %v562_v31 = vmul.f32 %v3199_v13, %v550_v26  ;;  %v563_v36 = vmul.f32 %v3199_v13, %v551_v28  ;;  %s526_s14 = sadd.s32 %s2366_s20, %s3186_s18  ;;  %v553_v49 = vld [vmem:[%s3225_s26 + $0x30] sm:$0xff]  ;;  %v554_v52 = vld [vmem:[%s3225_s26 + $0x38] sm:$0xff]  ;;  %s3637_s20 = scalar_lea.vmem %s3838_s6, %s2361_s21 }
  0x2b   : > { %v3258_v33 = vadd.f32 %v3218_v16, %v559_v24  ;;  %v3261_v34 = vadd.f32 %v3218_v16, %v560_v25  ;;  %v3264_v35 = vadd.f32 %v3218_v16, %v561_v27  ;;  %v564_v42 = vmul.f32 %v3199_v13, %v552_v32  ;;  %s2368_s29 = sshll.u32 %s526_s14, 3  ;;  %s481_s24 = sand.u32 1, %s3006_s10  }
  0x2c   : > { %v2381_v37 = vmul.f32 -1.442695, %v3250_v29  ;;  %v2382_v38 = vmul.f32 -1.442695, %v3253_v30  ;;  %v3270_v39 = vadd.f32 %v3218_v16, %v562_v31  ;;  %v3276_v43 = vadd.f32 %v3218_v16, %v563_v36  ;;  %s3297_s28 = scalar_lea.vmem %s3835_s3, %s2368_s29  ;;  %s2346_s26 = sshll.u32 %s481_s24, 6 }
  0x2d   : > { %v2373_v40 = vmul.f32 -1.442695, %v3258_v33  ;;  %v2374_v41 = vmul.f32 -1.442695, %v3261_v34  ;;  %v2375_v44 = vmul.f32 -1.442695, %v3264_v35  ;;  %v3283_v46 = vadd.f32 %v3218_v16, %v564_v42 }
  0x2e   : > { %2890 = vpow2.f32 %v2381_v37  ;;  %v2376_v45 = vmul.f32 -1.442695, %v3270_v39  ;;  %v2377_v47 = vmul.f32 -1.442695, %v3276_v43  ;;  %v565_v50 = vmul.f32 %v3199_v13, %v553_v49  ;;  %v655_v61 = vld [vmem:[%s3297_s28] sm:$0xff]  ;;  %v656_v25 = vld [vmem:[%s3297_s28 + $0x8] sm:$0xff] }
  0x2f   : > { %2892 = vpow2.f32 %v2382_v38  ;;  %v2378_v48 = vmul.f32 -1.442695, %v3283_v46  ;;  %v566_v59 = vmul.f32 %v3199_v13, %v554_v52  ;;  %v657_v5 = vmul.f32 %v655_v61, %v3199_v13  ;;  %s3315_s18 = scalar_select %p675_p4, 0.0, 1.0 }
  0x30   : > { %2894 = vpow2.f32 %v2373_v40  ;;  %v3291_v51 = vadd.f32 %v3218_v16, %v565_v50  ;;  %v691_v19 = vadd.s32 40, %v3189_v9  ;;  %v693_v22 = vadd.s32 56, %v3189_v9  ;;  %s3526_s28 = scalar_select %p680_p5, 0.0, 1.0 }
  0x31   : > { %2896 = vpow2.f32 %v2374_v41  ;;  %v3305_v7 = vadd.f32 %v3218_v16, %v566_v59  ;;  %v3313_v21 = vadd.f32 %v657_v5, %v3218_v16  ;;  %v688_v23 = vadd.s32 16, %v3189_v9  ;;  %s3749_s27 = scalar_lea.vmem [#allocation2], %s2346_s26  ;;  %s2532_s14 = sshll.u32 %s3018_s13, 5 }
  0x32   : > { %2898 = vpow2.f32 %v2375_v44  ;;  %v2379_v54 = vmul.f32 -1.442695, %v3291_v51  ;;  %v690_v24 = vadd.s32 32, %v3189_v9  ;;  %v658_v27 = vmul.f32 %v656_v25, %v3199_v13  ;;  %s2175_s13 = sshll.u32 %s3749_s27, 4  ;;  %s3781_s25 = scalar_lea.sflag [#allocation3], %s481_s24  ;;  %s3773_s13 = int_to_ptr.vmem [resolvable:$true] %s2175_s13 }
  0x33   : > { %2900 = vpow2.f32 %v2376_v45  ;;  %v2380_v20 = vmul.f32 -1.442695, %v3305_v7  ;;  %v2383_v26 = vmul.f32 -1.442695, %v3313_v21  ;;  %v723_v31 = vand.u32 15, %v689_v12 }
  0x34   : > { %2902 = vpow2.f32 %v2377_v47  ;;  %v737_v32 = vand.u32 15, %v691_v19  ;;  %v677_v37 = vstv %s3315_s18  ;;  %vm3324_vm2 = vcmp.eq.s32.totalorder %v702_v10, 0  ;;  %v2862_v10 = vld [vmem:[%s3836_s4 + $0x70] sm:$0xff]   ;;  %s3032_s18 = smov [#allocation2]  }
  0x35   : > { %2904 = vpow2.f32 %v2378_v48  ;;  %v751_v40 = vand.u32 15, %v693_v22  ;;  %v716_v41 = vand.u32 15, %v688_v23  ;;  %v730_v45 = vand.u32 15, %v690_v24  ;;  %s2942_s26 = sshll.u32 %s3032_s18, 4  ;;  %s2943_s26 = int_to_ptr.vmem [resolvable:$false] %s2942_s26 }
  0x36   : > { %2906 = vpow2.f32 %v2379_v54  ;;  %v3330_v47 = vadd.s32 48, %v3189_v9  ;;  %v3333_v13 = vadd.f32 %v658_v27, %v3218_v16  ;;  %vm3336_vm3 = vcmp.eq.s32.totalorder %v709_v18, 15  ;;  %s2944_s17 = scalar_lea.vmem %s2943_s26, 2048  ;;  %p2945_p10 = scmp.lt.s32.totalorder %s3773_s13, %s2943_s26 }
  0x37   : > { %vm3341_vm4 = vcmp.eq.s32.totalorder %v723_v31, 15  ;;  %vm3345_vm5 = vcmp.eq.s32.totalorder %v737_v32, 15  ;;  %vm3354_vm6 = vcmp.eq.s32.totalorder %v751_v40, 15  ;;  %vm3358_vm7 = vcmp.eq.s32.totalorder %v716_v41, 0  ;;  %v2863_v31 = vld [vmem:[%s3836_s4 + $0x50] sm:$0xff]  }
  0x38   : > { %vm3365_vm8 = vcmp.eq.s32.totalorder %v730_v45, 0 }
  0x3b   : > { %v2891_v53 = vpop.eup %2890 }
  0x3c   : > { %v2893_v55 = vpop.eup %2892  ;;  %v647_v56 = vadd.f32 1.0, %v2891_v53 }
  0x3d   : > { %v2895_v57 = vpop.eup %2894  ;;  %v648_v58 = vadd.f32 1.0, %v2893_v55  ;;  %v2865_v55 = vld [vmem:[%s3836_s4 + $0x48] sm:$0xff]  }
  0x3e   : > { %v2897_v60 = vpop.eup %2896  ;;  %2908 = vrcp.f32 %v647_v56  ;;  %v603_v62 = vadd.f32 1.0, %v2895_v57 }
  0x3f   : > { %v2899_v63 = vpop.eup %2898  ;;  %2910 = vrcp.f32 %v648_v58  ;;  %v604_v0 = vadd.f32 1.0, %v2897_v60 }
  0x40   : > { %v2901_v1 = vpop.eup %2900  ;;  %2912 = vrcp.f32 %v603_v62  ;;  %v605_v3 = vadd.f32 1.0, %v2899_v63  ;;  %v2384_v63 = vmul.f32 -1.442695, %v3333_v13 }
  0x41   : > { %v2903_v4 = vpop.eup %2902  ;;  %2914 = vrcp.f32 %v604_v0  ;;  %v606_v6 = vadd.f32 1.0, %v2901_v1 }
  0x42   : > { %v2905_v8 = vpop.eup %2904  ;;  %2916 = vrcp.f32 %v605_v3  ;;  %v607_v11 = vadd.f32 1.0, %v2903_v4  ;;  %v3373_v3 = vadd.s32 64, %v3189_v9 }
  0x43   : > { %2918 = vrcp.f32 %v606_v6  ;;  %v608_v17 = vadd.f32 1.0, %v2905_v8  ;;  %v2907_v28 = vpop.eup %2906 }
  0x44   : > { %2920 = vrcp.f32 %v607_v11  ;;  %v609_v52 = vadd.f32 1.0, %v2907_v28  ;;  %v2864_v28 = vld [vmem:[%s3836_s4 + $0x68] sm:$0xff]  }
  0x45   : > { %2922 = vrcp.f32 %v608_v17 }
  0x46   : > { %2924 = vpow2.f32 %v2380_v20 }
  0x47   : > { %2926 = vpow2.f32 %v2383_v26 }
  0x48   : > { %2928 = vrcp.f32 %v609_v52 }
  0x49   : > { %2930 = vpow2.f32 %v2384_v63  ;;  %v2867_v63 = vld [vmem:[%s3836_s4 + $0x40] sm:$0xff]  }
  0x4b   : > { %v2909_v36 = vpop.eup %2908 }
  0x4c   : > { %v2911_v42 = vpop.eup %2910  ;;  %v653_v44 = vmul.f32 %v2909_v36, %v3250_v29 }
  0x4d   : > { %v2913_v48 = vpop.eup %2912  ;;  %v654_v49 = vmul.f32 %v2911_v42, %v3253_v30 }
  0x4e   : > { %v2915_v53 = vpop.eup %2914  ;;  %v678_v54 = vmul.f32 %v677_v37, %v653_v44  ;;  %v627_v29 = vmul.f32 %v2913_v48, %v3258_v33 }
  0x4f   : > { %v2917_v56 = vpop.eup %2916  ;;  %v3349_v30 = vmul.f32 %v677_v37, %v654_v49  ;;  %v3352_v57 = vmul.f32 %v2915_v53, %v3261_v34  ;;  %v744_v34 = vand.u32 15, %v3330_v47 }
  0x50   : > { %v2919_v59 = vpop.eup %2918  ;;  %v879_v60 = vrot.slane %v678_v54, 7  ;;  %v3363_v61 = vmul.f32 %v2917_v56, %v3264_v35  ;;  %v882_v2 = vrot.slane %v627_v29, 7  ;;  %v927_v35 = vsel %vm3324_vm2, 0.0, %v678_v54 }
  0x51   : > { %v2921_v0 = vpop.eup %2920  ;;  %v1117_v1 = vpack.c.bf16 %v3349_v30, %v678_v54  ;;  %v3378_v5 = vpack.c.bf16 %v3352_v57, %v627_v29  ;;  %v855_v6 = vsel %vm3336_vm3, 0.0, %v3349_v30  ;;  %v857_v8 = vsel %vm3341_vm4, 0.0, %v3352_v57  ;;  %v2866_v54 = vld [vmem:[%s3836_s4 + $0x60] sm:$0xff]  }
  0x52   : > { %v2923_v4 = vpop.eup %2922  ;;  %v880_v11 = vrot.slane %v855_v6, 7  ;;  %v914_v12 = vsel %vm878_vm1, 0.0, %v879_v60  ;;  %v884_v17 = vrot.slane %v857_v8, 7  ;;  %v3392_v18 = vmul.f32 %v2919_v59, %v3270_v39 }
  0x53   : > { %2647 = vmatprep.mubr.msk.bf16.mxu1 %vm1031_vm0, %v1117_v1  ;;  %v3397_v19 = vmul.f32 %v2921_v0, %v3276_v43  ;;  %v3400_v20 = vmul.f32 %v2923_v4, %v3283_v46  ;;  %v886_v22 = vrot.slane %v3363_v61, 7  ;;  %v2925_v43 = vpop.eup %2924  ;;  %v952_v26 = vrot.slane %v927_v35, 1 }
  0x54   : > { %2648 = vmatmul.mubr.msk.bf16.vlgmr.msra.gmra.mxu1 %vm1031_vm0, %v3378_v5  ;;  %v881_v23 = vsel %vm878_vm1, %v879_v60, %v880_v11  ;;  %v883_v24 = vsel %vm878_vm1, %v880_v11, %v882_v2  ;;  %v885_v39 = vsel %vm878_vm1, %v882_v2, %v884_v17  ;;  %v3409_v25 = vpack.c.bf16 %v3392_v18, %v3363_v61  ;;  %v2927_v49 = vpop.eup %2926  ;;  %v2869_v11 = vld [vmem:[%s3836_s4 + $0x98] sm:$0xff]  }
  0x55   : > { %2672 = vmatpush3.bf16.msra.mxu1 %v3204_v14  ;;  %v995_v27 = vpack.c.bf16 %v881_v23, %v914_v12  ;;  %v996_v46 = vpack.c.bf16 %v885_v39, %v883_v24  ;;  %v859_v14 = vsel %vm3345_vm5, 0.0, %v3392_v18  ;;  %v887_v32 = vsel %vm878_vm1, %v884_v17, %v886_v22  ;;  %v2929_v60 = vpop.eup %2928  ;;  %v2871_v39 = vld [vmem:[%s3836_s4 + $0x90] sm:$0xff]  }
  0x56   : > { %2673 = vmatprep.subr.bf16.mxu1 %v2862_v10  ;;  %2651 = vmatprep.mubr.msk.bf16.mxu1 %vm1031_vm0, %v3409_v25  ;;  %v888_v36 = vrot.slane %v859_v14, 7  ;;  %v861_v37 = vsel %vm3354_vm6, 0.0, %v3400_v20  ;;  %v890_v38 = vrot.slane %v3397_v19, 7  ;;  %v953_v40 = vrot.slane %v3349_v30, 1  ;;  %v2931_v4 = vpop.eup %2930 }
  0x57   : > { %2631 = vmatprep.mubr.msk.bf16.mxu0 %vm1031_vm0, %v995_v27  ;;  %v3431_v41 = vpack.c.bf16 %v3400_v20, %v3397_v19  ;;  %v3433_v42 = vrot.slane %v861_v37, 7  ;;  %v929_v44 = vsel %vm3358_vm7, 0.0, %v627_v29  ;;  %v610_v48 = vadd.f32 1.0, %v2925_v43  ;;  %v2876_v29 = vld [vmem:[%s3836_s4 + $0xf8] sm:$0xff]  }
  0x58   : > { %2632 = vmatmul.mubr.msk.bf16.vlgmr.msra.gmra.mxu0 %vm1031_vm0, %v996_v46  ;;  %v889_v45 = vsel %vm878_vm1, %v886_v22, %v888_v36  ;;  %v955_v47 = vrot.slane %v929_v44, 1  ;;  %v891_v52 = vsel %vm878_vm1, %v888_v36, %v890_v38  ;;  %vm3448_vm10 = vcmp.eq.s32.totalorder %v744_v34, 0  ;;  %v2868_v34 = vld [vmem:[%s3836_s4 + $0xb8] sm:$0xff]   ;;  %v2872_v22 = vld [vmem:[%s3836_s4 + $0xa8] sm:$0xff]   ;;  %v2874_v36 = vld [vmem:[%s3836_s4 + $0xa0] sm:$0xff]  }
  0x59   : > { %2674 = vmatpush3.bf16.msra.mxu1 %v2862_v10  ;;  %2656 = vmatpush3.bf16.msra.mxu0 %v3212_v15  ;;  %v3440_v50 = vpack.c.bf16 %v889_v45, %v887_v32  ;;  %v893_v53 = vsel %vm878_vm1, %v890_v38, %v3433_v42  ;;  %v931_v15 = vsel %vm3365_vm8, 0.0, %v3363_v61  ;;  %2932 = vrcp.f32 %v610_v48  ;;  %v2870_v10 = vld [vmem:[%s3836_s4 + $0xb0] sm:$0xff]  }
  0x5a   : > { %2675 = vmatprep.subr.bf16.mxu1 %v2864_v28  ;;  %2657 = vmatprep.subr.bf16.mxu0 %v2863_v31  ;;  %v954_v16 = vsel %vm951_vm9, %v952_v26, %v953_v40  ;;  %v956_v56 = vsel %vm951_vm9, %v953_v40, %v955_v47  ;;  %v758_v30 = vand.u32 15, %v3373_v3  ;;  %v3465_v58 = vpack.c.bf16 %v893_v53, %v891_v52 }
  0x5b   : > { %2635 = vmatprep.mubr.msk.bf16.mxu0 %vm1031_vm0, %v3440_v50  ;;  %v933_v33 = vsel %vm3448_vm10, 0.0, %v3397_v19  ;;  %v667_v59 = vadd.f32 1.0, %v2927_v49  ;;  %v957_v61 = vrot.slane %v3352_v57, 1  ;;  %v959_v62 = vrot.slane %v931_v15, 1  ;;  %v2885_v57 = vld [vmem:[%s3839_s7 + $0x8] sm:$0xff]  }
  0x5c   : > { %2652 = vmatmul.mubr.msk.bf16.gmra.mxu1 %vm1031_vm0, %v3431_v41  ;;  %v1239_v0 = vpack.c.bf16 %v956_v56, %v954_v16  ;;  %v695_v1 = vadd.s32 72, %v3189_v9  ;;  %v961_v2 = vrot.slane %v3392_v18, 1  ;;  %v963_v3 = vrot.slane %v933_v33, 1  ;;  %v2878_v56 = vld [vmem:[%s3836_s4 + $0xf0] sm:$0xff]  }
  0x5d   : > { %2676 = vmatpush3.bf16.msra.mxu1 %v2864_v28  ;;  %2679 = vmatprep.mubr.msk.bf16.mxu1 %vm1031_vm0, %v996_v46  ;;  %2934 = vrcp.f32 %v667_v59  ;;  %vm3480_vm11 = vcmp.eq.s32.totalorder %v758_v30, 0  ;;  %v3487_v35 = vmul.f32 %v2929_v60, %v3291_v51  ;;  %v958_v6 = vsel %vm951_vm9, %v955_v47, %v957_v61  ;;  %v2879_v33 = vld [vmem:[%s3836_s4 + $0xd0] sm:$0xff]  }
  0x5e   : > { %2658 = vmatpush3.bf16.msra.mxu0 %v2863_v31  ;;  %2677 = vmatprep.subr.bf16.mxu1 %v2866_v54  ;;  %v960_v8 = vsel %vm951_vm9, %v957_v61, %v959_v62  ;;  %v765_v12 = vand.u32 15, %v695_v1  ;;  %v962_v17 = vsel %vm951_vm9, %v959_v62, %v961_v2  ;;  %v964_v18 = vsel %vm951_vm9, %v961_v2, %v963_v3  ;;  %v2881_v61 = vld [vmem:[%s3836_s4 + $0xc8] sm:$0xff]   ;;  %v2882_v1 = vld [vmem:[%s3836_s4 + $0xe0] sm:$0xff]   ;;  %v2027_v46 = vld [vmem:[%s3637_s20 + $0x30] sm:$0xff] }
  0x5f   : > { %2659 = vmatprep.subr.bf16.mxu0 %v2865_v55  ;;  %v935_v51 = vsel %vm3480_vm11, 0.0, %v3487_v35  ;;  %v1240_v19 = vpack.c.bf16 %v960_v8, %v958_v6  ;;  %v965_v23 = vrot.slane %v3400_v20, 1  ;;  %v3517_v43 = vpack.c.bf16 %v964_v18, %v962_v17  ;;  %v2886_v8 = vld [vmem:[%s3836_s4 + $0x110] sm:$0xff]   ;;  %v2889_v18 = vld [vmem:[%s3836_s4 + $0x100] sm:$0xff]  }
  0x60   : > { %2636 = vmatmul.mubr.msk.bf16.gmra.mxu0 %vm1031_vm0, %v3465_v58  ;;  %v3512_v24 = vrot.slane %v935_v51, 1  ;;  %v668_v26 = vadd.f32 1.0, %v2931_v4  ;;  %vm3519_vm12 = vcmp.eq.s32.totalorder %v765_v12, 15  ;;  %v894_v28 = vrot.slane %v3487_v35, 7  ;;  %v2021_v51 = vld [vmem:[%s3637_s20] sm:$0xff] }
  0x61   : > { %2678 = vmatpush3.bf16.msra.mxu1 %v2866_v54  ;;  %2663 = vmatprep.mubr.msk.bf16.mxu0 %vm1031_vm0, %v1239_v0  ;;  %v696_v20 = vadd.s32 80, %v3189_v9  ;;  %v966_v31 = vsel %vm951_vm9, %v963_v3, %v965_v23  ;;  %v682_v45 = vstv %s3526_s28  ;;  %v697_v59 = vadd.s32 88, %v3189_v9  ;;  %v2880_v9 = vld [vmem:[%s3836_s4 + $0xe8] sm:$0xff]   ;;  %v2884_v3 = vld [vmem:[%s3836_s4 + $0x118] sm:$0xff]   ;;  %s2938_s28 = scalar_lea.vmem %s3773_s13, 1024 }
  0x62   : > { %2660 = vmatpush3.bf16.msra.mxu0 %v2865_v55  ;;  %2703 = vmatprep.subr.bf16.mxu1 %v2868_v34  ;;  %v968_v32 = vsel %vm951_vm9, %v965_v23, %v3512_v24  ;;  %2936 = vrcp.f32 %v668_v26  ;;  %v895_v40 = vsel %vm878_vm1, %v3433_v42, %v894_v28  ;;  %v2875_v42 = vld [vmem:[%s3836_s4 + $0x80] sm:$0xff]   ;;  %p2939_p6 = scmp.ne.s32.totalorder %s3773_s13, %s2938_s28  ;;  %p2946_p11 = scmp.lt.s32.totalorder %s2944_s17, %s2938_s28 }
  0x63   : > { %2661 = vmatprep.subr.bf16.mxu0 %v2867_v63  ;;  %v772_v47 = vand.u32 15, %v696_v20  ;;  %v3549_v48 = vpack.c.bf16 %v968_v32, %v966_v31  ;;  %v2025_v23 = vld [vmem:[%s3637_s20 + $0x20] sm:$0xff] }
  0x64   : > { %2680 = vmatmul.mubr.msk.bf16.vlgmr.msra.gmra.mxu1 %vm1031_vm0, %v3440_v50  ;;  %p2940_p7 = pnand %p2939_p6, %p3136_p3  ;;  %p2947_p12 = por %p2946_p11, %p2945_p10 }
  0x65   : > { %2704 = vmatpush3.bf16.msra.mxu1 %v2868_v34  ;;  %2683 = vmatprep.mubr.msk.bf16.mxu1 %vm1031_vm0, %v3465_v58  ;;  %vm925_vm13 = vcmp.eq.s32.totalorder %v772_v47, 0  ;;  %v779_v34 = vand.u32 15, %v697_v59 }
  0x66   : > { %2662 = vmatpush3.bf16.msra.mxu0 %v2867_v63  ;;  %2705 = vmatprep.subr.bf16.mxu1 %v2870_v10  ;;  %v2933_v27 = vpop.eup %2932  ;;  %p2941_p9 = pneg %p2940_p7 }
  0x67   : > { %2687 = vmatprep.subr.bf16.mxu0 %v2869_v11  ;;  %v634_v14 = vmul.f32 %v2933_v27, %v3305_v7  ;;  %v2873_v7 = vld [vmem:[%s3836_s4 + $0x88] sm:$0xff]   ;;  %vm853_vm14 = vcmp.eq.s32.totalorder %v779_v34, 15 }
  0x68   : > { %p2948_p13 = pnand %p2947_p12, %p2941_p9 }
  0x69   : > { %2664 = vmatmul.mubr.msk.bf16.vlgmr.msra.gmra.mxu0 %vm1031_vm0, %v1240_v19  ;;  %2706 = vmatpush3.bf16.msra.mxu1 %v2870_v10  ;;  %v863_v37 = vsel %vm3519_vm12, 0.0, %v634_v14  ;;  %v969_v55 = vrot.slane %v634_v14, 1  ;;  %v1471_v0 = vpack.c.bf16 %v634_v14, %v3487_v35 }
  0x6a   : > { %2688 = vmatpush3.bf16.msra.mxu0 %v2869_v11  ;;  %2707 = vmatprep.subr.bf16.mxu1 %v2872_v22  ;;  %v2935_v38 = vpop.eup %2934  ;;  %v3546_v44 = vrot.slane %v863_v37, 7  ;;  %v2887_v11 = vld [vmem:[%s3836_s4 + $0x108] sm:$0xff]  }
  0x6b   : > { %2689 = vmatprep.subr.bf16.mxu0 %v2871_v39  ;;  %2667 = vmatprep.mubr.msk.bf16.mxu0 %vm1031_vm0, %v3517_v43  ;;  %v673_v49 = vmul.f32 %v2935_v38, %v3313_v21  ;;  %v2877_v21 = vld [vmem:[%s3836_s4 + $0xd8] sm:$0xff]  }
  0x6c   : > { %v897_v52 = vsel %vm878_vm1, %v894_v28, %v3546_v44  ;;  %v2028_v28 = vld [vmem:[%s3637_s20 + $0x38] sm:$0xff] }
  0x6d   : > { %2708 = vmatpush3.bf16.msra.mxu1 %v2872_v22  ;;  %v3554_v53 = vpack.c.bf16 %v897_v52, %v895_v40  ;;  %v3559_v54 = vmul.f32 %v682_v45, %v673_v49  ;;  %v2024_v22 = vld [vmem:[%s3637_s20 + $0x18] sm:$0xff]  ;;  %v2032_v14 = vpack.c.bf16 %v2028_v28, %v2027_v46 }
  0x6e   : > { %2690 = vmatpush3.bf16.msra.mxu0 %v2871_v39  ;;  %2709 = vmatprep.subr.bf16.mxu1 %v2874_v36 }
  0x6f   : > { %2691 = vmatprep.subr.bf16.mxu0 %v2873_v7  ;;  %2684 = vmatmul.mubr.msk.bf16.gmra.mxu1 %vm1031_vm0, %v3554_v53  ;;  %v937_v15 = vsel %vm925_vm13, 0.0, %v3559_v54  ;;  %v2937_v30 = vpop.eup %2936  ;;  %v898_v35 = vrot.slane %v3559_v54, 7 }
  0x70   : > { %2711 = vmatprep.mubr.msk.bf16.mxu1 %vm1031_vm0, %v1240_v19  ;;  %v3575_v16 = vrot.slane %v937_v15, 1  ;;  %v674_v62 = vmul.f32 %v2937_v30, %v3333_v13  ;;  %v2883_v13 = vld [vmem:[%s3836_s4 + $0xc0] sm:$0xff]   ;;  %v2023_v19 = vld [vmem:[%s3637_s20 + $0x10] sm:$0xff] }
  0x71   : > { %2668 = vmatmul.mubr.msk.bf16.gmra.mxu0 %vm1031_vm0, %v3549_v48  ;;  %2710 = vmatpush3.bf16.msra.mxu1 %v2874_v36  ;;  %v2030_v39 = vpack.c.bf16 %v2024_v22, %v2023_v19 }
  0x72   : > { %2692 = vmatpush3.bf16.msra.mxu0 %v2873_v7  ;;  %2735 = vmatprep.subr.bf16.mxu1 %v2876_v29  ;;  %v972_v60 = vsel %vm951_vm9, %v969_v55, %v3575_v16  ;;  %v3612_v2 = vmul.f32 %v682_v45, %v674_v62 }
  0x73   : > { %2693 = vmatprep.subr.bf16.mxu0 %v2875_v42  ;;  %2695 = vmatprep.mubr.msk.bf16.mxu0 %vm1031_vm0, %v3378_v5  ;;  %v970_v5 = vsel %vm951_vm9, %v3512_v24, %v969_v55  ;;  %v2026_v24 = vld [vmem:[%s3637_s20 + $0x28] sm:$0xff] }
  0x74   : > { %v3603_v63 = vpack.c.bf16 %v972_v60, %v970_v5  ;;  %v865_v4 = vsel %vm853_vm14, 0.0, %v3612_v2  ;;  %v2031_v26 = vpack.c.bf16 %v2026_v24, %v2025_v23  ;;  %v973_v27 = vrot.slane %v3612_v2, 1 }
  0x75   : > { %v900_v6 = vrot.slane %v865_v4, 7 }
  0x76   : > { %2694 = vmatpush3.bf16.msra.mxu0 %v2875_v42  ;;  %v987_v20 = vsel %vm951_vm9, %v973_v27, 0.0 }
  0x77   : > { %2719 = vmatprep.subr.bf16.mxu0 %v2877_v21  ;;  %2712 = vmatmul.mubr.msk.bf16.vlgmr.msra.gmra.mxu1 %vm1031_vm0, %v3517_v43  ;;  %v901_v10 = vsel %vm878_vm1, %v898_v35, %v900_v6 }
  0x78   : > { %2736 = vmatpush3.bf16.msra.mxu1 %v2876_v29  ;;  %2715 = vmatprep.mubr.msk.bf16.mxu1 %vm1031_vm0, %v3549_v48 }
  0x79   : > { %2696 = vmatmul.mubr.msk.bf16.vlgmr.msra.gmra.mxu0 %vm1031_vm0, %v3409_v25  ;;  %2737 = vmatprep.subr.bf16.mxu1 %v2878_v56 }
  0x7a   : > { %2720 = vmatpush3.bf16.msra.mxu0 %v2877_v21  ;;  %2699 = vmatprep.mubr.msk.bf16.mxu0 %vm1031_vm0, %v3431_v41 }
  0x7b   : > { %2721 = vmatprep.subr.bf16.mxu0 %v2879_v33 }
  0x7c   : > { %2738 = vmatpush3.bf16.msra.mxu1 %v2878_v56 }
  0x7d   : > { %2739 = vmatprep.subr.bf16.mxu1 %v2880_v9 }
  0x7e   : > { %2722 = vmatpush3.bf16.msra.mxu0 %v2879_v33 }
  0x7f   : > { %2723 = vmatprep.subr.bf16.mxu0 %v2881_v61  ;;  %2716 = vmatmul.mubr.msk.bf16.gmra.mxu1 %vm1031_vm0, %v3603_v63 }
  0x80   : > { %2740 = vmatpush3.bf16.msra.mxu1 %v2880_v9  ;;  %2743 = vmatprep.mubr.msk.bf16.mxu1 %vm1031_vm0, %v3409_v25  ;;  %v2888_v25 = vld [vmem:[%s3839_s7] sm:$0xff]  }
  0x81   : > { %2700 = vmatmul.mubr.msk.bf16.gmra.mxu0 %vm1031_vm0, %v1471_v0  ;;  %2741 = vmatprep.subr.bf16.mxu1 %v2882_v1 }
  0x82   : > { %2724 = vmatpush3.bf16.msra.mxu0 %v2881_v61  ;;  %2727 = vmatprep.mubr.msk.bf16.mxu0 %vm1031_vm0, %v3440_v50  ;;  %v899_v50 = vsel %vm878_vm1, %v3546_v44, %v898_v35  ;;  %v2385_v35 = vld [vmem:[%s3837_s5] ss:$0 sm:$0xff] }
  0x83   : > { %2725 = vmatprep.subr.bf16.mxu0 %v2883_v13  ;;  %v1691_v12 = vpack.c.bf16 %v901_v10, %v899_v50 }
  0x84   : > { %2742 = vmatpush3.bf16.msra.mxu1 %v2882_v1 }
  0x85   : > { %2767 = vmatprep.subr.bf16.mxu1 %v2885_v57 }
  0x86   : > { %2726 = vmatpush3.bf16.msra.mxu0 %v2883_v13 }
  0x87   : > { %2751 = vmatprep.subr.bf16.mxu0 %v2884_v3  ;;  %2744 = vmatmul.mubr.msk.bf16.vlgmr.msra.gmra.mxu1 %vm1031_vm0, %v3431_v41  ;;  %v2022_v41 = vld [vmem:[%s3637_s20 + $0x8] sm:$0xff]  ;;  %s2544_s20 = sshll.u32 %s3014_s12, 3 }
  0x88   : > { %2768 = vmatpush3.bf16.msra.mxu1 %v2885_v57  ;;  %2747 = vmatprep.mubr.msk.bf16.mxu1 %vm1031_vm0, %v1471_v0  ;;  %v2029_v17 = vpack.c.bf16 %v2022_v41, %v2021_v51  ;;  %s2172_s29 = sadd.s32 %s2544_s20, %s2532_s14 }
  0x89   : > { %2728 = vmatmul.mubr.msk.bf16.vlgmr.msra.gmra.mxu0 %vm1031_vm0, %v3465_v58  ;;  %2769 = vmatprep.subr.bf16.mxu1 %v2888_v25  ;;  %v1801_v58 = vpack.c.bf16 %v3612_v2, %v3559_v54  ;;  %s2533_s12 = sshll.u32 %s2172_s29, 7 }
  0x8a   : > { %2752 = vmatpush3.bf16.msra.mxu0 %v2884_v3  ;;  %2731 = vmatprep.mubr.msk.bf16.mxu0 %vm1031_vm0, %v3554_v53  ;;  %s3771_s19 = scalar_lea.hbm %s3841_s9, %s2533_s12 }
  0x8b   : > { %2753 = vmatprep.subr.bf16.mxu0 %v2886_v8 }
  0x8c   : > { %2770 = vmatpush3.bf16.msra.mxu1 %v2888_v25 }
  0x8e   : > { %2754 = vmatpush3.bf16.msra.mxu0 %v2886_v8 }
  0x8f   : > { %2755 = vmatprep.subr.bf16.mxu0 %v2887_v11  ;;  %2748 = vmatmul.mubr.msk.bf16.gmra.mxu1 %vm1031_vm0, %v1801_v58 }
  0x90   : > { %2771 = vmatprep.mubr.msk.bf16.mxu1 %vm2049_vm15, %v2029_v17 }
  0x91   : > { %2732 = vmatmul.mubr.msk.bf16.gmra.mxu0 %vm1031_vm0, %v1691_v12 }
  0x92   : > { %2756 = vmatpush3.bf16.msra.mxu0 %v2887_v11  ;;  %2759 = vmatprep.mubr.msk.bf16.mxu0 %vm1031_vm0, %v3517_v43  ;;  %v974_v43 = vsel %vm951_vm9, %v3575_v16, %v973_v27 }
  0x93   : > { %2757 = vmatprep.subr.bf16.mxu0 %v2889_v18  ;;  %v1911_v31 = vpack.c.bf16 %v987_v20, %v974_v43 }
  0x96   : > { %2758 = vmatpush3.bf16.msra.mxu0 %v2889_v18 }
  0x97   : > { %2772 = vmatmul.mubr.msk.bf16.vlgmr.msra.gmra.mxu1 %vm2049_vm15, %v2030_v39 }
  0x98   : > { %2775 = vmatprep.mubr.msk.bf16.mxu1 %vm2049_vm15, %v2031_v26 }
  0x99   : > { %2760 = vmatmul.mubr.msk.bf16.vlgmr.msra.gmra.mxu0 %vm1031_vm0, %v3549_v48 }
  0x9a   : > { %2763 = vmatprep.mubr.msk.bf16.mxu0 %vm1031_vm0, %v3603_v63 }
  0x9f   : > { %2776 = vmatmul.mubr.msk.bf16.gmra.mxu1 %vm2049_vm15, %v2032_v14 }
  0xa1   : > { %2764 = vmatmul.mubr.msk.bf16.gmra.mxu0 %vm1031_vm0, %v1911_v31 }
 0x114   : > { %v2649_v32 = vpop.f32.mrf.mxu1 }
 0x116   : > { %v1200_v36 = vpop.f32.mrf.mxu1 }
 0x118   : > { %v2650_v37 = vpop.f32.mrf.mxu1  ;;  %v2633_v7 = vpop.f32.mrf.mxu0 }
 0x119   : > { %v1111_v10 = vadd.f32 %v2633_v7, %v2385_v35 }
 0x11a   : > { %v1203_v38 = vpop.f32.mrf.mxu1  ;;  %v1078_v40 = vpop.f32.mrf.mxu0 }
 0x11b   : > { %v1109_v41 = vadd.f32 %v2385_v35, %v1078_v40  ;;  %v1233_v18 = vadd.f32 %v2649_v32, %v1111_v10 }
 0x11c   : > { %v2653_v44 = vpop.f32.mrf.mxu1  ;;  %v2634_v45 = vpop.f32.mrf.mxu0 }
 0x11d   : > { %v1112_v17 = vadd.f32 %v2634_v45, %v2385_v35  ;;  %v1231_v39 = vadd.f32 %v1200_v36, %v1109_v41 }
 0x11e   : > { %v3685_v47 = vpop.f32.mrf.mxu1  ;;  %v1081_v48 = vpop.f32.mrf.mxu0 }
 0x11f   : > { %v1110_v23 = vadd.f32 %v2385_v35, %v1081_v48  ;;  %v1234_v43 = vadd.f32 %v2650_v37, %v1112_v17 }
 0x120   : > { %v3687_v49 = vpop.f32.mrf.mxu1  ;;  %v2637_v52 = vpop.f32.mrf.mxu0 }
 0x121   : > { %v1115_v26 = vadd.f32 %v2637_v52, %v2385_v35  ;;  %v1232_v40 = vadd.f32 %v1203_v38, %v1110_v23 }
 0x122   : > { %v3689_v53 = vpop.f32.mrf.mxu1  ;;  %v1094_v42 = vpop.f32.mrf.mxu0 }
 0x123   : > { %v1113_v20 = vadd.f32 %v2385_v35, %v1094_v42  ;;  %v1237_v32 = vadd.f32 %v2653_v44, %v1115_v26 }
 0x124   : > { %v2681_v54 = vpop.f32.mrf.mxu1  ;;  %v2638_v29 = vpop.f32.mrf.mxu0 }
 0x125   : > { %v1116_v45 = vadd.f32 %v2638_v29, %v2385_v35  ;;  %v1235_v52 = vadd.f32 %v3685_v47, %v1113_v20 }
 0x126   : > { %v1432_v21 = vpop.f32.mrf.mxu1  ;;  %v1097_v15 = vpop.f32.mrf.mxu0 }
 0x128   : > { %v2682_v16 = vpop.f32.mrf.mxu1 }
 0x129   : > { %v2665_v55 = vpop.f32.mrf.mxu0 }
 0x12a   : > { %v3691_v30 = vpop.f32.mrf.mxu1  ;;  %v1355_v24 = vadd.f32 %v2665_v55, %v1233_v18  ;;  %v1114_v55 = vadd.f32 %v2385_v35, %v1097_v15 }
 0x12b   : > { %v1322_v56 = vpop.f32.mrf.mxu0 }
 0x12c   : > { %v1353_v28 = vadd.f32 %v1322_v56, %v1231_v39 }
 0x12d   : > { %v2666_v33 = vpop.f32.mrf.mxu0 }
 0x12e   : > { %v1356_v7 = vadd.f32 %v2666_v33, %v1234_v43  ;;  %v1463_v48 = vadd.f32 %v1432_v21, %v1353_v28  ;;  %v1238_v33 = vadd.f32 %v3687_v49, %v1116_v45  ;;  %v1236_v21 = vadd.f32 %v3689_v53, %v1114_v55 }
 0x12f   : > { %v1325_v59 = vpop.f32.mrf.mxu0  ;;  %v3693_v5 = vpop.f32.mrf.mxu1 }
 0x130   : > { %v1466_v42 = vadd.f32 %v2682_v16, %v1356_v7 }
 0x131   : > { %v2669_v60 = vpop.f32.mrf.mxu0  ;;  %v3695_v9 = vpop.f32.mrf.mxu1 }
 0x132   : > { %v1359_v36 = vadd.f32 %v2669_v60, %v1237_v32 }
 0x133   : > { %v1338_v61 = vpop.f32.mrf.mxu0  ;;  %v3697_v62 = vpop.f32.mrf.mxu1 }
 0x134   : > { %v1357_v17 = vadd.f32 %v1338_v61, %v1235_v52  ;;  %v1469_v15 = vadd.f32 %v3693_v5, %v1359_v36 }
 0x135   : > { %v2670_v34 = vpop.f32.mrf.mxu0  ;;  %v3699_v63 = vpop.f32.mrf.mxu1 }
 0x136   : > { %v1467_v35 = vadd.f32 %v3695_v9, %v1357_v17 }
 0x137   : > { %v3701_v0 = vpop.f32.mrf.mxu0  ;;  %v2713_v1 = vpop.f32.mrf.mxu1 }
 0x138   : > { %v1358_v61 = vadd.f32 %v3701_v0, %v1236_v21 }
 0x139   : > { %v2697_v13 = vpop.f32.mrf.mxu0  ;;  %v1652_v2 = vpop.f32.mrf.mxu1 }
 0x13b   : > { %v1542_v3 = vpop.f32.mrf.mxu0  ;;  %v3703_v57 = vpop.f32.mrf.mxu1 }
 0x13c   : > { %v1573_v37 = vadd.f32 %v1542_v3, %v1463_v48 }
 0x13d   : > { %v2698_v4 = vpop.f32.mrf.mxu0  ;;  %v3708_v6 = vpop.f32.mrf.mxu1 }
 0x13e   : > { %v1576_v29 = vadd.f32 %v2698_v4, %v1466_v42  ;;  %v1683_v16 = vadd.f32 %v1652_v2, %v1573_v37 }
 0x13f   : > { %v1545_v8 = vpop.f32.mrf.mxu0  ;;  %v3710_v25 = vpop.f32.mrf.mxu1 }
 0x140   : > { %v1686_v53 = vadd.f32 %v3703_v57, %v1576_v29 }
 0x141   : > { %v2701_v50 = vpop.f32.mrf.mxu0  ;;  %v3712_v11 = vpop.f32.mrf.mxu1 }
 0x142   : > { %3878 = vst [vmem:[#allocation10_spill] sm:$0xff] %v3712_v11  ;;  %v1354_v11 = vadd.f32 %v1325_v59, %v1232_v40  ;;  %v1360_v59 = vadd.f32 %v2670_v34, %v1238_v33  ;;  %v1579_v49 = vadd.f32 %v2701_v50, %v1469_v15 }
 0x143   : > { %v1558_v51 = vpop.f32.mrf.mxu0  ;;  %v3714_v58 = vpop.f32.mrf.mxu1 }
 0x144   : > { %3879 = vst [vmem:[#allocation11_spill] sm:$0xff] %v3714_v58  ;;  %v1465_v58 = vadd.f32 %v2681_v54, %v1355_v24  ;;  %v1464_v44 = vadd.f32 %v3691_v30, %v1354_v11  ;;  %v1577_v34 = vadd.f32 %v1558_v51, %v1467_v35  ;;  %v1470_v5 = vadd.f32 %v3697_v62, %v1360_v59 }
 0x145   : > { %v3716_v12 = vpop.f32.mrf.mxu0  ;;  %v3718_v19 = vpop.f32.mrf.mxu1 }
 0x146   : > { %3880 = vst [vmem:[#allocation12_spill] sm:$0xff] %v3718_v19  ;;  %v1580_v9 = vadd.f32 %v3716_v12, %v1470_v5  ;;  %v2528_v12 = vld [vmem:[%s3840_s8] ss:$0 sm:$0xff] }
 0x147   : > { %v3720_v22 = vpop.f32.mrf.mxu0  ;;  %v2745_v27 = vpop.f32.mrf.mxu1 }
 0x148   : > { %3881 = vst [vmem:[#allocation13_spill] sm:$0xff] %v3720_v22  ;;  %v1575_v22 = vadd.f32 %v2697_v13, %v1465_v58  ;;  %v1574_v13 = vadd.f32 %v1545_v8, %v1464_v44  ;;  %v1468_v58 = vadd.f32 %v3699_v63, %v1358_v61 }
 0x149   : > { %v2729_v46 = vpop.f32.mrf.mxu0  ;;  %v1872_v14 = vpop.f32.mrf.mxu1 }
 0x14a   : > { %v1685_v18 = vadd.f32 %v2713_v1, %v1575_v22  ;;  %v1684_v0 = vadd.f32 %v3708_v6, %v1574_v13  ;;  %v1689_v22 = vadd.f32 %v3710_v25, %v1579_v49 }
 0x14b   : > { %v1762_v31 = vpop.f32.mrf.mxu0  ;;  %v2746_v10 = vpop.f32.mrf.mxu1 }
 0x14c   : > { %v1795_v3 = vadd.f32 %v2729_v46, %v1685_v18  ;;  %v1793_v1 = vadd.f32 %v1762_v31, %v1683_v16  ;;  %v3884_v31 = vld [vmem:[#allocation11_spill] sm:$0xff] }
 0x14d   : > { %v2730_v19 = vpop.f32.mrf.mxu0  ;;  %v1875_v41 = vpop.f32.mrf.mxu1  ;;  %v1690_v7 = vadd.f32 %v3884_v31, %v1580_v9  ;;  %v3885_v36 = vld [vmem:[#allocation12_spill] sm:$0xff] }
 0x14e   : > { %v1796_v2 = vadd.f32 %v2730_v19, %v1686_v53  ;;  %v1905_v50 = vadd.f32 %v2745_v27, %v1795_v3  ;;  %v1903_v51 = vadd.f32 %v1872_v14, %v1793_v1  ;;  %v3883_v19 = vld [vmem:[#allocation10_spill] sm:$0xff] }
 0x14f   : > { %v1765_v56 = vpop.f32.mrf.mxu0  ;;  %v2749_v38 = vpop.f32.mrf.mxu1  ;;  %v3882_v39 = vld [vmem:[#allocation13_spill] sm:$0xff]  ;;  %v1687_v28 = vadd.f32 %v3883_v19, %v1577_v34 }
 0x150   : > { %v1794_v57 = vadd.f32 %v1765_v56, %v1684_v0  ;;  %v1578_v26 = vadd.f32 %v3882_v39, %v1468_v58  ;;  %v1906_v43 = vadd.f32 %v2746_v10, %v1796_v2 }
 0x151   : > { %v2733_v54 = vpop.f32.mrf.mxu0  ;;  %v1888_v60 = vpop.f32.mrf.mxu1 }
 0x152   : > { %v1799_v46 = vadd.f32 %v2733_v54, %v1689_v22  ;;  %v1904_v55 = vadd.f32 %v1875_v41, %v1794_v57  ;;  %v1688_v52 = vadd.f32 %v3885_v36, %v1578_v26 }
 0x153   : > { %v1778_v47 = vpop.f32.mrf.mxu0  ;;  %v3729_v4 = vpop.f32.mrf.mxu1 }
 0x154   : > { %v1797_v20 = vadd.f32 %v1778_v47, %v1687_v28  ;;  %v1909_v42 = vadd.f32 %v2749_v38, %v1799_v46 }
 0x155   : > { %v2734_v30 = vpop.f32.mrf.mxu0  ;;  %v3733_v11 = vpop.f32.mrf.mxu1 }
 0x156   : > { %v1800_v17 = vadd.f32 %v2734_v30, %v1690_v7  ;;  %v1907_v44 = vadd.f32 %v1888_v60, %v1797_v20 }
 0x157   : > { %v1781_v8 = vpop.f32.mrf.mxu0  ;;  %v2773_v23 = vpop.f32.mrf.mxu1 }
 0x158   : > { %v1798_v18 = vadd.f32 %v1781_v8, %v1688_v52  ;;  %v1910_v60 = vadd.f32 %v3729_v4, %v1800_v17 }
 0x159   : > { %v2761_v24 = vpop.f32.mrf.mxu0  ;;  %v2096_v6 = vpop.f32.mrf.mxu1 }
 0x15a   : > { %v2015_v62 = vadd.f32 %v2761_v24, %v1905_v50  ;;  %v1908_v53 = vadd.f32 %v3733_v11, %v1798_v18 }
 0x15b   : > { %v1982_v63 = vpop.f32.mrf.mxu0  ;;  %v2774_v40 = vpop.f32.mrf.mxu1 }
 0x15c   : > { %v2129_v27 = vadd.f32 %v2773_v23, %v2015_v62  ;;  %v2013_v25 = vadd.f32 %v1982_v63, %v1903_v51 }
 0x15d   : > { %v2762_v45 = vpop.f32.mrf.mxu0  ;;  %v2099_v56 = vpop.f32.mrf.mxu1 }
 0x15e   : > { %v2144_v14 = vadd.f32 %v2528_v12, %v2129_v27  ;;  %v2127_v32 = vadd.f32 %v2096_v6, %v2013_v25  ;;  %v2016_v48 = vadd.f32 %v2762_v45, %v1906_v43 }
 0x15f   : > { %v1985_v37 = vpop.f32.mrf.mxu0  ;;  %v2777_v29 = vpop.f32.mrf.mxu1 }
 0x160   : > { %2152 = vst.msk [vmem:[%s3749_s27 + $0x10] sm:$0xff] %vm1031_vm0, %v2144_v14  ;;  %v2142_v10 = vadd.f32 %v2528_v12, %v2127_v32  ;;  %v2130_v33 = vadd.f32 %v2774_v40, %v2016_v48  ;;  %v2014_v54 = vadd.f32 %v1985_v37, %v1904_v55 }
 0x161   : > { %v2765_v41 = vpop.f32.mrf.mxu0  ;;  %v2112_v15 = vpop.f32.mrf.mxu1 }
 0x162   : > { %2150 = vst.msk [vmem:[%s3749_s27] sm:$0xff] %vm1031_vm0, %v2142_v10  ;;  %v2145_v38 = vadd.f32 %v2528_v12, %v2130_v33  ;;  %v2128_v59 = vadd.f32 %v2099_v56, %v2014_v54  ;;  %v2019_v21 = vadd.f32 %v2765_v41, %v1909_v42 }
 0x163   : > { %v1998_v47 = vpop.f32.mrf.mxu0  ;;  %v2778_v61 = vpop.f32.mrf.mxu1 }
 0x164   : > { %2153 = vst.msk [vmem:[%s3749_s27 + $0x18] sm:$0xff] %vm1031_vm0, %v2145_v38  ;;  %v2143_v13 = vadd.f32 %v2528_v12, %v2128_v59  ;;  %v2133_v3 = vadd.f32 %v2777_v29, %v2019_v21  ;;  %v2017_v16 = vadd.f32 %v1998_v47, %v1907_v44 }
 0x165   : > { %v2766_v49 = vpop.f32.mrf.mxu0  ;;  %v2115_v2 = vpop.f32.mrf.mxu1 }
 0x166   : > { %2151 = vst.msk [vmem:[%s3749_s27 + $0x8] sm:$0xff] %vm1031_vm0, %v2143_v13  ;;  %v2148_v35 = vadd.f32 %v2528_v12, %v2133_v3  ;;  %v2131_v30 = vadd.f32 %v2112_v15, %v2017_v16  ;;  %v2020_v1 = vadd.f32 %v2766_v49, %v1910_v60 }
 0x167   : > { %v2001_v34 = vpop.f32.mrf.mxu0 }
 0x168   : > { %2156 = vst.msk [vmem:[%s3749_s27 + $0x30] sm:$0xff] %vm1031_vm0, %v2148_v35  ;;  %v2146_v5 = vadd.f32 %v2528_v12, %v2131_v30  ;;  %v2134_v8 = vadd.f32 %v2778_v61, %v2020_v1  ;;  %v2018_v4 = vadd.f32 %v2001_v34, %v1908_v53 }
 0x16a   : > { %2154 = vst.msk [vmem:[%s3749_s27 + $0x20] sm:$0xff] %vm1031_vm0, %v2146_v5  ;;  %v2149_v0 = vadd.f32 %v2528_v12, %v2134_v8  ;;  %v2132_v50 = vadd.f32 %v2115_v2, %v2018_v4 }
 0x16c   : > { %2157 = vst.msk [vmem:[%s3749_s27 + $0x38] sm:$0xff] %vm1031_vm0, %v2149_v0  ;;  %v2147_v11 = vadd.f32 %v2528_v12, %v2132_v50 }
 0x16e   : > { %2155 = vst.msk [vmem:[%s3749_s27 + $0x28] sm:$0xff] %vm1031_vm0, %v2147_v11 }
 0x16f   : > { %2951 = shalt.err (!%p2948_p13)
}
 0x170   : > { %s2952_s24 = scalar_lea.hbm %s3771_s19, 1024  ;;  %s2956_s20 = scalar_lea.hbm %s3841_s9, 8192 }
 0x171   : > { %p2953_p0 = scmp.ne.s32.totalorder %s3771_s19, %s2952_s24  ;;  %p2957_p4 = scmp.lt.s32.totalorder %s3771_s19, %s3841_s9 }
 0x172   : > { %p2958_p5 = scmp.lt.s32.totalorder %s2956_s20, %s2952_s24 }
 0x173   : > { %p2954_p1 = pnand %p2953_p0, %p3136_p3 }
 0x174   : > { %p2959_p6 = por %p2958_p5, %p2957_p4 }
 0x175   : > { %p2955_p2 = pneg %p2954_p1 }
 0x177   : > { %p2960_p7 = pnand %p2959_p6, %p2955_p2 }
 0x179   : > { %2963 = shalt.err (!%p2960_p7)
}
 0x17a   : > { %s3033_s12 = smov 128   ;;  %s3034_s21 = smov 8  }
 0x17b   : > { %2779 = dma.vmem_to_hbm [thread:$0]  (%p3136_p3), %s3773_s13, 1024, %s3771_s19, %s3781_s25, %s3033_s12, %s3033_s12, %s3034_s21  }
 0x17c PF: > { %p2785_p9 = scmp.ge.s32.totalorder %s3030_s16, 2  ;;  %s2190_s15 = sand.u32 1, %s3002_s30  }
 0x17d   : > { %s2191_s28 = scalar_lea.sflag [#allocation3], %s2190_s15 }
 0x17e   : > { %p2782_p10 = pnand %p2785_p9, %p3145_p8 }
 0x180   : > { %p2783_p11 = pneg %p2782_p10 }
 0x182   : > { %2997 = dma.done.wait (%p2783_p11), %s2191_s28, 1024  }
 0x183   : > { %2999 = vsyncadd (%p2783_p11), %s2191_s28, 4294966272  ;;  %s22_s16 = sadd.s32 1, %s3030_s16   ;;  %s3886_s18 = sld [smem:[#allocation9_spill]] }
 0x184   : > { %p19_p12 = scmp.ge.s32.totalorder %s22_s16, 10   ;;  %s3887_s12 = sld [smem:[#allocation5_spill]] }
 0x185   : > { %s3888_s13 = sld [smem:[#allocation6_spill]]  ;;  %s3891_s30 = smov %s3006_s10 }
 0x186   : > { %s3889_s14 = sld [smem:[#allocation7_spill]]  ;;  %s3892_s10 = smov %s3010_s11 }
 0x187   : > { %s3890_s15 = sld [smem:[#allocation8_spill]]  ;;  %21 = sbr.rel (!%p19_p12) target bundleno = 7 (0x7), region = 111 }
 0x189   : > { %s3893_s11 = smov %s3886_s18 }
 0x18c   :  { %2196 = vsyncpa [#allocation3], 1 }
 0x18d   :  { %2198 = vsyncpa [#allocation3 + $0x1], 1 }

</bundles_post_ra>
